<compile_context>
chip_gen: v6e
topology: v6e:2x2x1
jax: 0.10.0
libtpu: 0.0.40
codegen_flags: <defaults>
</compile_context>

<pallas_src>
import jax
import jax.numpy as jnp
import numpy as np
from jax.experimental import pallas as pl
from jax.experimental.pallas import tpu as pltpu

EPS = 1e-3


def fused_conv_bn_kernel(x_ref, w_ref, gamma_ref, beta_ref, o_ref):
    """One grid step: all P pixels x one tile of output channels.

    x_ref     : (P, Cin)  bf16  added activations (residual add done in wrapper)
    w_ref     : (Cin, tn) bf16  slice of the 1x1-conv weight (pre-transposed)
    gamma_ref : (1, tn)   f32   BN scale slice
    beta_ref  : (1, tn)   f32   BN shift slice
    o_ref     : (P, tn)   f32   output slice
    """
    # 1x1 conv == matmul on the MXU: bf16 x bf16 inputs, f32 accumulation.
    y = jnp.dot(x_ref[...], w_ref[...],
                preferred_element_type=jnp.float32)                  # (P, tn) f32

    # BatchNorm (training mode, batch stats over P = N*H*W).
    p = y.shape[0]
    inv_p = 1.0 / p
    mean = jnp.sum(y, axis=0, keepdims=True) * inv_p                 # (1, tn)
    centered = y - mean                                              # (P, tn)
    var = jnp.sum(centered * centered, axis=0, keepdims=True) * inv_p
    inv_std = jax.lax.rsqrt(var + EPS)                               # EUP

    scale = gamma_ref[...] * inv_std                                 # (1, tn)
    o_ref[...] = centered * scale + beta_ref[...]


def _tensorcores_per_chip():
    """Best-effort TC-per-chip detection (only affects tiling, not correctness)."""
    try:
        d = jax.devices()[0]
        n = getattr(d, "num_cores", None)
        if n is None:
            kind = str(getattr(d, "device_kind", "")).lower()
            n = 2 if "7" in kind else 1        # v7x has 2 TCs/chip; v5e/v6e have 1
        return max(1, int(n))
    except Exception:
        return 1


def add_conv_bn(x734, x719, weight, gamma, beta, *, tn=None):
    """x734, x719: (N, Cin, H, W) f32
       weight    : (Cout, Cin, 1, 1) f32
       gamma/beta: (Cout,) f32
       returns   : (N, Cout, H, W) f32
    """
    N, Cin, H, W = x734.shape
    Cout = weight.shape[0]
    P = N * H * W

    if tn is None:
        # grid=(1,) on single-TC chips; split Cout over the 2 TCs on v7x.
        if _tensorcores_per_chip() >= 2 and (Cout // 2) % 128 == 0:
            tn = Cout // 2
        else:
            tn = Cout
    assert Cout % tn == 0 and tn % 128 == 0 and Cin % 128 == 0

    # Residual add fused into the NCHW->NHWC transpose (free for XLA); cast the
    # activations to bf16 so the kernel runs the fast bf16 MXU path.
    x = jnp.transpose(x734 + x719, (0, 2, 3, 1)).reshape(P, Cin).astype(jnp.bfloat16)
    # (Cout, Cin, 1, 1) -> (Cin, Cout), bf16: halves the dominant HBM transfer.
    w = jnp.transpose(weight.reshape(Cout, Cin), (1, 0)).astype(jnp.bfloat16)
    g = gamma.reshape(1, Cout).astype(jnp.float32)
    b = beta.reshape(1, Cout).astype(jnp.float32)

    out = pl.pallas_call(
        fused_conv_bn_kernel,
        out_shape=jax.ShapeDtypeStruct((P, Cout), jnp.float32),
        grid_spec=pltpu.PrefetchScalarGridSpec(
            num_scalar_prefetch=0,
            grid=(Cout // tn,),                              # (1,) on v5e/v6e, (2,) on v7x
            in_specs=[
                pl.BlockSpec((P, Cin), lambda j: (0, 0)),    # x (bf16, tiny)
                pl.BlockSpec((Cin, tn), lambda j: (0, j)),   # weight tile (bf16)
                pl.BlockSpec((1, tn), lambda j: (0, j)),     # gamma tile
                pl.BlockSpec((1, tn), lambda j: (0, j)),     # beta tile
            ],
            out_specs=pl.BlockSpec((P, tn), lambda j: (0, j)),
        ),
        compiler_params=pltpu.CompilerParams(
            dimension_semantics=("parallel",),               # 2-way TC split on v7x
        ),
    )(x, w, g, b)

    return jnp.transpose(out.reshape(N, H, W, Cout), (0, 3, 1, 2))


def reference(x734, x719, weight, gamma, beta, *, low_precision_inputs=False):
    """Plain-JAX reference matching the PyTorch forward (training-mode BN).
    low_precision_inputs=True reproduces the kernel's bf16 rounding of the
    matmul inputs (weight and activations) for a tight check."""
    N, Cin, H, W = x734.shape
    Cout = weight.shape[0]
    x = x734 + x719
    xm = jnp.transpose(x, (0, 2, 3, 1)).reshape(-1, Cin)
    w = jnp.transpose(weight.reshape(Cout, Cin))
    if low_precision_inputs:
        xm = xm.astype(jnp.bfloat16).astype(jnp.float32)
        w = w.astype(jnp.bfloat16).astype(jnp.float32)
    y = jnp.dot(xm, w, precision=jax.lax.Precision.HIGHEST)          # (P, Cout)
    mean = jnp.mean(y, axis=0, keepdims=True)
    var = jnp.mean((y - mean) ** 2, axis=0, keepdims=True)           # biased var
    yn = (y - mean) / jnp.sqrt(var + EPS) * gamma.reshape(1, -1) + beta.reshape(1, -1)
    return jnp.transpose(yn.reshape(N, H, W, Cout), (0, 3, 1, 2))


if __name__ == "__main__":
    # Shapes implied by the module (already small): N=1, Cin=384, H=W=7, Cout=2304.
    N, Cin, H, W, Cout = 1, 384, 7, 7, 2304

    key = jax.random.PRNGKey(0)
    k1, k2, k3, k4, k5 = jax.random.split(key, 5)

    x734 = jax.random.normal(k1, (N, Cin, H, W), dtype=jnp.float32)
    x719 = jax.random.normal(k2, (N, Cin, H, W), dtype=jnp.float32)
    # Conv2d(384, 2304, 1, bias=False) weight: (Cout, Cin, 1, 1)
    weight = jax.random.normal(k3, (Cout, Cin, 1, 1), dtype=jnp.float32) * 0.02
    # BatchNorm2d affine params
    gamma = 1.0 + 0.1 * jax.random.normal(k4, (Cout,), dtype=jnp.float32)
    beta = 0.1 * jax.random.normal(k5, (Cout,), dtype=jnp.float32)

    out = jax.block_until_ready(add_conv_bn(x734, x719, weight, gamma, beta))
    assert out.shape == (N, Cout, H, W)

    # Tight check against a reference that uses the same bf16-rounded matmul
    # inputs (validates the kernel math itself).
    ref_bf16 = jax.block_until_ready(
        reference(x734, x719, weight, gamma, beta, low_precision_inputs=True))
    np.testing.assert_allclose(np.asarray(out), np.asarray(ref_bf16),
                               rtol=5e-4, atol=5e-4)

    # Loose check against the full-f32 module semantics (bf16 rounding of the
    # matmul inputs only shifts BN-normalized outputs by a few 1e-3).
    ref_f32 = jax.block_until_ready(
        reference(x734, x719, weight, gamma, beta, low_precision_inputs=False))
    np.testing.assert_allclose(np.asarray(out), np.asarray(ref_f32),
                               rtol=3e-2, atol=3e-2)

    print("KERNEL_OK")
</pallas_src>

<mosaic_0001>
module attributes {stable_mosaic.version = 11 : i64} {
  func.func @fused_conv_bn_kernel(%arg0: i32, %arg1: memref<49x384xbf16, #tpu.memory_space<vmem>>, %arg2: memref<384x2304xbf16, #tpu.memory_space<vmem>>, %arg3: memref<1x2304xf32, #tpu.memory_space<vmem>>, %arg4: memref<1x2304xf32, #tpu.memory_space<vmem>>, %arg5: memref<49x2304xf32, #tpu.memory_space<vmem>>) attributes {dimension_semantics = [#tpu.dimension_semantics<parallel>], iteration_bounds = array<i64: 1>, scalar_prefetch = 0 : i64, scratch_operands = 0 : i64, tpu.core_type = #tpu.core_type<tc>, window_params = [{pipeline_mode = #tpu.pipeline_mode<synchronous>, transform_indices = @transform_0, window_bounds = array<i64: 49, 384>}, {transform_indices = @transform_1, window_bounds = array<i64: 384, 2304>}, {transform_indices = @transform_2, window_bounds = array<i64: 1, 2304>}, {transform_indices = @transform_3, window_bounds = array<i64: 1, 2304>}, {transform_indices = @transform_4, window_bounds = array<i64: 49, 2304>}]} {
    %c0 = arith.constant 0 : index
    %c0_0 = arith.constant 0 : index
    %0 = vector.load %arg1[%c0, %c0_0] : memref<49x384xbf16, #tpu.memory_space<vmem>>, vector<49x384xbf16>
    %c0_1 = arith.constant 0 : index
    %c0_2 = arith.constant 0 : index
    %1 = vector.load %arg2[%c0_1, %c0_2] : memref<384x2304xbf16, #tpu.memory_space<vmem>>, vector<384x2304xbf16>
    %cst = arith.constant dense<0.000000e+00> : vector<49x2304xf32>
    %2 = tpu.matmul %0, %1, %cst {dimension_numbers = #tpu.dot_dimension_numbers<[1], [0], [0], [1], [0, 0, 1, 1], [], []>} : vector<49x384xbf16>, vector<384x2304xbf16>, vector<49x2304xf32> -> vector<49x2304xf32>
    %cst_3 = arith.constant dense<0.000000e+00> : vector<2304xf32>
    %3 = vector.multi_reduction <add>, %2, %cst_3 [0] : vector<49x2304xf32> to vector<2304xf32>
    %4 = vector.shape_cast %3 : vector<2304xf32> to vector<1x2304xf32>
    %cst_4 = arith.constant 0.0204081628 : f32
    %5 = vector.broadcast %cst_4 : f32 to vector<1x2304xf32>
    %6 = arith.mulf %4, %5 : vector<1x2304xf32>
    %7 = vector.broadcast %6 : vector<1x2304xf32> to vector<49x2304xf32>
    %8 = arith.subf %2, %7 : vector<49x2304xf32>
    %9 = arith.mulf %8, %8 : vector<49x2304xf32>
    %cst_5 = arith.constant dense<0.000000e+00> : vector<2304xf32>
    %10 = vector.multi_reduction <add>, %9, %cst_5 [0] : vector<49x2304xf32> to vector<2304xf32>
    %11 = vector.shape_cast %10 : vector<2304xf32> to vector<1x2304xf32>
    %cst_6 = arith.constant 0.0204081628 : f32
    %12 = vector.broadcast %cst_6 : f32 to vector<1x2304xf32>
    %13 = arith.mulf %11, %12 : vector<1x2304xf32>
    %cst_7 = arith.constant 1.000000e-03 : f32
    %14 = vector.broadcast %cst_7 : f32 to vector<1x2304xf32>
    %15 = arith.addf %13, %14 : vector<1x2304xf32>
    %16 = math.rsqrt %15 : vector<1x2304xf32>
    %c0_8 = arith.constant 0 : index
    %c0_9 = arith.constant 0 : index
    %17 = vector.load %arg3[%c0_8, %c0_9] : memref<1x2304xf32, #tpu.memory_space<vmem>>, vector<1x2304xf32>
    %18 = arith.mulf %17, %16 : vector<1x2304xf32>
    %19 = vector.broadcast %18 : vector<1x2304xf32> to vector<49x2304xf32>
    %20 = arith.mulf %8, %19 : vector<49x2304xf32>
    %c0_10 = arith.constant 0 : index
    %c0_11 = arith.constant 0 : index
    %21 = vector.load %arg4[%c0_10, %c0_11] : memref<1x2304xf32, #tpu.memory_space<vmem>>, vector<1x2304xf32>
    %22 = vector.broadcast %21 : vector<1x2304xf32> to vector<49x2304xf32>
    %23 = arith.addf %20, %22 : vector<49x2304xf32>
    %c0_12 = arith.constant 0 : index
    %c0_13 = arith.constant 0 : index
    %24 = vector.load %arg5[%c0_12, %c0_13] : memref<49x2304xf32, #tpu.memory_space<vmem>>, vector<49x2304xf32>
    tpu.vector_store %arg5[%c0_12, %c0_13], %23 {strides = array<i32>} : memref<49x2304xf32, #tpu.memory_space<vmem>>, vector<49x2304xf32>,
    return
  }
  func.func @transform_0(%arg0: i32) -> (i32, i32) {
    %c0_i32 = arith.constant 0 : i32
    %c0_i32_0 = arith.constant 0 : i32
    %c0_i32_1 = arith.constant 0 : i32
    return %c0_i32, %c0_i32_0 : i32, i32
  }
  func.func @transform_1(%arg0: i32) -> (i32, i32) {
    %c0_i32 = arith.constant 0 : i32
    %c0_i32_0 = arith.constant 0 : i32
    return %c0_i32, %arg0 : i32, i32
  }
  func.func @transform_2(%arg0: i32) -> (i32, i32) {
    %c0_i32 = arith.constant 0 : i32
    %c0_i32_0 = arith.constant 0 : i32
    return %c0_i32, %arg0 : i32, i32
  }
  func.func @transform_3(%arg0: i32) -> (i32, i32) {
    %c0_i32 = arith.constant 0 : i32
    %c0_i32_0 = arith.constant 0 : i32
    return %c0_i32, %arg0 : i32, i32
  }
  func.func @transform_4(%arg0: i32) -> (i32, i32) {
    %c0_i32 = arith.constant 0 : i32
    %c0_i32_0 = arith.constant 0 : i32
    return %c0_i32, %arg0 : i32, i32
  }
}

</mosaic_0001>

<bundles_post_ra>
// kernel: tpu_custom_call.1
= control target key start
LH: loop header
LB: loop body
LE: loop exit
PB: predicated region body
PF: predicated region fallthrough
CT: control target
= control target key end

     0   :  { %9 = vsyncpa [#allocation3], 0  ;;  %s8945_s0 = inlined_call_operand.hbm [shape: bf16[49,384], index: 0, kind: input, shape index: {}]   ;;  %s8946_s1 = inlined_call_operand.hbm [shape: bf16[384,2304], index: 1, kind: input, shape index: {}]   ;;  %s8947_s2 = inlined_call_operand.hbm [shape: f32[1,2304], index: 2, kind: input, shape index: {}]   ;;  %s8948_s3 = inlined_call_operand.hbm [shape: f32[1,2304], index: 3, kind: input, shape index: {}]   ;;  %s8949_s4 = inlined_call_operand.hbm [shape: f32[49,2304], index: 4, kind: output, shape index: {}]  }
   0x1   :  { %10 = vsyncpa [#allocation6], 0 }
   0x2   :  { %11 = vsyncpa [#allocation9], 0 }
   0x3   :  { %12 = vsyncpa [#allocation4], 0  ;;  %s6820_s15 = smov [#allocation5]  }
   0x4   :  { %s30_s16 = sshll.u32 %s6820_s15, 4  ;;  %s31_s16 = int_to_ptr.vmem [resolvable:$true] %s30_s16 }
   0x5   :  { %s6720_s17 = scalar_lea.vmem %s31_s16, 55296  ;;  %p6725_p1 = scmp.lt.s32.totalorder %s31_s16, %s31_s16 }
   0x6   :  { %p6721_p0 = scmp.ne.s32.totalorder %s31_s16, %s6720_s17  ;;  %p6726_p2 = scmp.lt.s32.totalorder %s6720_s17, %s6720_s17 }
   0x8   :  { %p6727_p3 = por %p6726_p2, %p6725_p1 }
   0xa   :  { %p6728_p4 = pnand %p6727_p3, %p6721_p0 }
   0xc   :  { %6731 = shalt.err (!%p6728_p4)
}
   0xd   :  { %s6821_s18 = smov 1152   ;;  %s6822_s19 = smov 72  }
   0xe   :  { %36 = dma.hbm_to_vmem [thread:$0]  %s8946_s1, 55296, %s31_s16, [#allocation6], %s6821_s18, %s6821_s18, %s6822_s19  }
   0xf   :  { %s6823_s22 = smov [#allocation2]  }
  0x10   :  { %s18_s23 = sshll.u32 %s6823_s22, 4  ;;  %s19_s23 = int_to_ptr.vmem [resolvable:$true] %s18_s23 }
  0x11   :  { %s6740_s24 = scalar_lea.vmem %s19_s23, 1344  ;;  %p6745_p6 = scmp.lt.s32.totalorder %s19_s23, %s19_s23 }
  0x12   :  { %p6741_p5 = scmp.ne.s32.totalorder %s19_s23, %s6740_s24  ;;  %p6746_p7 = scmp.lt.s32.totalorder %s6740_s24, %s6740_s24 }
  0x14   :  { %p6747_p8 = por %p6746_p7, %p6745_p6 }
  0x16   :  { %p6748_p9 = pnand %p6747_p8, %p6741_p5 }
  0x18   :  { %6751 = shalt.err (!%p6748_p9)
}
  0x19   :  { %s6824_s25 = smov 192   ;;  %s6825_s26 = smov 12  }
  0x1a   :  { %24 = dma.hbm_to_vmem [thread:$0]  %s8945_s0, 1344, %s19_s23, [#allocation3], %s6824_s25, %s6824_s25, %s6825_s26  }
  0x1b   :  { %s6826_s29 = smov [#allocation7]   ;;  %s6827_s5 = smov [#allocation8]  }
  0x1c   :  { %s43_s30 = sshll.u32 %s6826_s29, 4  ;;  %s53_s1 = sshll.u32 %s6827_s5, 4  ;;  %s44_s30 = int_to_ptr.vmem [resolvable:$true] %s43_s30  ;;  %s54_s1 = int_to_ptr.vmem [resolvable:$true] %s53_s1 }
  0x1d   :  { %s6760_s6 = scalar_lea.vmem %s44_s30, 288  ;;  %p6765_p11 = scmp.lt.s32.totalorder %s44_s30, %s44_s30 }
  0x1e   :  { %p6761_p10 = scmp.ne.s32.totalorder %s44_s30, %s6760_s6  ;;  %p6766_p12 = scmp.lt.s32.totalorder %s6760_s6, %s6760_s6 }
  0x20   :  { %p6767_p13 = por %p6766_p12, %p6765_p11 }
  0x22   :  { %p6768_p0 = pnand %p6767_p13, %p6761_p10 }
  0x24   :  { %6771 = shalt.err (!%p6768_p0)
}
  0x25   :  { %46 = dma.hbm_to_vmem [thread:$0]  %s8947_s2, 288, %s44_s30, [#allocation6]  }
  0x26   :  { %s6780_s9 = scalar_lea.vmem %s54_s1, 288  ;;  %p6785_p2 = scmp.lt.s32.totalorder %s54_s1, %s54_s1 }
  0x27   :  { %p6781_p1 = scmp.ne.s32.totalorder %s54_s1, %s6780_s9  ;;  %p6786_p3 = scmp.lt.s32.totalorder %s6780_s9, %s6780_s9 }
  0x29   :  { %p6787_p4 = por %p6786_p3, %p6785_p2 }
  0x2b   :  { %p6788_p5 = pnand %p6787_p4, %p6781_p1 }
  0x2d   :  { %6791 = shalt.err (!%p6788_p5)
}
  0x2e   :  { %56 = dma.hbm_to_vmem [thread:$0]  %s8948_s3, 288, %s54_s1, [#allocation9]  }
  0x2f   :  { %6812 = dma.done.wait [#allocation3], 1344  }
  0x30   :  { %6813 = vsyncadd [#allocation3], 4294965952 }
  0x31   :  { %6814 = dma.done.wait [#allocation6], 55584  }
  0x32   :  { %6815 = vsyncadd [#allocation6], 4294911712 }
  0x33   :  { %6816 = dma.done.wait [#allocation9], 288  }
  0x34   :  { %6817 = vsyncadd [#allocation9], 4294967008  ;;  %v8950_v0 = vmov 0   ;;  %v5989_v1 = vld [vmem:[#allocation5 + $0x3f4] ss:$72 sps:$4 sm:$0xff]   ;;  %vm4018_vm0 = vcmask 1040384  }
  0x35   :  { %2838 = vmatprep.mubr.bf16.mxu1 %v8950_v0  ;;  %v5991_v2 = vld [vmem:[#allocation5 + $0xcf4] ss:$72 sps:$4 sm:$0xff]   ;;  %2735 = vmatprep.subr.bf16.mxu0 %v5989_v1  ;;  %v5993_v3 = vld [vmem:[#allocation5 + $0x3f0] ss:$72 sps:$4 sm:$0xff]   ;;  %v5995_v5 = vld [vmem:[#allocation5 + $0x364] ss:$72 sps:$4 sm:$0xff]  }
  0x36   :  { %v5994_v4 = vld [vmem:[#allocation5 + $0xcf0] ss:$72 sps:$4 sm:$0xff]   ;;  %2806 = vmatprep.subr.bf16.mxu1 %v5991_v2  ;;  %2736 = vmatpush1.bf16.msra.mxu0 %v5993_v3  ;;  %v5997_v6 = vld [vmem:[#allocation5 + $0xc64] ss:$72 sps:$4 sm:$0xff]   ;;  %v5999_v7 = vld [vmem:[#allocation5 + $0x360] ss:$72 sps:$4 sm:$0xff]  }
  0x37   :  { %2807 = vmatpush1.bf16.msra.mxu1 %v5994_v4  ;;  %2737 = vmatprep.subr.bf16.mxu0 %v5995_v5  ;;  %v6000_v8 = vld [vmem:[#allocation5 + $0xc60] ss:$72 sps:$4 sm:$0xff]   ;;  %v6001_v9 = vld [vmem:[#allocation5 + $0x2d4] ss:$72 sps:$4 sm:$0xff]   ;;  %v6005_v11 = vld [vmem:[#allocation5 + $0x2d0] ss:$72 sps:$4 sm:$0xff]  }
  0x38   :  { %2808 = vmatprep.subr.bf16.mxu1 %v5997_v6  ;;  %v6003_v10 = vld [vmem:[#allocation5 + $0xbd4] ss:$72 sps:$4 sm:$0xff]   ;;  %v6006_v12 = vld [vmem:[#allocation5 + $0xbd0] ss:$72 sps:$4 sm:$0xff]   ;;  %v6007_v13 = vld [vmem:[#allocation5 + $0x244] ss:$72 sps:$4 sm:$0xff]  }
  0x39   :  { %v6009_v14 = vld [vmem:[#allocation5 + $0xb44] ss:$72 sps:$4 sm:$0xff]   ;;  %v6011_v15 = vld [vmem:[#allocation5 + $0x240] ss:$72 sps:$4 sm:$0xff]   ;;  %v6013_v17 = vld [vmem:[#allocation5 + $0x1b4] ss:$72 sps:$4 sm:$0xff]  }
  0x3a   :  { %2738 = vmatpush1.bf16.msra.mxu0 %v5999_v7  ;;  %v6012_v16 = vld [vmem:[#allocation5 + $0xb40] ss:$72 sps:$4 sm:$0xff]   ;;  %v6015_v18 = vld [vmem:[#allocation5 + $0xab4] ss:$72 sps:$4 sm:$0xff]   ;;  %v6017_v19 = vld [vmem:[#allocation5 + $0x1b0] ss:$72 sps:$4 sm:$0xff]  }
  0x3b   :  { %2809 = vmatpush1.bf16.msra.mxu1 %v6000_v8  ;;  %2739 = vmatprep.subr.bf16.mxu0 %v6001_v9  ;;  %v6018_v20 = vld [vmem:[#allocation5 + $0xab0] ss:$72 sps:$4 sm:$0xff]   ;;  %v6019_v21 = vld [vmem:[#allocation5 + $0x124] ss:$72 sps:$4 sm:$0xff]   ;;  %v6023_v23 = vld [vmem:[#allocation5 + $0x120] ss:$72 sps:$4 sm:$0xff]  }
  0x3c   :  { %2810 = vmatprep.subr.bf16.mxu1 %v6003_v10  ;;  %v6021_v22 = vld [vmem:[#allocation5 + $0xa24] ss:$72 sps:$4 sm:$0xff]   ;;  %v6024_v24 = vld [vmem:[#allocation5 + $0xa20] ss:$72 sps:$4 sm:$0xff]   ;;  %v6025_v25 = vld [vmem:[#allocation5 + $0x94] ss:$72 sps:$4 sm:$0xff]  }
  0x3d   :  { %v6027_v26 = vld [vmem:[#allocation5 + $0x994] ss:$72 sps:$4 sm:$0xff]   ;;  %v6029_v27 = vld [vmem:[#allocation5 + $0x90] ss:$72 sps:$4 sm:$0xff]   ;;  %v6031_v29 = vld [vmem:[#allocation5 + $0x4] ss:$72 sps:$4 sm:$0xff]  }
  0x3e   :  { %2740 = vmatpush1.bf16.msra.mxu0 %v6005_v11  ;;  %v6030_v28 = vld [vmem:[#allocation5 + $0x990] ss:$72 sps:$4 sm:$0xff]   ;;  %v6033_v30 = vld [vmem:[#allocation5 + $0x904] ss:$72 sps:$4 sm:$0xff]   ;;  %v6035_v31 = vld [vmem:[#allocation5] ss:$72 sps:$4 sm:$0xff]  }
  0x3f   :  { %2811 = vmatpush1.bf16.msra.mxu1 %v6006_v12  ;;  %2741 = vmatprep.subr.bf16.mxu0 %v6007_v13  ;;  %v6036_v32 = vld [vmem:[#allocation5 + $0x900] ss:$72 sps:$4 sm:$0xff]   ;;  %v6037_v33 = vld [vmem:[#allocation5 + $0x874] ss:$72 sps:$4 sm:$0xff]   ;;  %v6042_v37 = vld [vmem:[#allocation5 + $0x870] ss:$72 sps:$4 sm:$0xff]  }
  0x40   :  { %2812 = vmatprep.subr.bf16.mxu1 %v6009_v14  ;;  %v6041_v34 = vld [vmem:[#allocation5 + $0x3fc] ss:$72 sps:$4 sm:$0xff]   ;;  %v6871_v35 = vld [vmem:[#allocation2 + $0x8] ss:$12 sps:$4 sm:$0xff]   ;;  %v6046_v40 = vld [vmem:[#allocation5 + $0x368] ss:$72 sps:$4 sm:$0xff]  }
  0x41   :  { %v6039_v36 = vld [vmem:[#allocation5 + $0x3f8] ss:$72 sps:$4 sm:$0xff]   ;;  %v6044_v38 = vld [vmem:[#allocation5 + $0x7e4] ss:$72 sps:$4 sm:$0xff]   ;;  %v6050_v42 = vld [vmem:[#allocation5 + $0x754] ss:$72 sps:$4 sm:$0xff]  }
  0x42   :  { %2742 = vmatpush1.bf16.msra.mxu0 %v6011_v15  ;;  %v6048_v39 = vld [vmem:[#allocation5 + $0x36c] ss:$72 sps:$4 sm:$0xff]   ;;  %v6049_v41 = vld [vmem:[#allocation5 + $0x7e0] ss:$72 sps:$4 sm:$0xff]   ;;  %v6054_v43 = vld [vmem:[#allocation5 + $0x2dc] ss:$72 sps:$4 sm:$0xff]  }
  0x43   :  { %2813 = vmatpush1.bf16.msra.mxu1 %v6012_v16  ;;  %2743 = vmatprep.subr.bf16.mxu0 %v6013_v17  ;;  %v6052_v44 = vld [vmem:[#allocation5 + $0x2d8] ss:$72 sps:$4 sm:$0xff]   ;;  %v6056_v46 = vld [vmem:[#allocation5 + $0x6c4] ss:$72 sps:$4 sm:$0xff]   ;;  %v6058_v48 = vld [vmem:[#allocation5 + $0x248] ss:$72 sps:$4 sm:$0xff]  }
  0x44   :  { %2814 = vmatprep.subr.bf16.mxu1 %v6015_v18  ;;  %v6055_v45 = vld [vmem:[#allocation5 + $0x750] ss:$72 sps:$4 sm:$0xff]   ;;  %v6060_v47 = vld [vmem:[#allocation5 + $0x24c] ss:$72 sps:$4 sm:$0xff]   ;;  %v6061_v49 = vld [vmem:[#allocation5 + $0x6c0] ss:$72 sps:$4 sm:$0xff]  }
  0x45   :  { %v6062_v50 = vld [vmem:[#allocation5 + $0x634] ss:$72 sps:$4 sm:$0xff]   ;;  %v6064_v53 = vld [vmem:[#allocation5 + $0x1b8] ss:$72 sps:$4 sm:$0xff]   ;;  %v6068_v55 = vld [vmem:[#allocation5 + $0x5a4] ss:$72 sps:$4 sm:$0xff]  }
  0x46   :  { %2744 = vmatpush1.bf16.msra.mxu0 %v6017_v19  ;;  %v6875_v51 = vld [vmem:[#allocation2 + $0x4] ss:$12 sps:$4 sm:$0xff]   ;;  %v6072_v56 = vld [vmem:[#allocation5 + $0x12c] ss:$72 sps:$4 sm:$0xff]   ;;  %v6073_v58 = vld [vmem:[#allocation5 + $0x5a0] ss:$72 sps:$4 sm:$0xff]  }
  0x47   :  { %2815 = vmatpush1.bf16.msra.mxu1 %v6018_v20  ;;  %2745 = vmatprep.subr.bf16.mxu0 %v6019_v21  ;;  %v6066_v52 = vld [vmem:[#allocation5 + $0x1bc] ss:$72 sps:$4 sm:$0xff]   ;;  %v6067_v54 = vld [vmem:[#allocation5 + $0x630] ss:$72 sps:$4 sm:$0xff]   ;;  %v6084_v2 = vld [vmem:[#allocation5 + $0xc] ss:$72 sps:$4 sm:$0xff]  }
  0x48   :  { %2816 = vmatprep.subr.bf16.mxu1 %v6021_v22  ;;  %2767 = vmatprep.mubr.bf16.mxu0 %v6875_v51  ;;  %v6070_v57 = vld [vmem:[#allocation5 + $0x128] ss:$72 sps:$4 sm:$0xff]   ;;  %v6878_v59 = vld [vmem:[#allocation2 + $0x20] ss:$12 sps:$4 sm:$0xff]   ;;  %v6074_v60 = vld [vmem:[#allocation5 + $0x514] ss:$72 sps:$4 sm:$0xff]  }
  0x49   :  { %v6078_v61 = vld [vmem:[#allocation5 + $0x9c] ss:$72 sps:$4 sm:$0xff]   ;;  %v6076_v62 = vld [vmem:[#allocation5 + $0x98] ss:$72 sps:$4 sm:$0xff]   ;;  %v6082_v3 = vld [vmem:[#allocation5 + $0x8] ss:$72 sps:$4 sm:$0xff]  }
  0x4a   :  { %2746 = vmatpush1.bf16.msra.mxu0 %v6023_v23  ;;  %v6079_v63 = vld [vmem:[#allocation5 + $0x510] ss:$72 sps:$4 sm:$0xff]   ;;  %v6080_v1 = vld [vmem:[#allocation5 + $0x484] ss:$72 sps:$4 sm:$0xff]   ;;  %v6085_v4 = vld [vmem:[#allocation5 + $0x480] ss:$72 sps:$4 sm:$0xff]  }
  0x4b   :  { %2817 = vmatpush1.bf16.msra.mxu1 %v6024_v24  ;;  %2747 = vmatprep.subr.bf16.mxu0 %v6025_v25  ;;  %v6882_v5 = vld [vmem:[#allocation2 + $0x38] ss:$12 sps:$4 sm:$0xff]   ;;  %v6884_v8 = vld [vmem:[#allocation2] ss:$12 sps:$4 sm:$0xff]   ;;  %v6888_v13 = vld [vmem:[#allocation2 + $0x1c] ss:$12 sps:$4 sm:$0xff]  }
  0x4c   :  { %2818 = vmatprep.subr.bf16.mxu1 %v6027_v26  ;;  %v6091_v6 = vld [vmem:[#allocation5 + $0x87c] ss:$72 sps:$4 sm:$0xff]   ;;  %v6089_v9 = vld [vmem:[#allocation5 + $0x878] ss:$72 sps:$4 sm:$0xff]   ;;  %v6097_v11 = vld [vmem:[#allocation5 + $0x7ec] ss:$72 sps:$4 sm:$0xff]  }
  0x4d   :  { %v6094_v7 = vld [vmem:[#allocation5 + $0xcfc] ss:$72 sps:$4 sm:$0xff]   ;;  %v6092_v10 = vld [vmem:[#allocation5 + $0xcf8] ss:$72 sps:$4 sm:$0xff]   ;;  %v6100_v12 = vld [vmem:[#allocation5 + $0xc6c] ss:$72 sps:$4 sm:$0xff]  }
  0x4e   :  { %2748 = vmatpush1.bf16.msra.mxu0 %v6029_v27  ;;  %v6890_v14 = vld [vmem:[#allocation2 + $0x50] ss:$0 sps:$4 sm:$0x11]   ;;  %v6095_v15 = vld [vmem:[#allocation5 + $0x7e8] ss:$72 sps:$4 sm:$0xff]   ;;  %s6830_s2 = smov [#allocation10]  }
  0x4f   :  { %2819 = vmatpush1.bf16.msra.mxu1 %v6030_v28  ;;  %2749 = vmatprep.subr.bf16.mxu0 %v6031_v29  ;;  %v6098_v16 = vld [vmem:[#allocation5 + $0xc68] ss:$72 sps:$4 sm:$0xff]   ;;  %v6107_v17 = vld [vmem:[#allocation5 + $0x75c] ss:$72 sps:$4 sm:$0xff]   ;;  %v6105_v20 = vld [vmem:[#allocation5 + $0x758] ss:$72 sps:$4 sm:$0xff]  }
  0x50   :  { %2820 = vmatprep.subr.bf16.mxu1 %v6033_v30  ;;  %v6110_v18 = vld [vmem:[#allocation5 + $0xbdc] ss:$72 sps:$4 sm:$0xff]   ;;  %v6108_v21 = vld [vmem:[#allocation5 + $0xbd8] ss:$72 sps:$4 sm:$0xff]   ;;  %v6113_v22 = vld [vmem:[#allocation5 + $0x6cc] ss:$72 sps:$4 sm:$0xff]  }
  0x51   :  { %v6894_v19 = vld [vmem:[#allocation2 + $0x18] ss:$12 sps:$4 sm:$0xff]   ;;  %v6116_v23 = vld [vmem:[#allocation5 + $0xb4c] ss:$72 sps:$4 sm:$0xff]   ;;  %v6902_v29 = vld [vmem:[#allocation2 + $0x30] ss:$12 sps:$4 sm:$0xff]  }
  0x52   :  { %2750 = vmatpush1.bf16.msra.mxu0 %v6035_v31  ;;  %v6898_v24 = vld [vmem:[#allocation2 + $0x34] ss:$12 sps:$4 sm:$0xff]   ;;  %v6111_v25 = vld [vmem:[#allocation5 + $0x6c8] ss:$72 sps:$4 sm:$0xff]   ;;  %v6123_v27 = vld [vmem:[#allocation5 + $0x63c] ss:$72 sps:$4 sm:$0xff]  }
  0x53   :  { %2821 = vmatpush1.bf16.msra.mxu1 %v6036_v32  ;;  %2751 = vmatprep.subr.bf16.mxu0 %v6037_v33  ;;  %v6114_v26 = vld [vmem:[#allocation5 + $0xb48] ss:$72 sps:$4 sm:$0xff]   ;;  %v6126_v28 = vld [vmem:[#allocation5 + $0xabc] ss:$72 sps:$4 sm:$0xff]   ;;  %v6121_v30 = vld [vmem:[#allocation5 + $0x638] ss:$72 sps:$4 sm:$0xff]  }
  0x54   :  { %2877 = vmatprep.subr.bf16.mxu1 %v6041_v34  ;;  %v6124_v31 = vld [vmem:[#allocation5 + $0xab8] ss:$72 sps:$4 sm:$0xff]   ;;  %v6129_v33 = vld [vmem:[#allocation5 + $0x5ac] ss:$72 sps:$4 sm:$0xff]   ;;  %s5518_s3 = sshll.u32 %s6830_s2, 4  ;;  %s5519_s3 = int_to_ptr.vmem [resolvable:$true] %s5518_s3 }
  0x55   :  { %v82_v32 = vld [vmem:[#allocation2 + $0x48] sm:$0x11]  ;;  %s6792_s11 = scalar_lea.vmem %s5519_s3, 16128  ;;  %p6797_p7 = scmp.lt.s32.totalorder %s5519_s3, %s5519_s3 }
  0x56   :  { %2839 = vmatmul.mubr.bf16.vlgmr.msra.gmra.mxu1 %v6871_v35  ;;  %2752 = vmatpush2.bf16.msra.mxu0 %v6042_v37  ;;  %v6132_v34 = vld [vmem:[#allocation5 + $0xa2c] ss:$72 sps:$4 sm:$0xff]   ;;  %v6127_v37 = vld [vmem:[#allocation5 + $0x5a8] ss:$72 sps:$4 sm:$0xff]   ;;  %p6793_p6 = scmp.ne.s32.totalorder %s5519_s3, %s6792_s11  ;;  %p6798_p8 = scmp.lt.s32.totalorder %s6792_s11, %s6792_s11 }
  0x57   :  { %2878 = vmatpush1.bf16.msra.mxu1 %v6039_v36  ;;  %2753 = vmatprep.subr.bf16.mxu0 %v6044_v38  ;;  %v6904_v36 = vcombine.high %v82_v32, %v82_v32  ;;  %v6130_v38 = vld [vmem:[#allocation5 + $0xa28] ss:$72 sps:$4 sm:$0xff]  }
  0x58   :  { %2879 = vmatprep.subr.bf16.mxu1 %v6048_v39  ;;  %2848 = vmatprep.mubr.bf16.mxu1 %v8950_v0  ;;  %v6138_v39 = vld [vmem:[#allocation5 + $0x51c] ss:$72 sps:$4 sm:$0xff]   ;;  %p6799_p9 = por %p6798_p8, %p6797_p7 }
  0x59   :  { %9087 = vst [vmem:[#allocation15_spill] sm:$0xff] %v6904_v36 }
  0x5a   :  { %2754 = vmatpush2.bf16.msra.mxu0 %v6049_v41  ;;  %v6908_v41 = vcombine.low %v82_v32, %v82_v32  ;;  %v6202_v32 = vld [vmem:[#allocation5 + $0x7f0] ss:$72 sps:$4 sm:$0xff]   ;;  %p6800_p10 = pnand %p6799_p9, %p6793_p6 }
  0x5b   :  { %2880 = vmatpush1.bf16.msra.mxu1 %v6046_v40  ;;  %2755 = vmatprep.subr.bf16.mxu0 %v6050_v42  ;;  %v6141_v40 = vld [vmem:[#allocation5 + $0x99c] ss:$72 sps:$4 sm:$0xff]   ;;  %v6136_v42 = vld [vmem:[#allocation5 + $0x518] ss:$72 sps:$4 sm:$0xff]  }
  0x5c   :  { %2881 = vmatprep.subr.bf16.mxu1 %v6054_v43  ;;  %v6139_v43 = vld [vmem:[#allocation5 + $0x998] ss:$72 sps:$4 sm:$0xff]  }
  0x5e   :  { %2756 = vmatpush2.bf16.msra.mxu0 %v6055_v45  ;;  %2849 = vmatmul.mubr.bf16.gmra.mxu1 %v6878_v59  ;;  %v6147_v45 = vld [vmem:[#allocation5 + $0x90c] ss:$72 sps:$4 sm:$0xff]  }
  0x5f   :  { %2882 = vmatpush1.bf16.msra.mxu1 %v6052_v44  ;;  %2757 = vmatprep.subr.bf16.mxu0 %v6056_v46  ;;  %v6144_v44 = vld [vmem:[#allocation5 + $0x48c] ss:$72 sps:$4 sm:$0xff]   ;;  %v6142_v46 = vld [vmem:[#allocation5 + $0x488] ss:$72 sps:$4 sm:$0xff]  }
  0x60   :  { %2883 = vmatprep.subr.bf16.mxu1 %v6060_v47  ;;  %2858 = vmatprep.mubr.bf16.mxu1 %v8950_v0  ;;  %v6145_v47 = vld [vmem:[#allocation5 + $0x908] ss:$72 sps:$4 sm:$0xff]  }
  0x62   :  { %2758 = vmatpush2.bf16.msra.mxu0 %v6061_v49  ;;  %v6153_v49 = vld [vmem:[#allocation5 + $0xd04] ss:$72 sps:$4 sm:$0xff]  }
  0x63   :  { %2884 = vmatpush1.bf16.msra.mxu1 %v6058_v48  ;;  %2759 = vmatprep.subr.bf16.mxu0 %v6062_v50  ;;  %v6150_v48 = vld [vmem:[#allocation5 + $0x404] ss:$72 sps:$4 sm:$0xff]   ;;  %v6148_v50 = vld [vmem:[#allocation5 + $0x400] ss:$72 sps:$4 sm:$0xff]  }
  0x64   :  { %2885 = vmatprep.subr.bf16.mxu1 %v6066_v52  ;;  %v6151_v52 = vld [vmem:[#allocation5 + $0xd00] ss:$72 sps:$4 sm:$0xff]  }
  0x66   :  { %2760 = vmatpush2.bf16.msra.mxu0 %v6067_v54  ;;  %2859 = vmatmul.mubr.bf16.gmra.mxu1 %v6882_v5  ;;  %v6159_v54 = vld [vmem:[#allocation5 + $0xc74] ss:$72 sps:$4 sm:$0xff]  }
  0x67   :  { %2886 = vmatpush1.bf16.msra.mxu1 %v6064_v53  ;;  %2761 = vmatprep.subr.bf16.mxu0 %v6068_v55  ;;  %v6156_v53 = vld [vmem:[#allocation5 + $0x374] ss:$72 sps:$4 sm:$0xff]   ;;  %v6154_v55 = vld [vmem:[#allocation5 + $0x370] ss:$72 sps:$4 sm:$0xff]  }
  0x68   :  { %2887 = vmatprep.subr.bf16.mxu1 %v6072_v56  ;;  %2868 = vmatprep.mubr.bf16.mxu1 %v8950_v0  ;;  %v6157_v56 = vld [vmem:[#allocation5 + $0xc70] ss:$72 sps:$4 sm:$0xff]  }
  0x6a   :  { %2762 = vmatpush2.bf16.msra.mxu0 %v6073_v58  ;;  %v6165_v58 = vld [vmem:[#allocation5 + $0xbe4] ss:$72 sps:$4 sm:$0xff]  }
  0x6b   :  { %2888 = vmatpush1.bf16.msra.mxu1 %v6070_v57  ;;  %2763 = vmatprep.subr.bf16.mxu0 %v6074_v60  ;;  %v6162_v57 = vld [vmem:[#allocation5 + $0x2e4] ss:$72 sps:$4 sm:$0xff]   ;;  %v6160_v60 = vld [vmem:[#allocation5 + $0x2e0] ss:$72 sps:$4 sm:$0xff]  }
  0x6c   :  { %2889 = vmatprep.subr.bf16.mxu1 %v6078_v61  ;;  %v6163_v61 = vld [vmem:[#allocation5 + $0xbe0] ss:$72 sps:$4 sm:$0xff]  }
  0x6e   :  { %2764 = vmatpush2.bf16.msra.mxu0 %v6079_v63  ;;  %2869 = vmatmul.mubr.bf16.gmra.mxu1 %v6890_v14  ;;  %v6171_v63 = vld [vmem:[#allocation5 + $0xb54] ss:$72 sps:$4 sm:$0xff]  }
  0x6f   :  { %2890 = vmatpush1.bf16.msra.mxu1 %v6076_v62  ;;  %2765 = vmatprep.subr.bf16.mxu0 %v6080_v1  ;;  %v6168_v62 = vld [vmem:[#allocation5 + $0x254] ss:$72 sps:$4 sm:$0xff]   ;;  %v6166_v1 = vld [vmem:[#allocation5 + $0x250] ss:$72 sps:$4 sm:$0xff]  }
  0x70   :  { %2891 = vmatprep.subr.bf16.mxu1 %v6084_v2  ;;  %2909 = vmatprep.mubr.bf16.mxu1 %v6875_v51  ;;  %v6169_v2 = vld [vmem:[#allocation5 + $0xb50] ss:$72 sps:$4 sm:$0xff]  }
  0x72   :  { %2766 = vmatpush2.bf16.msra.mxu0 %v6085_v4  ;;  %v6177_v4 = vld [vmem:[#allocation5 + $0xac4] ss:$72 sps:$4 sm:$0xff]  }
  0x73   :  { %2892 = vmatpush1.bf16.msra.mxu1 %v6082_v3  ;;  %2948 = vmatprep.subr.bf16.mxu0 %v6094_v7  ;;  %v6174_v3 = vld [vmem:[#allocation5 + $0x1c4] ss:$72 sps:$4 sm:$0xff]   ;;  %v6175_v7 = vld [vmem:[#allocation5 + $0xac0] ss:$72 sps:$4 sm:$0xff]  }
  0x74   :  { %2893 = vmatprep.subr.bf16.mxu1 %v6091_v6  ;;  %v6172_v6 = vld [vmem:[#allocation5 + $0x1c0] ss:$72 sps:$4 sm:$0xff]  }
  0x75   :  { %2768 = vmatmul.mubr.bf16.vlgmr.msra.gmra.mxu0 %v6884_v8 }
  0x76   :  { %2949 = vmatpush1.bf16.msra.mxu0 %v6092_v10  ;;  %2777 = vmatprep.mubr.bf16.mxu0 %v6888_v13  ;;  %v6183_v10 = vld [vmem:[#allocation5 + $0xa34] ss:$72 sps:$4 sm:$0xff]  }
  0x77   :  { %2894 = vmatpush2.bf16.msra.mxu1 %v6089_v9  ;;  %2950 = vmatprep.subr.bf16.mxu0 %v6100_v12  ;;  %v6180_v9 = vld [vmem:[#allocation5 + $0x134] ss:$72 sps:$4 sm:$0xff]   ;;  %v6181_v12 = vld [vmem:[#allocation5 + $0xa30] ss:$72 sps:$4 sm:$0xff]  }
  0x78   :  { %2895 = vmatprep.subr.bf16.mxu1 %v6097_v11  ;;  %v6178_v11 = vld [vmem:[#allocation5 + $0x130] ss:$72 sps:$4 sm:$0xff]  }
  0x7a   :  { %2951 = vmatpush1.bf16.msra.mxu0 %v6098_v16  ;;  %v6189_v16 = vld [vmem:[#allocation5 + $0x9a4] ss:$72 sps:$4 sm:$0xff]  }
  0x7b   :  { %2896 = vmatpush2.bf16.msra.mxu1 %v6095_v15  ;;  %2952 = vmatprep.subr.bf16.mxu0 %v6110_v18  ;;  %v6186_v15 = vld [vmem:[#allocation5 + $0xa4] ss:$72 sps:$4 sm:$0xff]   ;;  %v6187_v18 = vld [vmem:[#allocation5 + $0x9a0] ss:$72 sps:$4 sm:$0xff]  }
  0x7c   :  { %2897 = vmatprep.subr.bf16.mxu1 %v6107_v17  ;;  %v6184_v17 = vld [vmem:[#allocation5 + $0xa0] ss:$72 sps:$4 sm:$0xff]  }
  0x7d   :  { %2778 = vmatmul.mubr.bf16.gmra.mxu0 %v6894_v19 }
  0x7e   :  { %2953 = vmatpush1.bf16.msra.mxu0 %v6108_v21  ;;  %2787 = vmatprep.mubr.bf16.mxu0 %v6898_v24  ;;  %v6195_v21 = vld [vmem:[#allocation5 + $0x914] ss:$72 sps:$4 sm:$0xff]  }
  0x7f   :  { %2898 = vmatpush2.bf16.msra.mxu1 %v6105_v20  ;;  %2954 = vmatprep.subr.bf16.mxu0 %v6116_v23  ;;  %v6192_v20 = vld [vmem:[#allocation5 + $0x14] ss:$72 sps:$4 sm:$0xff]   ;;  %v6193_v23 = vld [vmem:[#allocation5 + $0x910] ss:$72 sps:$4 sm:$0xff]  }
  0x80   :  { %2899 = vmatprep.subr.bf16.mxu1 %v6113_v22  ;;  %v6190_v22 = vld [vmem:[#allocation5 + $0x10] ss:$72 sps:$4 sm:$0xff]  }
  0x82   :  { %2955 = vmatpush1.bf16.msra.mxu0 %v6114_v26  ;;  %v6201_v26 = vld [vmem:[#allocation5 + $0x40c] ss:$72 sps:$4 sm:$0xff]  }
  0x83   :  { %2900 = vmatpush2.bf16.msra.mxu1 %v6111_v25  ;;  %2956 = vmatprep.subr.bf16.mxu0 %v6126_v28  ;;  %v6198_v25 = vld [vmem:[#allocation5 + $0x884] ss:$72 sps:$4 sm:$0xff]   ;;  %v6199_v28 = vld [vmem:[#allocation5 + $0x408] ss:$72 sps:$4 sm:$0xff]  }
  0x84   :  { %2901 = vmatprep.subr.bf16.mxu1 %v6123_v27  ;;  %v6196_v27 = vld [vmem:[#allocation5 + $0x880] ss:$72 sps:$4 sm:$0xff]  }
  0x85   :  { %2788 = vmatmul.mubr.bf16.gmra.mxu0 %v6902_v29 }
  0x86   :  { %2957 = vmatpush1.bf16.msra.mxu0 %v6124_v31  ;;  %2797 = vmatprep.mubr.bf16.mxu0 %v6904_v36  ;;  %v6207_v31 = vld [vmem:[#allocation5 + $0x37c] ss:$72 sps:$4 sm:$0xff]  }
  0x87   :  { %2902 = vmatpush2.bf16.msra.mxu1 %v6121_v30  ;;  %2958 = vmatprep.subr.bf16.mxu0 %v6132_v34  ;;  %v6204_v30 = vld [vmem:[#allocation5 + $0x7f4] ss:$72 sps:$4 sm:$0xff]   ;;  %v6210_v34 = vld [vmem:[#allocation5 + $0x764] ss:$72 sps:$4 sm:$0xff]  }
  0x88   :  { %2903 = vmatprep.subr.bf16.mxu1 %v6129_v33  ;;  %v6205_v33 = vld [vmem:[#allocation5 + $0x378] ss:$72 sps:$4 sm:$0xff]  }
  0x8a   :  { %2959 = vmatpush1.bf16.msra.mxu0 %v6130_v38  ;;  %v6208_v38 = vld [vmem:[#allocation5 + $0x760] ss:$72 sps:$4 sm:$0xff]  }
  0x8b   :  { %2904 = vmatpush2.bf16.msra.mxu1 %v6127_v37  ;;  %2960 = vmatprep.subr.bf16.mxu0 %v6141_v40  ;;  %v6213_v37 = vld [vmem:[#allocation5 + $0x2ec] ss:$72 sps:$4 sm:$0xff]  }
  0x8c   :  { %2905 = vmatprep.subr.bf16.mxu1 %v6138_v39  ;;  %v6211_v39 = vld [vmem:[#allocation5 + $0x2e8] ss:$72 sps:$4 sm:$0xff]   ;;  %v6216_v40 = vld [vmem:[#allocation5 + $0x6d4] ss:$72 sps:$4 sm:$0xff]  }
  0x8d   :  { %2798 = vmatmul.mubr.bf16.gmra.mxu0 %v6908_v41 }
  0x8e   :  { %2961 = vmatpush1.bf16.msra.mxu0 %v6139_v43  ;;  %2980 = vmatprep.mubr.bf16.mxu0 %v8950_v0  ;;  %v6214_v43 = vld [vmem:[#allocation5 + $0x6d0] ss:$72 sps:$4 sm:$0xff]  }
  0x8f   :  { %2906 = vmatpush2.bf16.msra.mxu1 %v6136_v42  ;;  %2962 = vmatprep.subr.bf16.mxu0 %v6147_v45  ;;  %v6219_v42 = vld [vmem:[#allocation5 + $0x25c] ss:$72 sps:$4 sm:$0xff]   ;;  %v6225_v45 = vld [vmem:[#allocation5 + $0x1cc] ss:$72 sps:$4 sm:$0xff]  }
  0x90   :  { %2907 = vmatprep.subr.bf16.mxu1 %v6144_v44  ;;  %v6222_v44 = vld [vmem:[#allocation5 + $0x644] ss:$72 sps:$4 sm:$0xff]  }
  0x92   :  { %2963 = vmatpush1.bf16.msra.mxu0 %v6145_v47  ;;  %v6223_v47 = vld [vmem:[#allocation5 + $0x1c8] ss:$72 sps:$4 sm:$0xff]  }
  0x93   :  { %2908 = vmatpush2.bf16.msra.mxu1 %v6142_v46  ;;  %3019 = vmatprep.subr.bf16.mxu0 %v6150_v48  ;;  %v6220_v46 = vld [vmem:[#allocation5 + $0x640] ss:$72 sps:$4 sm:$0xff]   ;;  %v6228_v48 = vld [vmem:[#allocation5 + $0x5b4] ss:$72 sps:$4 sm:$0xff]  }
  0x94   :  { %3090 = vmatprep.subr.bf16.mxu1 %v6153_v49  ;;  %v6231_v49 = vld [vmem:[#allocation5 + $0x13c] ss:$72 sps:$4 sm:$0xff]  }
  0x95   :  { %2981 = vmatmul.mubr.bf16.vlgmr.msra.gmra.mxu0 %v6871_v35 }
  0x96   :  { %2910 = vmatmul.mubr.bf16.vlgmr.msra.gmra.mxu1 %v6884_v8  ;;  %3020 = vmatpush1.bf16.msra.mxu0 %v6148_v50  ;;  %v6226_v50 = vld [vmem:[#allocation5 + $0x5b0] ss:$72 sps:$4 sm:$0xff]  }
  0x97   :  { %3091 = vmatpush1.bf16.msra.mxu1 %v6151_v52  ;;  %3021 = vmatprep.subr.bf16.mxu0 %v6156_v53  ;;  %v6229_v52 = vld [vmem:[#allocation5 + $0x138] ss:$72 sps:$4 sm:$0xff]   ;;  %v6237_v53 = vld [vmem:[#allocation5 + $0xac] ss:$72 sps:$4 sm:$0xff]  }
  0x98   :  { %3092 = vmatprep.subr.bf16.mxu1 %v6159_v54  ;;  %2919 = vmatprep.mubr.bf16.mxu1 %v6888_v13  ;;  %v6232_v54 = vld [vmem:[#allocation5 + $0x520] ss:$72 sps:$4 sm:$0xff]  }
  0x99   :  { %2990 = vmatprep.mubr.bf16.mxu0 %v8950_v0 }
  0x9a   :  { %3022 = vmatpush1.bf16.msra.mxu0 %v6154_v55  ;;  %v6235_v55 = vld [vmem:[#allocation5 + $0xa8] ss:$72 sps:$4 sm:$0xff]  }
  0x9b   :  { %3093 = vmatpush1.bf16.msra.mxu1 %v6157_v56  ;;  %3023 = vmatprep.subr.bf16.mxu0 %v6162_v57  ;;  %v6240_v56 = vld [vmem:[#allocation5 + $0x494] ss:$72 sps:$4 sm:$0xff]  }
  0x9c   :  { %3094 = vmatprep.subr.bf16.mxu1 %v6165_v58  ;;  %v6243_v57 = vld [vmem:[#allocation5 + $0x1c] ss:$72 sps:$4 sm:$0xff]   ;;  %v6238_v58 = vld [vmem:[#allocation5 + $0x490] ss:$72 sps:$4 sm:$0xff]  }
  0x9d   :  { %2991 = vmatmul.mubr.bf16.gmra.mxu0 %v6878_v59 }
  0x9e   :  { %2920 = vmatmul.mubr.bf16.gmra.mxu1 %v6894_v19  ;;  %3024 = vmatpush1.bf16.msra.mxu0 %v6160_v60  ;;  %v6241_v60 = vld [vmem:[#allocation5 + $0x18] ss:$72 sps:$4 sm:$0xff]  }
  0x9f   :  { %3095 = vmatpush1.bf16.msra.mxu1 %v6163_v61  ;;  %3025 = vmatprep.subr.bf16.mxu0 %v6168_v62  ;;  %v6249_v61 = vld [vmem:[#allocation5 + $0xd0c] ss:$72 sps:$4 sm:$0xff]   ;;  %v6244_v62 = vld [vmem:[#allocation5 + $0x888] ss:$72 sps:$4 sm:$0xff]  }
  0xa0   :  { %3096 = vmatprep.subr.bf16.mxu1 %v6171_v63  ;;  %2929 = vmatprep.mubr.bf16.mxu1 %v6898_v24  ;;  %v6247_v63 = vld [vmem:[#allocation5 + $0xd08] ss:$72 sps:$4 sm:$0xff]  }
  0xa1   :  { %3000 = vmatprep.mubr.bf16.mxu0 %v8950_v0 }
  0xa2   :  { %3026 = vmatpush1.bf16.msra.mxu0 %v6166_v1  ;;  %v6252_v1 = vld [vmem:[#allocation5 + $0x7fc] ss:$72 sps:$4 sm:$0xff]  }
  0xa3   :  { %3097 = vmatpush1.bf16.msra.mxu1 %v6169_v2  ;;  %3027 = vmatprep.subr.bf16.mxu0 %v6174_v3  ;;  %v6255_v2 = vld [vmem:[#allocation5 + $0xc7c] ss:$72 sps:$4 sm:$0xff]   ;;  %v6250_v3 = vld [vmem:[#allocation5 + $0x7f8] ss:$72 sps:$4 sm:$0xff]  }
  0xa4   :  { %3098 = vmatprep.subr.bf16.mxu1 %v6177_v4  ;;  %v6258_v4 = vld [vmem:[#allocation5 + $0x76c] ss:$72 sps:$4 sm:$0xff]  }
  0xa5   :  { %3001 = vmatmul.mubr.bf16.gmra.mxu0 %v6882_v5 }
  0xa6   :  { %2930 = vmatmul.mubr.bf16.gmra.mxu1 %v6902_v29  ;;  %3028 = vmatpush1.bf16.msra.mxu0 %v6172_v6  ;;  %v6261_v6 = vld [vmem:[#allocation5 + $0xbec] ss:$72 sps:$4 sm:$0xff]  }
  0xa7   :  { %3099 = vmatpush1.bf16.msra.mxu1 %v6175_v7  ;;  %3029 = vmatprep.subr.bf16.mxu0 %v6180_v9  ;;  %v6259_v7 = vld [vmem:[#allocation5 + $0xbe8] ss:$72 sps:$4 sm:$0xff]   ;;  %v6264_v9 = vld [vmem:[#allocation5 + $0x6dc] ss:$72 sps:$4 sm:$0xff]  }
  0xa8   :  { %3100 = vmatprep.subr.bf16.mxu1 %v6183_v10  ;;  %2939 = vmatprep.mubr.bf16.mxu1 %v6904_v36  ;;  %v6267_v10 = vld [vmem:[#allocation5 + $0xb5c] ss:$72 sps:$4 sm:$0xff]  }
  0xa9   :  { %3010 = vmatprep.mubr.bf16.mxu0 %v8950_v0 }
  0xaa   :  { %3030 = vmatpush1.bf16.msra.mxu0 %v6178_v11  ;;  %v6265_v11 = vld [vmem:[#allocation5 + $0xb58] ss:$72 sps:$4 sm:$0xff]  }
  0xab   :  { %3101 = vmatpush1.bf16.msra.mxu1 %v6181_v12  ;;  %3031 = vmatprep.subr.bf16.mxu0 %v6186_v15  ;;  %v6270_v12 = vld [vmem:[#allocation5 + $0x64c] ss:$72 sps:$4 sm:$0xff]  }
  0xac   :  { %3102 = vmatprep.subr.bf16.mxu1 %v6189_v16  ;;  %v6273_v15 = vld [vmem:[#allocation5 + $0xacc] ss:$72 sps:$4 sm:$0xff]   ;;  %v6271_v16 = vld [vmem:[#allocation5 + $0xac8] ss:$72 sps:$4 sm:$0xff]  }
  0xad   :  { %3011 = vmatmul.mubr.bf16.gmra.mxu0 %v6890_v14 }
  0xae   :  { %2940 = vmatmul.mubr.bf16.gmra.mxu1 %v6908_v41  ;;  %3032 = vmatpush1.bf16.msra.mxu0 %v6184_v17  ;;  %v6276_v17 = vld [vmem:[#allocation5 + $0x5bc] ss:$72 sps:$4 sm:$0xff]  }
  0xaf   :  { %3103 = vmatpush1.bf16.msra.mxu1 %v6187_v18  ;;  %3033 = vmatprep.subr.bf16.mxu0 %v6192_v20  ;;  %v6279_v18 = vld [vmem:[#allocation5 + $0xa3c] ss:$72 sps:$4 sm:$0xff]   ;;  %v6277_v20 = vld [vmem:[#allocation5 + $0xa38] ss:$72 sps:$4 sm:$0xff]  }
  0xb0   :  { %3104 = vmatprep.subr.bf16.mxu1 %v6195_v21  ;;  %3122 = vmatprep.mubr.bf16.mxu1 %v8950_v0  ;;  %v6282_v21 = vld [vmem:[#allocation5 + $0x52c] ss:$72 sps:$4 sm:$0xff]  }
  0xb1   :  { %3051 = vmatprep.mubr.bf16.mxu0 %v6875_v51 }
  0xb2   :  { %3034 = vmatpush1.bf16.msra.mxu0 %v6190_v22  ;;  %v6285_v22 = vld [vmem:[#allocation5 + $0x9ac] ss:$72 sps:$4 sm:$0xff]  }
  0xb3   :  { %3105 = vmatpush1.bf16.msra.mxu1 %v6193_v23  ;;  %3035 = vmatprep.subr.bf16.mxu0 %v6198_v25  ;;  %v6280_v23 = vld [vmem:[#allocation5 + $0x528] ss:$72 sps:$4 sm:$0xff]  }
  0xb4   :  { %3161 = vmatprep.subr.bf16.mxu1 %v6201_v26  ;;  %v6283_v25 = vld [vmem:[#allocation5 + $0x9a8] ss:$72 sps:$4 sm:$0xff]   ;;  %v6288_v26 = vld [vmem:[#allocation5 + $0x49c] ss:$72 sps:$4 sm:$0xff]  }
  0xb6   :  { %3123 = vmatmul.mubr.bf16.vlgmr.msra.gmra.mxu1 %v6871_v35  ;;  %3036 = vmatpush2.bf16.msra.mxu0 %v6196_v27  ;;  %v6217_v35 = vld [vmem:[#allocation5 + $0x258] ss:$72 sps:$4 sm:$0xff]   ;;  %v6291_v27 = vld [vmem:[#allocation5 + $0x91c] ss:$72 sps:$4 sm:$0xff]  }
  0xb7   :  { %3162 = vmatpush1.bf16.msra.mxu1 %v6199_v28  ;;  %3037 = vmatprep.subr.bf16.mxu0 %v6204_v30  ;;  %v6286_v28 = vld [vmem:[#allocation5 + $0x498] ss:$72 sps:$4 sm:$0xff]  }
  0xb8   :  { %3163 = vmatprep.subr.bf16.mxu1 %v6207_v31  ;;  %3132 = vmatprep.mubr.bf16.mxu1 %v8950_v0  ;;  %v6289_v30 = vld [vmem:[#allocation5 + $0x918] ss:$72 sps:$4 sm:$0xff]   ;;  %v6294_v31 = vld [vmem:[#allocation5 + $0x414] ss:$72 sps:$4 sm:$0xff]  }
  0xba   :  { %3038 = vmatpush2.bf16.msra.mxu0 %v6202_v32  ;;  %v6297_v32 = vld [vmem:[#allocation5 + $0xd14] ss:$72 sps:$4 sm:$0xff]  }
  0xbb   :  { %3164 = vmatpush1.bf16.msra.mxu1 %v6205_v33  ;;  %3039 = vmatprep.subr.bf16.mxu0 %v6210_v34  ;;  %v6292_v33 = vld [vmem:[#allocation5 + $0x410] ss:$72 sps:$4 sm:$0xff]  }
  0xbc   :  { %3165 = vmatprep.subr.bf16.mxu1 %v6213_v37  ;;  %v6295_v34 = vld [vmem:[#allocation5 + $0xd10] ss:$72 sps:$4 sm:$0xff]   ;;  %v6300_v37 = vld [vmem:[#allocation5 + $0x384] ss:$72 sps:$4 sm:$0xff]  }
  0xbe   :  { %3133 = vmatmul.mubr.bf16.gmra.mxu1 %v6878_v59  ;;  %3040 = vmatpush2.bf16.msra.mxu0 %v6208_v38  ;;  %v6234_v59 = vld [vmem:[#allocation5 + $0x524] ss:$72 sps:$4 sm:$0xff]  }
  0xbf   :  { %3166 = vmatpush1.bf16.msra.mxu1 %v6211_v39  ;;  %3041 = vmatprep.subr.bf16.mxu0 %v6216_v40  ;;  %v6303_v38 = vld [vmem:[#allocation5 + $0xc84] ss:$72 sps:$4 sm:$0xff]   ;;  %v6947_v40 = vld [vmem:[#allocation2 + $0x8] ss:$12 sps:$4 sm:$0xff]  }
  0xc0   :  { %3167 = vmatprep.subr.bf16.mxu1 %v6219_v42  ;;  %3142 = vmatprep.mubr.bf16.mxu1 %v8950_v0  ;;  %v6944_v39 = vld [vmem:[#allocation2] ss:$12 sps:$4 sm:$0xff]   ;;  %v6298_v42 = vld [vmem:[#allocation5 + $0x380] ss:$72 sps:$4 sm:$0xff]  }
  0xc2   :  { %3042 = vmatpush2.bf16.msra.mxu0 %v6214_v43  ;;  %v6301_v43 = vld [vmem:[#allocation5 + $0xc80] ss:$72 sps:$4 sm:$0xff]  }
  0xc3   :  { %3168 = vmatpush1.bf16.msra.mxu1 %v6217_v35  ;;  %3043 = vmatprep.subr.bf16.mxu0 %v6222_v44  ;;  %v6306_v35 = vld [vmem:[#allocation5 + $0x2f4] ss:$72 sps:$4 sm:$0xff]  }
  0xc4   :  { %3169 = vmatprep.subr.bf16.mxu1 %v6225_v45  ;;  %v6309_v44 = vld [vmem:[#allocation5 + $0xbf4] ss:$72 sps:$4 sm:$0xff]  }
  0xc5   :  { %v6950_v45 = vld [vmem:[#allocation2 + $0x1c] ss:$12 sps:$4 sm:$0xff]  }
  0xc6   :  { %3143 = vmatmul.mubr.bf16.gmra.mxu1 %v6882_v5  ;;  %3044 = vmatpush2.bf16.msra.mxu0 %v6220_v46  ;;  %v6246_v5 = vld [vmem:[#allocation5 + $0x88c] ss:$72 sps:$4 sm:$0xff]   ;;  %v6304_v46 = vld [vmem:[#allocation5 + $0x2f0] ss:$72 sps:$4 sm:$0xff]  }
  0xc7   :  { %3170 = vmatpush1.bf16.msra.mxu1 %v6223_v47  ;;  %3045 = vmatprep.subr.bf16.mxu0 %v6228_v48  ;;  %v6307_v47 = vld [vmem:[#allocation5 + $0xbf0] ss:$72 sps:$4 sm:$0xff]   ;;  %v6312_v48 = vld [vmem:[#allocation5 + $0x264] ss:$72 sps:$4 sm:$0xff]  }
  0xc8   :  { %3171 = vmatprep.subr.bf16.mxu1 %v6231_v49  ;;  %3152 = vmatprep.mubr.bf16.mxu1 %v8950_v0  ;;  %v6315_v49 = vld [vmem:[#allocation5 + $0xb64] ss:$72 sps:$4 sm:$0xff]  }
  0xca   :  { %3046 = vmatpush2.bf16.msra.mxu0 %v6226_v50  ;;  %v6954_v50 = vld [vmem:[#allocation2 + $0x18] ss:$12 sps:$4 sm:$0xff]  }
  0xcb   :  { %3172 = vmatpush1.bf16.msra.mxu1 %v6229_v52  ;;  %3047 = vmatprep.subr.bf16.mxu0 %v6234_v59  ;;  %v6957_v52 = vld [vmem:[#allocation2 + $0x20] ss:$12 sps:$4 sm:$0xff]   ;;  %v6310_v59 = vld [vmem:[#allocation5 + $0x260] ss:$72 sps:$4 sm:$0xff]  }
  0xcc   :  { %3173 = vmatprep.subr.bf16.mxu1 %v6237_v53  ;;  %v6313_v53 = vld [vmem:[#allocation5 + $0xb60] ss:$72 sps:$4 sm:$0xff]  }
  0xce   :  { %3153 = vmatmul.mubr.bf16.gmra.mxu1 %v6890_v14  ;;  %3048 = vmatpush2.bf16.msra.mxu0 %v6232_v54  ;;  %v6253_v14 = vld [vmem:[#allocation5 + $0xc78] ss:$72 sps:$4 sm:$0xff]   ;;  %v6318_v54 = vld [vmem:[#allocation5 + $0x1d4] ss:$72 sps:$4 sm:$0xff]  }
  0xcf   :  { %3174 = vmatpush1.bf16.msra.mxu1 %v6235_v55  ;;  %3049 = vmatprep.subr.bf16.mxu0 %v6240_v56  ;;  %v6321_v55 = vld [vmem:[#allocation5 + $0xad4] ss:$72 sps:$4 sm:$0xff]   ;;  %v6316_v56 = vld [vmem:[#allocation5 + $0x1d0] ss:$72 sps:$4 sm:$0xff]  }
  0xd0   :  { %3175 = vmatprep.subr.bf16.mxu1 %v6243_v57  ;;  %3193 = vmatprep.mubr.bf16.mxu1 %v6875_v51  ;;  %v6256_v51 = vld [vmem:[#allocation5 + $0x768] ss:$72 sps:$4 sm:$0xff]  }
  0xd1   :  { %v6319_v57 = vld [vmem:[#allocation5 + $0xad0] ss:$72 sps:$4 sm:$0xff]  }
  0xd2   :  { %3050 = vmatpush2.bf16.msra.mxu0 %v6238_v58  ;;  %v6324_v58 = vld [vmem:[#allocation5 + $0x144] ss:$72 sps:$4 sm:$0xff]  }
  0xd3   :  { %3176 = vmatpush1.bf16.msra.mxu1 %v6241_v60  ;;  %3232 = vmatprep.subr.bf16.mxu0 %v6249_v61  ;;  %v6327_v60 = vld [vmem:[#allocation5 + $0xa44] ss:$72 sps:$4 sm:$0xff]   ;;  %v6322_v61 = vld [vmem:[#allocation5 + $0x140] ss:$72 sps:$4 sm:$0xff]  }
  0xd4   :  { %3177 = vmatprep.subr.bf16.mxu1 %v6246_v5  ;;  %v6963_v5 = vld [vmem:[#allocation2 + $0x38] ss:$12 sps:$4 sm:$0xff]  }
  0xd5   :  { %3052 = vmatmul.mubr.bf16.vlgmr.msra.gmra.mxu0 %v6884_v8  ;;  %v6262_v8 = vld [vmem:[#allocation5 + $0x6d8] ss:$72 sps:$4 sm:$0xff]  }
  0xd6   :  { %3233 = vmatpush1.bf16.msra.mxu0 %v6247_v63  ;;  %3061 = vmatprep.mubr.bf16.mxu0 %v6888_v13  ;;  %v6268_v13 = vld [vmem:[#allocation5 + $0x648] ss:$72 sps:$4 sm:$0xff]   ;;  %v6333_v63 = vld [vmem:[#allocation5 + $0x9b4] ss:$72 sps:$4 sm:$0xff]  }
  0xd7   :  { %3178 = vmatpush2.bf16.msra.mxu1 %v6244_v62  ;;  %3234 = vmatprep.subr.bf16.mxu0 %v6255_v2  ;;  %v6325_v62 = vld [vmem:[#allocation5 + $0xa40] ss:$72 sps:$4 sm:$0xff]   ;;  %v6331_v2 = vld [vmem:[#allocation5 + $0x9b0] ss:$72 sps:$4 sm:$0xff]  }
  0xd8   :  { %3179 = vmatprep.subr.bf16.mxu1 %v6252_v1  ;;  %v6328_v1 = vld [vmem:[#allocation5 + $0xb0] ss:$72 sps:$4 sm:$0xff]  }
  0xda   :  { %3235 = vmatpush1.bf16.msra.mxu0 %v6253_v14  ;;  %v6969_v14 = vld [vmem:[#allocation2 + $0x50] ss:$0 sps:$4 sm:$0x11]  }
  0xdb   :  { %3180 = vmatpush2.bf16.msra.mxu1 %v6250_v3  ;;  %3236 = vmatprep.subr.bf16.mxu0 %v6261_v6  ;;  %v6339_v3 = vld [vmem:[#allocation5 + $0x924] ss:$72 sps:$4 sm:$0xff]   ;;  %v6337_v6 = vld [vmem:[#allocation5 + $0x920] ss:$72 sps:$4 sm:$0xff]  }
  0xdc   :  { %3181 = vmatprep.subr.bf16.mxu1 %v6258_v4  ;;  %v6334_v4 = vld [vmem:[#allocation5 + $0x20] ss:$72 sps:$4 sm:$0xff]  }
  0xdd   :  { %3062 = vmatmul.mubr.bf16.gmra.mxu0 %v6894_v19  ;;  %v6274_v19 = vld [vmem:[#allocation5 + $0x5b8] ss:$72 sps:$4 sm:$0xff]  }
  0xde   :  { %3237 = vmatpush1.bf16.msra.mxu0 %v6259_v7  ;;  %3071 = vmatprep.mubr.bf16.mxu0 %v6898_v24  ;;  %v6345_v7 = vld [vmem:[#allocation5 + $0x41c] ss:$72 sps:$4 sm:$0xff]  }
  0xdf   :  { %3182 = vmatpush2.bf16.msra.mxu1 %v6256_v51  ;;  %3238 = vmatprep.subr.bf16.mxu0 %v6267_v10  ;;  %v6342_v51 = vld [vmem:[#allocation5 + $0x894] ss:$72 sps:$4 sm:$0xff]   ;;  %v6340_v10 = vld [vmem:[#allocation5 + $0x890] ss:$72 sps:$4 sm:$0xff]  }
  0xe0   :  { %3183 = vmatprep.subr.bf16.mxu1 %v6264_v9  ;;  %v6973_v9 = vld [vmem:[#allocation2 + $0x4] ss:$12 sps:$4 sm:$0xff]  }
  0xe2   :  { %3239 = vmatpush1.bf16.msra.mxu0 %v6265_v11  ;;  %v6348_v11 = vld [vmem:[#allocation5 + $0x804] ss:$72 sps:$4 sm:$0xff]  }
  0xe3   :  { %3184 = vmatpush2.bf16.msra.mxu1 %v6262_v8  ;;  %3240 = vmatprep.subr.bf16.mxu0 %v6273_v15  ;;  %v6343_v8 = vld [vmem:[#allocation5 + $0x418] ss:$72 sps:$4 sm:$0xff]  }
  0xe4   :  { %3185 = vmatprep.subr.bf16.mxu1 %v6270_v12  ;;  %v6351_v12 = vld [vmem:[#allocation5 + $0x38c] ss:$72 sps:$4 sm:$0xff]   ;;  %v6346_v15 = vld [vmem:[#allocation5 + $0x800] ss:$72 sps:$4 sm:$0xff]  }
  0xe5   :  { %3072 = vmatmul.mubr.bf16.gmra.mxu0 %v6902_v29 }
  0xe6   :  { %3241 = vmatpush1.bf16.msra.mxu0 %v6271_v16  ;;  %3081 = vmatprep.mubr.bf16.mxu0 %v6904_v36  ;;  %v6354_v16 = vld [vmem:[#allocation5 + $0x774] ss:$72 sps:$4 sm:$0xff]  }
  0xe7   :  { %3186 = vmatpush2.bf16.msra.mxu1 %v6268_v13  ;;  %3242 = vmatprep.subr.bf16.mxu0 %v6279_v18  ;;  %v6349_v13 = vld [vmem:[#allocation5 + $0x388] ss:$72 sps:$4 sm:$0xff]  }
  0xe8   :  { %3187 = vmatprep.subr.bf16.mxu1 %v6276_v17  ;;  %v6357_v17 = vld [vmem:[#allocation5 + $0x2fc] ss:$72 sps:$4 sm:$0xff]   ;;  %v6352_v18 = vld [vmem:[#allocation5 + $0x770] ss:$72 sps:$4 sm:$0xff]  }
  0xea   :  { %3243 = vmatpush1.bf16.msra.mxu0 %v6277_v20  ;;  %v6360_v20 = vld [vmem:[#allocation5 + $0x6e4] ss:$72 sps:$4 sm:$0xff]  }
  0xeb   :  { %3188 = vmatpush2.bf16.msra.mxu1 %v6274_v19  ;;  %3244 = vmatprep.subr.bf16.mxu0 %v6285_v22  ;;  %v6355_v19 = vld [vmem:[#allocation5 + $0x2f8] ss:$72 sps:$4 sm:$0xff]   ;;  %v6363_v22 = vld [vmem:[#allocation5 + $0x26c] ss:$72 sps:$4 sm:$0xff]  }
  0xec   :  { %3189 = vmatprep.subr.bf16.mxu1 %v6282_v21 }
  0xed   :  { %3082 = vmatmul.mubr.bf16.gmra.mxu0 %v6908_v41 }
  0xee   :  { %3245 = vmatpush1.bf16.msra.mxu0 %v6283_v25  ;;  %3264 = vmatprep.mubr.bf16.mxu0 %v8950_v0  ;;  %v6361_v25 = vld [vmem:[#allocation5 + $0x268] ss:$72 sps:$4 sm:$0xff]  }
  0xef   :  { %3190 = vmatpush2.bf16.msra.mxu1 %v6280_v23  ;;  %3246 = vmatprep.subr.bf16.mxu0 %v6291_v27  ;;  %v6358_v23 = vld [vmem:[#allocation5 + $0x6e0] ss:$72 sps:$4 sm:$0xff]  }
  0xf0   :  { %3191 = vmatprep.subr.bf16.mxu1 %v6288_v26  ;;  %v6366_v26 = vld [vmem:[#allocation5 + $0x654] ss:$72 sps:$4 sm:$0xff]  }
  0xf2   :  { %3247 = vmatpush1.bf16.msra.mxu0 %v6289_v30  ;;  %v6364_v30 = vld [vmem:[#allocation5 + $0x650] ss:$72 sps:$4 sm:$0xff]  }
  0xf3   :  { %3192 = vmatpush2.bf16.msra.mxu1 %v6286_v28  ;;  %3303 = vmatprep.subr.bf16.mxu0 %v6294_v31  ;;  %v6369_v28 = vld [vmem:[#allocation5 + $0x1dc] ss:$72 sps:$4 sm:$0xff]   ;;  %v6367_v31 = vld [vmem:[#allocation5 + $0x1d8] ss:$72 sps:$4 sm:$0xff]  }
  0xf4   :  { %3374 = vmatprep.subr.bf16.mxu1 %v6297_v32  ;;  %v6372_v32 = vld [vmem:[#allocation5 + $0x5c4] ss:$72 sps:$4 sm:$0xff]  }
  0xf5   :  { %3265 = vmatmul.mubr.bf16.vlgmr.msra.gmra.mxu0 %v6947_v40 }
  0xf6   :  { %3194 = vmatmul.mubr.bf16.vlgmr.msra.gmra.mxu1 %v6944_v39  ;;  %3304 = vmatpush1.bf16.msra.mxu0 %v6292_v33 }
  0xf7   :  { %3375 = vmatpush1.bf16.msra.mxu1 %v6295_v34  ;;  %3305 = vmatprep.subr.bf16.mxu0 %v6300_v37  ;;  %v6375_v34 = vld [vmem:[#allocation5 + $0x14c] ss:$72 sps:$4 sm:$0xff]   ;;  %v6370_v37 = vld [vmem:[#allocation5 + $0x5c0] ss:$72 sps:$4 sm:$0xff]  }
  0xf8   :  { %3376 = vmatprep.subr.bf16.mxu1 %v6303_v38  ;;  %3203 = vmatprep.mubr.bf16.mxu1 %v6950_v45  ;;  %v6373_v38 = vld [vmem:[#allocation5 + $0x148] ss:$72 sps:$4 sm:$0xff]  }
  0xf9   :  { %3274 = vmatprep.mubr.bf16.mxu0 %v8950_v0 }
  0xfa   :  { %3306 = vmatpush1.bf16.msra.mxu0 %v6298_v42  ;;  %v6378_v42 = vld [vmem:[#allocation5 + $0x534] ss:$72 sps:$4 sm:$0xff]  }
  0xfb   :  { %3377 = vmatpush1.bf16.msra.mxu1 %v6301_v43  ;;  %3307 = vmatprep.subr.bf16.mxu0 %v6306_v35  ;;  %v6381_v35 = vld [vmem:[#allocation5 + $0xbc] ss:$72 sps:$4 sm:$0xff]  }
  0xfc   :  { %3378 = vmatprep.subr.bf16.mxu1 %v6309_v44 }
  0xfd   :  { %3275 = vmatmul.mubr.bf16.gmra.mxu0 %v6957_v52 }
  0xfe   :  { %3204 = vmatmul.mubr.bf16.gmra.mxu1 %v6954_v50  ;;  %3308 = vmatpush1.bf16.msra.mxu0 %v6304_v46  ;;  %v6376_v46 = vld [vmem:[#allocation5 + $0x530] ss:$72 sps:$4 sm:$0xff]  }
  0xff   :  { %3379 = vmatpush1.bf16.msra.mxu1 %v6307_v47  ;;  %3309 = vmatprep.subr.bf16.mxu0 %v6312_v48  ;;  %v6379_v47 = vld [vmem:[#allocation5 + $0xb8] ss:$72 sps:$4 sm:$0xff]   ;;  %v6384_v48 = vld [vmem:[#allocation5 + $0x4a4] ss:$72 sps:$4 sm:$0xff]  }
 0x100   :  { %3380 = vmatprep.subr.bf16.mxu1 %v6315_v49  ;;  %3213 = vmatprep.mubr.bf16.mxu1 %v6898_v24  ;;  %v6330_v24 = vld [vmem:[#allocation5 + $0xb4] ss:$72 sps:$4 sm:$0xff]  }
 0x101   :  { %3284 = vmatprep.mubr.bf16.mxu0 %v8950_v0 }
 0x102   :  { %3310 = vmatpush1.bf16.msra.mxu0 %v6310_v59  ;;  %v6387_v59 = vld [vmem:[#allocation5 + $0x2c] ss:$72 sps:$4 sm:$0xff]  }
 0x103   :  { %3381 = vmatpush1.bf16.msra.mxu1 %v6313_v53  ;;  %3311 = vmatprep.subr.bf16.mxu0 %v6318_v54  ;;  %v6382_v54 = vld [vmem:[#allocation5 + $0x4a0] ss:$72 sps:$4 sm:$0xff]  }
 0x104   :  { %3382 = vmatprep.subr.bf16.mxu1 %v6321_v55  ;;  %v6385_v55 = vld [vmem:[#allocation5 + $0x28] ss:$72 sps:$4 sm:$0xff]  }
 0x105   :  { %3285 = vmatmul.mubr.bf16.gmra.mxu0 %v6963_v5 }
 0x106   :  { %3214 = vmatmul.mubr.bf16.gmra.mxu1 %v6902_v29  ;;  %3312 = vmatpush1.bf16.msra.mxu0 %v6316_v56  ;;  %v6336_v29 = vld [vmem:[#allocation5 + $0x24] ss:$72 sps:$4 sm:$0xff]  }
 0x107   :  { %3383 = vmatpush1.bf16.msra.mxu1 %v6319_v57  ;;  %3313 = vmatprep.subr.bf16.mxu0 %v6324_v58  ;;  %v6390_v56 = vld [vmem:[#allocation5 + $0x89c] ss:$72 sps:$4 sm:$0xff]  }
 0x108   :  { %3384 = vmatprep.subr.bf16.mxu1 %v6327_v60  ;;  %3223 = vmatprep.mubr.bf16.mxu1 %v6904_v36  ;;  %v6393_v58 = vld [vmem:[#allocation5 + $0xd1c] ss:$72 sps:$4 sm:$0xff]  }
 0x109   :  { %3294 = vmatprep.mubr.bf16.mxu0 %v8950_v0 }
 0x10a   :  { %3314 = vmatpush1.bf16.msra.mxu0 %v6322_v61  ;;  %v6388_v61 = vld [vmem:[#allocation5 + $0x898] ss:$72 sps:$4 sm:$0xff]  }
 0x10b   :  { %3385 = vmatpush1.bf16.msra.mxu1 %v6325_v62  ;;  %3315 = vmatprep.subr.bf16.mxu0 %v6330_v24  ;;  %v6391_v62 = vld [vmem:[#allocation5 + $0xd18] ss:$72 sps:$4 sm:$0xff]   ;;  %v6396_v24 = vld [vmem:[#allocation5 + $0x80c] ss:$72 sps:$4 sm:$0xff]  }
 0x10c   :  { %3386 = vmatprep.subr.bf16.mxu1 %v6333_v63 }
 0x10d   :  { %3295 = vmatmul.mubr.bf16.gmra.mxu0 %v6969_v14 }
 0x10e   :  { %3224 = vmatmul.mubr.bf16.gmra.mxu1 %v6908_v41  ;;  %3316 = vmatpush1.bf16.msra.mxu0 %v6328_v1  ;;  %v6399_v1 = vld [vmem:[#allocation5 + $0xc8c] ss:$72 sps:$4 sm:$0xff]  }
 0x10f   :  { %3387 = vmatpush1.bf16.msra.mxu1 %v6331_v2  ;;  %3317 = vmatprep.subr.bf16.mxu0 %v6336_v29 }
 0x110   :  { %3388 = vmatprep.subr.bf16.mxu1 %v6339_v3  ;;  %3406 = vmatprep.mubr.bf16.mxu1 %v8950_v0  ;;  %v6394_v3 = vld [vmem:[#allocation5 + $0x808] ss:$72 sps:$4 sm:$0xff]  }
 0x111   :  { %3335 = vmatprep.mubr.bf16.mxu0 %v6973_v9 }
 0x112   :  { %3318 = vmatpush1.bf16.msra.mxu0 %v6334_v4  ;;  %v6397_v4 = vld [vmem:[#allocation5 + $0xc88] ss:$72 sps:$4 sm:$0xff]  }
 0x113   :  { %3389 = vmatpush1.bf16.msra.mxu1 %v6337_v6  ;;  %3319 = vmatprep.subr.bf16.mxu0 %v6342_v51  ;;  %v6402_v51 = vld [vmem:[#allocation5 + $0x77c] ss:$72 sps:$4 sm:$0xff]  }
 0x114   :  { %3445 = vmatprep.subr.bf16.mxu1 %v6345_v7 }
 0x116   :  { %3407 = vmatmul.mubr.bf16.vlgmr.msra.gmra.mxu1 %v6947_v40  ;;  %3320 = vmatpush2.bf16.msra.mxu0 %v6340_v10  ;;  %v6978_v21 = vpop.f32.mrf.mxu1 }
 0x117   :  { %3446 = vmatpush1.bf16.msra.mxu1 %v6343_v8  ;;  %3321 = vmatprep.subr.bf16.mxu0 %v6348_v11  ;;  %v6405_v8 = vld [vmem:[#allocation5 + $0xbfc] ss:$72 sps:$4 sm:$0xff]  }
 0x118   :  { %3447 = vmatprep.subr.bf16.mxu1 %v6351_v12  ;;  %3416 = vmatprep.mubr.bf16.mxu1 %v8950_v0  ;;  %v6981_v27 = vpop.f32.mrf.mxu1 }
 0x11a   :  { %3322 = vmatpush2.bf16.msra.mxu0 %v6346_v15  ;;  %v6984_v33 = vpop.f32.mrf.mxu1 }
 0x11b   :  { %3448 = vmatpush1.bf16.msra.mxu1 %v6349_v13  ;;  %3323 = vmatprep.subr.bf16.mxu0 %v6354_v16  ;;  %v6400_v13 = vld [vmem:[#allocation5 + $0x778] ss:$72 sps:$4 sm:$0xff]  }
 0x11c   :  { %3449 = vmatprep.subr.bf16.mxu1 %v6357_v17  ;;  %v6987_v43 = vpop.f32.mrf.mxu1  ;;  %v6403_v16 = vld [vmem:[#allocation5 + $0xbf8] ss:$72 sps:$4 sm:$0xff]  }
 0x11e   :  { %3417 = vmatmul.mubr.bf16.gmra.mxu1 %v6957_v52  ;;  %3324 = vmatpush2.bf16.msra.mxu0 %v6352_v18  ;;  %v6989_v44 = vpop.f32.mrf.mxu1  ;;  %v6408_v18 = vld [vmem:[#allocation5 + $0x6ec] ss:$72 sps:$4 sm:$0xff]  }
 0x11f   :  { %3450 = vmatpush1.bf16.msra.mxu1 %v6355_v19  ;;  %3325 = vmatprep.subr.bf16.mxu0 %v6360_v20 }
 0x120   :  { %3451 = vmatprep.subr.bf16.mxu1 %v6363_v22  ;;  %3426 = vmatprep.mubr.bf16.mxu1 %v8950_v0  ;;  %v6992_v49 = vpop.f32.mrf.mxu1 }
 0x122   :  { %3326 = vmatpush2.bf16.msra.mxu0 %v6358_v23  ;;  %v6994_v53 = vpop.f32.mrf.mxu1 }
 0x123   :  { %3452 = vmatpush1.bf16.msra.mxu1 %v6361_v25  ;;  %3327 = vmatprep.subr.bf16.mxu0 %v6366_v26  ;;  %v6406_v25 = vld [vmem:[#allocation5 + $0x6e8] ss:$72 sps:$4 sm:$0xff]  }
 0x124   :  { %3453 = vmatprep.subr.bf16.mxu1 %v6369_v28  ;;  %v6997_v57 = vpop.f32.mrf.mxu1  ;;  %v6409_v26 = vld [vmem:[#allocation5 + $0xb68] ss:$72 sps:$4 sm:$0xff]  }
 0x126   :  { %3427 = vmatmul.mubr.bf16.gmra.mxu1 %v6963_v5  ;;  %3328 = vmatpush2.bf16.msra.mxu0 %v6364_v30  ;;  %v6999_v60 = vpop.f32.mrf.mxu1 }
 0x127   :  { %3454 = vmatpush1.bf16.msra.mxu1 %v6367_v31  ;;  %3329 = vmatprep.subr.bf16.mxu0 %v6372_v32  ;;  %v6414_v31 = vld [vmem:[#allocation5 + $0x65c] ss:$72 sps:$4 sm:$0xff]  }
 0x128   :  { %3455 = vmatprep.subr.bf16.mxu1 %v6375_v34  ;;  %3436 = vmatprep.mubr.bf16.mxu1 %v8950_v0  ;;  %v7002_v63 = vpop.f32.mrf.mxu1  ;;  %v6417_v34 = vld [vmem:[#allocation5 + $0xadc] ss:$72 sps:$4 sm:$0xff]  }
 0x12a   :  { %3330 = vmatpush2.bf16.msra.mxu0 %v6370_v37  ;;  %v7004_v2 = vpop.f32.mrf.mxu1 }
 0x12b   :  { %3456 = vmatpush1.bf16.msra.mxu1 %v6373_v38  ;;  %3331 = vmatprep.subr.bf16.mxu0 %v6378_v42 }
 0x12c   :  { %3457 = vmatprep.subr.bf16.mxu1 %v6381_v35  ;;  %v7010_v7 = vpop.f32.mrf.mxu1  ;;  %v6412_v35 = vld [vmem:[#allocation5 + $0x658] ss:$72 sps:$4 sm:$0xff]  }
 0x12e   :  { %3437 = vmatmul.mubr.bf16.gmra.mxu1 %v6969_v14  ;;  %3332 = vmatpush2.bf16.msra.mxu0 %v6376_v46  ;;  %v7016_v12 = vpop.f32.mrf.mxu1 }
 0x12f   :  { %3458 = vmatpush1.bf16.msra.mxu1 %v6379_v47  ;;  %3333 = vmatprep.subr.bf16.mxu0 %v6384_v48 }
 0x130   :  { %3459 = vmatprep.subr.bf16.mxu1 %v6387_v59  ;;  %3477 = vmatprep.mubr.bf16.mxu1 %v6973_v9  ;;  %v7021_v19 = vpop.f32.mrf.mxu1  ;;  %v6420_v59 = vld [vmem:[#allocation5 + $0x5cc] ss:$72 sps:$4 sm:$0xff]  }
 0x132   :  { %3334 = vmatpush2.bf16.msra.mxu0 %v6382_v54 }
 0x133   :  { %3460 = vmatpush1.bf16.msra.mxu1 %v6385_v55  ;;  %3516 = vmatprep.subr.bf16.mxu0 %v6393_v58  ;;  %v6418_v58 = vld [vmem:[#allocation5 + $0x5c8] ss:$72 sps:$4 sm:$0xff]  }
 0x134   :  { %3461 = vmatprep.subr.bf16.mxu1 %v6390_v56 }
 0x135   :  { %v2769_v29 = vpop.f32.mrf.mxu0  ;;  %3336 = vmatmul.mubr.bf16.vlgmr.msra.gmra.mxu0 %v6944_v39 }
 0x136   :  { %v7008_v6 = vadd.f32 %v6978_v21, %v2769_v29  ;;  %3517 = vmatpush1.bf16.msra.mxu0 %v6391_v62  ;;  %3345 = vmatprep.mubr.bf16.mxu0 %v6950_v45  ;;  %v6411_v21 = vld [vmem:[#allocation5 + $0xb6c] ss:$72 sps:$4 sm:$0xff]  }
 0x137   :  { %3462 = vmatpush2.bf16.msra.mxu1 %v6388_v61  ;;  %v2771_v10 = vpop.f32.mrf.mxu0  ;;  %3518 = vmatprep.subr.bf16.mxu0 %v6399_v1  ;;  %v6421_v61 = vld [vmem:[#allocation5 + $0xa48] ss:$72 sps:$4 sm:$0xff]   ;;  %v6426_v1 = vld [vmem:[#allocation5 + $0x53c] ss:$72 sps:$4 sm:$0xff]  }
 0x138   :  { %3463 = vmatprep.subr.bf16.mxu1 %v6396_v24  ;;  %v7013_v11 = vadd.f32 %v6981_v27, %v2771_v10  ;;  %v2874_v27 = vpop.f32.mrf.mxu1  ;;  %v7049_v24 = vld [vmem:[#allocation2 + $0x30] ss:$12 sps:$4 sm:$0xff]   ;;  %v6424_v10 = vld [vmem:[#allocation5 + $0x538] ss:$72 sps:$4 sm:$0xff]  }
 0x139   :  { %v2773_v15 = vpop.f32.mrf.mxu0 }
 0x13a   :  { %v7019_v17 = vadd.f32 %v6984_v33, %v2773_v15  ;;  %3519 = vmatpush1.bf16.msra.mxu0 %v6397_v4  ;;  %v2875_v32 = vpop.f32.mrf.mxu1 }
 0x13b   :  { %3464 = vmatpush2.bf16.msra.mxu1 %v6394_v3  ;;  %v2775_v20 = vpop.f32.mrf.mxu0  ;;  %3520 = vmatprep.subr.bf16.mxu0 %v6405_v8  ;;  %v6429_v3 = vld [vmem:[#allocation5 + $0x9bc] ss:$72 sps:$4 sm:$0xff]   ;;  %v6427_v8 = vld [vmem:[#allocation5 + $0x9b8] ss:$72 sps:$4 sm:$0xff]  }
 0x13c   :  { %3465 = vmatprep.subr.bf16.mxu1 %v6402_v51  ;;  %v4013_v22 = vadd.f32 %v7019_v17, %v7008_v6  ;;  %v7026_v23 = vadd.f32 %v6987_v43, %v2775_v20  ;;  %v7038_v43 = vld [vmem:[#allocation2 + $0x34] ss:$12 sps:$4 sm:$0xff]  }
 0x13d   :  { %v2779_v28 = vpop.f32.mrf.mxu0  ;;  %3346 = vmatmul.mubr.bf16.gmra.mxu0 %v6954_v50  ;;  %v6435_v20 = vld [vmem:[#allocation5 + $0x92c] ss:$72 sps:$4 sm:$0xff]  }
 0x13e   :  { %v7030_v30 = vadd.f32 %v6989_v44, %v2779_v28  ;;  %3521 = vmatpush1.bf16.msra.mxu0 %v6403_v16  ;;  %v4027_v37 = vadd.f32 %v7026_v23, %v7013_v11  ;;  %3355 = vmatprep.mubr.bf16.mxu0 %v7038_v43  ;;  %v6415_v44 = vld [vmem:[#allocation5 + $0xad8] ss:$72 sps:$4 sm:$0xff]   ;;  %v6432_v16 = vld [vmem:[#allocation5 + $0x4ac] ss:$72 sps:$4 sm:$0xff]  }
 0x13f   :  { %3466 = vmatpush2.bf16.msra.mxu1 %v6400_v13  ;;  %v2781_v33 = vpop.f32.mrf.mxu0  ;;  %3522 = vmatprep.subr.bf16.mxu0 %v6411_v21  ;;  %v6438_v28 = vld [vmem:[#allocation5 + $0x424] ss:$72 sps:$4 sm:$0xff]  }
 0x140   :  { %3467 = vmatprep.subr.bf16.mxu1 %v6408_v18  ;;  %v4014_v38 = vadd.f32 %v4013_v22, %v7030_v30  ;;  %v7036_v42 = vadd.f32 %v6992_v49, %v2781_v33  ;;  %v6423_v49 = vld [vmem:[#allocation5 + $0xa4c] ss:$72 sps:$4 sm:$0xff]  }
 0x141   :  { %v2783_v46 = vpop.f32.mrf.mxu0 }
 0x142   :  { %v4028_v47 = vadd.f32 %v4027_v37, %v7036_v42  ;;  %v7043_v48 = vadd.f32 %v6994_v53, %v2783_v46  ;;  %3523 = vmatpush1.bf16.msra.mxu0 %v6409_v26  ;;  %v6433_v26 = vld [vmem:[#allocation5 + $0x928] ss:$72 sps:$4 sm:$0xff]  }
 0x143   :  { %3468 = vmatpush2.bf16.msra.mxu1 %v6406_v25  ;;  %v2785_v54 = vpop.f32.mrf.mxu0  ;;  %3524 = vmatprep.subr.bf16.mxu0 %v6417_v34 }
 0x144   :  { %3469 = vmatprep.subr.bf16.mxu1 %v6414_v31  ;;  %v4015_v55 = vadd.f32 %v4014_v38, %v7043_v48  ;;  %v7047_v56 = vadd.f32 %v6997_v57, %v2785_v54  ;;  %v6441_v31 = vld [vmem:[#allocation5 + $0xd24] ss:$72 sps:$4 sm:$0xff]   ;;  %v6436_v38 = vld [vmem:[#allocation5 + $0x420] ss:$72 sps:$4 sm:$0xff]  }
 0x145   :  { %v2789_v62 = vpop.f32.mrf.mxu0  ;;  %3356 = vmatmul.mubr.bf16.gmra.mxu0 %v7049_v24 }
 0x146   :  { %v7053_v53 = vadd.f32 %v6999_v60, %v2789_v62  ;;  %3525 = vmatpush1.bf16.msra.mxu0 %v6415_v44  ;;  %v4029_v57 = vadd.f32 %v4028_v47, %v7047_v56  ;;  %3365 = vmatprep.mubr.bf16.mxu0 %v6904_v36  ;;  %v6442_v62 = vld [vmem:[#allocation5 + $0x390] ss:$72 sps:$4 sm:$0xff]  }
 0x147   :  { %3470 = vmatpush2.bf16.msra.mxu1 %v6412_v35  ;;  %v2791_v29 = vpop.f32.mrf.mxu0  ;;  %3526 = vmatprep.subr.bf16.mxu0 %v6423_v49  ;;  %v6439_v35 = vld [vmem:[#allocation5 + $0xd20] ss:$72 sps:$4 sm:$0xff]  }
 0x148   :  { %3471 = vmatprep.subr.bf16.mxu1 %v6420_v59  ;;  %v4016_v4 = vadd.f32 %v4015_v55, %v7053_v53  ;;  %v7058_v51 = vadd.f32 %v7002_v63, %v2791_v29  ;;  %v6447_v59 = vld [vmem:[#allocation5 + $0xc94] ss:$72 sps:$4 sm:$0xff]  }
 0x149   :  { %v2793_v60 = vpop.f32.mrf.mxu0 }
 0x14a   :  { %v4030_v15 = vadd.f32 %v4029_v57, %v7058_v51  ;;  %v7063_v13 = vadd.f32 %v7004_v2, %v2793_v60  ;;  %3527 = vmatpush1.bf16.msra.mxu0 %v6421_v61  ;;  %v6430_v2 = vld [vmem:[#allocation5 + $0x4a8] ss:$72 sps:$4 sm:$0xff]  }
 0x14b   :  { %3472 = vmatpush2.bf16.msra.mxu1 %v6418_v58  ;;  %v2795_v18 = vpop.f32.mrf.mxu0  ;;  %3528 = vmatprep.subr.bf16.mxu0 %v6429_v3 }
 0x14c   :  { %3473 = vmatprep.subr.bf16.mxu1 %v6426_v1  ;;  %v4017_v63 = vadd.f32 %v4016_v4, %v7063_v13  ;;  %v7067_v21 = vadd.f32 %v7010_v7, %v2795_v18  ;;  %v6445_v1 = vld [vmem:[#allocation5 + $0xc90] ss:$72 sps:$4 sm:$0xff]  }
 0x14d   :  { %v2799_v22 = vpop.f32.mrf.mxu0  ;;  %3366 = vmatmul.mubr.bf16.gmra.mxu0 %v6908_v41 }
 0x14e   :  { %v7071_v25 = vadd.f32 %v7016_v12, %v2799_v22  ;;  %3529 = vmatpush1.bf16.msra.mxu0 %v6427_v8  ;;  %3548 = vmatprep.mubr.bf16.mxu0 %v8950_v0  ;;  %v4031_v12 = vadd.f32 %v4030_v15, %v7067_v21  ;;  %v6453_v8 = vld [vmem:[#allocation5 + $0xc04] ss:$72 sps:$4 sm:$0xff]  }
 0x14f   :  { %3474 = vmatpush2.bf16.msra.mxu1 %v6424_v10  ;;  %v2801_v27 = vpop.f32.mrf.mxu0  ;;  %3530 = vmatprep.subr.bf16.mxu0 %v6435_v20  ;;  %v6450_v10 = vld [vmem:[#allocation5 + $0x304] ss:$72 sps:$4 sm:$0xff]   ;;  %v6448_v20 = vld [vmem:[#allocation5 + $0x300] ss:$72 sps:$4 sm:$0xff]  }
 0x150   :  { %3475 = vmatprep.subr.bf16.mxu1 %v6432_v16  ;;  %v4019_v7 = vsel %vm4018_vm0, %v7071_v25, 0.0  ;;  %v7076_v32 = vadd.f32 %v7021_v19, %v2801_v27  ;;  %v6444_v19 = vld [vmem:[#allocation5 + $0x394] ss:$72 sps:$4 sm:$0xff]  }
 0x151   :  { %v4020_v33 = vadd.f32 %v4019_v7, %v4017_v63  ;;  %v2803_v34 = vpop.f32.mrf.mxu0  ;;  %v6451_v63 = vld [vmem:[#allocation5 + $0xc00] ss:$72 sps:$4 sm:$0xff]  }
 0x152   :  { %v4032_v37 = vsel %vm4018_vm0, %v7076_v32, 0.0  ;;  %3531 = vmatpush1.bf16.msra.mxu0 %v6433_v26 }
 0x153   :  { %3476 = vmatpush2.bf16.msra.mxu1 %v6430_v2  ;;  %v4021_v44 = vrot.slane %v4020_v33, 4  ;;  %v4033_v46 = vadd.f32 %v4032_v37, %v4031_v12  ;;  %v2804_v47 = vpop.f32.mrf.mxu0  ;;  %3587 = vmatprep.subr.bf16.mxu0 %v6438_v28  ;;  %v6456_v28 = vld [vmem:[#allocation5 + $0x274] ss:$72 sps:$4 sm:$0xff]  }
 0x154   :  { %3658 = vmatprep.subr.bf16.mxu1 %v6441_v31 }
 0x155   :  { %v4022_v54 = vadd.f32 %v4021_v44, %v4020_v33  ;;  %v4034_v49 = vrot.slane %v4033_v46, 4  ;;  %v2982_v58 = vpop.f32.mrf.mxu0  ;;  %3549 = vmatmul.mubr.bf16.vlgmr.msra.gmra.mxu0 %v6947_v40 }
 0x156   :  { %v2911_v55 = vpop.f32.mrf.mxu1  ;;  %3478 = vmatmul.mubr.bf16.vlgmr.msra.gmra.mxu1 %v6944_v39  ;;  %3588 = vmatpush1.bf16.msra.mxu0 %v6436_v38  ;;  %v6454_v38 = vld [vmem:[#allocation5 + $0x270] ss:$72 sps:$4 sm:$0xff]  }
 0x157   :  { %v7084_v61 = vadd.f32 %v2982_v58, %v2911_v55  ;;  %3659 = vmatpush1.bf16.msra.mxu1 %v6439_v35  ;;  %v4023_v29 = vrot.slane %v4022_v54, 2  ;;  %v4035_v3 = vadd.f32 %v4034_v49, %v4033_v46  ;;  %v2984_v4 = vpop.f32.mrf.mxu0  ;;  %3589 = vmatprep.subr.bf16.mxu0 %v6444_v19  ;;  %v6457_v35 = vld [vmem:[#allocation5 + $0xb70] ss:$72 sps:$4 sm:$0xff]  }
 0x158   :  { %v2913_v57 = vpop.f32.mrf.mxu1  ;;  %3660 = vmatprep.subr.bf16.mxu1 %v6447_v59  ;;  %3487 = vmatprep.mubr.bf16.mxu1 %v6950_v45  ;;  %v6459_v45 = vld [vmem:[#allocation5 + $0xb74] ss:$72 sps:$4 sm:$0xff]   ;;  %v6462_v59 = vld [vmem:[#allocation5 + $0x1e4] ss:$72 sps:$4 sm:$0xff]  }
 0x159   :  { %v7086_v60 = vadd.f32 %v2984_v4, %v2913_v57  ;;  %3558 = vmatprep.mubr.bf16.mxu0 %v8950_v0  ;;  %v4024_v39 = vadd.f32 %v4023_v29, %v4022_v54  ;;  %v4036_v40 = vrot.slane %v4035_v3, 2  ;;  %v2986_v16 = vpop.f32.mrf.mxu0 }
 0x15a   :  { %v2915_v15 = vpop.f32.mrf.mxu1  ;;  %3590 = vmatpush1.bf16.msra.mxu0 %v6442_v62 }
 0x15b   :  { %v7090_v18 = vadd.f32 %v2986_v16, %v2915_v15  ;;  %3661 = vmatpush1.bf16.msra.mxu1 %v6445_v1  ;;  %v4025_v22 = vrot.slane %v4024_v39, 1  ;;  %v4037_v2 = vadd.f32 %v4036_v40, %v4035_v3  ;;  %v2988_v27 = vpop.f32.mrf.mxu0  ;;  %3591 = vmatprep.subr.bf16.mxu0 %v6450_v10  ;;  %v6471_v15 = vld [vmem:[#allocation5 + $0xa54] ss:$72 sps:$4 sm:$0xff]  }
 0x15c   :  { %v2917_v26 = vpop.f32.mrf.mxu1  ;;  %3662 = vmatprep.subr.bf16.mxu1 %v6453_v8  ;;  %v6460_v8 = vld [vmem:[#allocation5 + $0x1e0] ss:$72 sps:$4 sm:$0xff]  }
 0x15d   :  { %v4040_v31 = vadd.f32 %v7090_v18, %v7084_v61  ;;  %v4026_v7 = vadd.f32 %v4025_v22, %v4024_v39  ;;  %v4038_v12 = vrot.slane %v4037_v2, 1  ;;  %v2992_v34 = vpop.f32.mrf.mxu0  ;;  %3559 = vmatmul.mubr.bf16.gmra.mxu0 %v6957_v52 }
 0x15e   :  { %v2921_v33 = vpop.f32.mrf.mxu1  ;;  %3488 = vmatmul.mubr.bf16.gmra.mxu1 %v6954_v50  ;;  %3592 = vmatpush1.bf16.msra.mxu0 %v6448_v20  ;;  %v6465_v50 = vld [vmem:[#allocation5 + $0xae4] ss:$72 sps:$4 sm:$0xff]  }
 0x15f   :  { %v7096_v37 = vadd.f32 %v2992_v34, %v2921_v33  ;;  %3663 = vmatpush1.bf16.msra.mxu1 %v6451_v63  ;;  %v4248_v44 = vmul.f32 0.020408163, %v4026_v7  ;;  %v4039_v46 = vadd.f32 %v4038_v12, %v4037_v2  ;;  %v2994_v19 = vpop.f32.mrf.mxu0  ;;  %3593 = vmatprep.subr.bf16.mxu0 %v6456_v28  ;;  %v6466_v2 = vld [vmem:[#allocation5 + $0x150] ss:$72 sps:$4 sm:$0xff]   ;;  %v6475_v12 = vld [vmem:[#allocation5 + $0x9c0] ss:$72 sps:$4 sm:$0xff]  }
 0x160   :  { %v2923_v47 = vpop.f32.mrf.mxu1  ;;  %3664 = vmatprep.subr.bf16.mxu1 %v6459_v45  ;;  %3497 = vmatprep.mubr.bf16.mxu1 %v7038_v43  ;;  %v6477_v45 = vld [vmem:[#allocation5 + $0x9c4] ss:$72 sps:$4 sm:$0xff]  }
 0x161   :  { %v4041_v54 = vadd.f32 %v4040_v31, %v7096_v37  ;;  %v7099_v49 = vadd.f32 %v2994_v19, %v2923_v47  ;;  %3568 = vmatprep.mubr.bf16.mxu0 %v8950_v0  ;;  %v7104_v52 = vsub.f32 %v7008_v6, %v4248_v44  ;;  %v7107_v55 = vsub.f32 %v7019_v17, %v4248_v44  ;;  %v2996_v29 = vpop.f32.mrf.mxu0  ;;  %v6463_v17 = vld [vmem:[#allocation5 + $0xae0] ss:$72 sps:$4 sm:$0xff]   ;;  %v6480_v19 = vld [vmem:[#allocation5 + $0x34] ss:$72 sps:$4 sm:$0xff]  }
 0x162   :  { %v7110_v58 = vsub.f32 %v7030_v30, %v4248_v44  ;;  %v7113_v62 = vsub.f32 %v7043_v48, %v4248_v44  ;;  %v2925_v1 = vpop.f32.mrf.mxu1  ;;  %v7116_v3 = vsub.f32 %v7053_v53, %v4248_v44  ;;  %v7119_v57 = vsub.f32 %v7063_v13, %v4248_v44  ;;  %3594 = vmatpush1.bf16.msra.mxu0 %v6454_v38  ;;  %v6468_v13 = vld [vmem:[#allocation5 + $0x154] ss:$72 sps:$4 sm:$0xff]  }
 0x163   :  { %9088 = vst [vmem:[#allocation16_spill] sm:$0xff] %v7104_v52  ;;  %9089 = vst [vmem:[#allocation17_spill] sm:$0xff] %v7107_v55  ;;  %v7122_v6 = vsub.f32 %v7071_v25, %v4248_v44  ;;  %v7124_v4 = vmul.f32 0.020408163, %v4039_v46  ;;  %3665 = vmatpush1.bf16.msra.mxu1 %v6457_v35  ;;  %v7126_v30 = vadd.f32 %v2988_v27, %v2917_v26  ;;  %v2998_v10 = vpop.f32.mrf.mxu0  ;;  %3595 = vmatprep.subr.bf16.mxu0 %v6462_v59  ;;  %v6474_v26 = vld [vmem:[#allocation5 + $0xc4] ss:$72 sps:$4 sm:$0xff]  }
 0x164   :  { %9090 = vst [vmem:[#allocation18_spill] sm:$0xff] %v7110_v58  ;;  %9091 = vst [vmem:[#allocation19_spill] sm:$0xff] %v7113_v62  ;;  %v2927_v48 = vpop.f32.mrf.mxu1  ;;  %3666 = vmatprep.subr.bf16.mxu1 %v6465_v50  ;;  %v7149_v27 = vadd.f32 %v2996_v29, %v2925_v1  ;;  %v6472_v44 = vld [vmem:[#allocation5 + $0xc0] ss:$72 sps:$4 sm:$0xff]   ;;  %v6483_v46 = vld [vmem:[#allocation5 + $0x934] ss:$72 sps:$4 sm:$0xff]  }
 0x165   :  { %9092 = vst [vmem:[#allocation20_spill] sm:$0xff] %v7116_v3  ;;  %9093 = vst [vmem:[#allocation21_spill] sm:$0xff] %v7119_v57  ;;  %v7130_v53 = vsub.f32 %v7013_v11, %v7124_v4  ;;  %v7134_v25 = vsub.f32 %v7036_v42, %v7124_v4  ;;  %v3002_v40 = vpop.f32.mrf.mxu0  ;;  %v7139_v16 = vsub.f32 %v7058_v51, %v7124_v4  ;;  %3569 = vmatmul.mubr.bf16.gmra.mxu0 %v6963_v5  ;;  %v6469_v11 = vld [vmem:[#allocation5 + $0xa50] ss:$72 sps:$4 sm:$0xff]  }
 0x166   :  { %9094 = vst [vmem:[#allocation22_spill] sm:$0xff] %v7122_v6  ;;  %v2931_v39 = vpop.f32.mrf.mxu1  ;;  %3498 = vmatmul.mubr.bf16.gmra.mxu1 %v7049_v24  ;;  %v7143_v20 = vsub.f32 %v7076_v32, %v7124_v4  ;;  %v4053_v42 = vadd.f32 %v7126_v30, %v7086_v60  ;;  %3596 = vmatpush1.bf16.msra.mxu0 %v6460_v8 }
 0x167   :  { %9095 = vst [vmem:[#allocation23_spill] sm:$0xff] %v7130_v53  ;;  %9096 = vst [vmem:[#allocation24_spill] sm:$0xff] %v7134_v25  ;;  %3667 = vmatpush1.bf16.msra.mxu1 %v6463_v17  ;;  %v3004_v22 = vpop.f32.mrf.mxu0  ;;  %3597 = vmatprep.subr.bf16.mxu0 %v6468_v13  ;;  %v7151_v5 = vadd.f32 %v2998_v10, %v2927_v48  ;;  %v7153_v31 = vadd.f32 %v3002_v40, %v2931_v39  ;;  %v6481_v48 = vld [vmem:[#allocation5 + $0x930] ss:$72 sps:$4 sm:$0xff]   ;;  %v6489_v40 = vld [vmem:[#allocation5 + $0x42c] ss:$72 sps:$4 sm:$0xff]  }
 0x168   :  { %9097 = vst [vmem:[#allocation25_spill] sm:$0xff] %v7139_v16  ;;  %9098 = vst [vmem:[#allocation26_spill] sm:$0xff] %v7143_v20  ;;  %v2933_v63 = vpop.f32.mrf.mxu1  ;;  %v4054_v51 = vadd.f32 %v4053_v42, %v7099_v49  ;;  %3668 = vmatprep.subr.bf16.mxu1 %v6471_v15  ;;  %3507 = vmatprep.mubr.bf16.mxu1 %v6904_v36  ;;  %v4042_v33 = vadd.f32 %v4041_v54, %v7149_v27  ;;  %v6478_v39 = vld [vmem:[#allocation5 + $0x30] ss:$72 sps:$4 sm:$0xff]   ;;  %v6486_v42 = vld [vmem:[#allocation5 + $0x8a4] ss:$72 sps:$4 sm:$0xff]  }
 0x169   :  { %v3006_v32 = vpop.f32.mrf.mxu0  ;;  %v7155_v7 = vadd.f32 %v3004_v22, %v2933_v63  ;;  %3578 = vmatprep.mubr.bf16.mxu0 %v8950_v0 }
 0x16a   :  { %v2935_v28 = vpop.f32.mrf.mxu1  ;;  %3598 = vmatpush1.bf16.msra.mxu0 %v6466_v2  ;;  %v4055_v47 = vadd.f32 %v4054_v51, %v7151_v5  ;;  %v4043_v59 = vadd.f32 %v4042_v33, %v7153_v31  ;;  %v6487_v51 = vld [vmem:[#allocation5 + $0x428] ss:$72 sps:$4 sm:$0xff]  }
 0x16b   :  { %3669 = vmatpush1.bf16.msra.mxu1 %v6469_v11  ;;  %v7159_v34 = vadd.f32 %v3006_v32, %v2935_v28  ;;  %v3008_v35 = vpop.f32.mrf.mxu0  ;;  %3599 = vmatprep.subr.bf16.mxu0 %v6474_v26 }
 0x16c   :  { %v2937_v38 = vpop.f32.mrf.mxu1  ;;  %3670 = vmatprep.subr.bf16.mxu1 %v6477_v45  ;;  %v4056_v54 = vadd.f32 %v4055_v47, %v7155_v7  ;;  %v6484_v45 = vld [vmem:[#allocation5 + $0x8a0] ss:$72 sps:$4 sm:$0xff]  }
 0x16d   :  { %v7164_v50 = vadd.f32 %v3008_v35, %v2937_v38  ;;  %v3012_v29 = vpop.f32.mrf.mxu0  ;;  %3579 = vmatmul.mubr.bf16.gmra.mxu0 %v6969_v14  ;;  %v4044_v10 = vadd.f32 %v4043_v59, %v7159_v34  ;;  %v6492_v35 = vld [vmem:[#allocation5 + $0x814] ss:$72 sps:$4 sm:$0xff]  }
 0x16e   :  { %v2941_v1 = vpop.f32.mrf.mxu1  ;;  %3508 = vmatmul.mubr.bf16.gmra.mxu1 %v6908_v41  ;;  %3600 = vmatpush1.bf16.msra.mxu0 %v6472_v44  ;;  %v7181_v47 = vld [vmem:[#allocation2 + $0x8] ss:$12 sps:$4 sm:$0xff]  }
 0x16f   :  { %v7168_v17 = vadd.f32 %v3012_v29, %v2941_v1  ;;  %3671 = vmatpush1.bf16.msra.mxu1 %v6475_v12  ;;  %v3014_v13 = vpop.f32.mrf.mxu0  ;;  %3601 = vmatprep.subr.bf16.mxu0 %v6480_v19  ;;  %v4057_v14 = vadd.f32 %v4056_v54, %v7164_v50  ;;  %v6495_v12 = vld [vmem:[#allocation5 + $0x39c] ss:$72 sps:$4 sm:$0xff]   ;;  %v6493_v19 = vld [vmem:[#allocation5 + $0x398] ss:$72 sps:$4 sm:$0xff]   ;;  %v6501_v54 = vld [vmem:[#allocation5 + $0x30c] ss:$72 sps:$4 sm:$0xff]  }
 0x170   :  { %v2943_v8 = vpop.f32.mrf.mxu1  ;;  %3672 = vmatprep.subr.bf16.mxu1 %v6483_v46  ;;  %3690 = vmatprep.mubr.bf16.mxu1 %v8950_v0  ;;  %v6490_v29 = vld [vmem:[#allocation5 + $0x810] ss:$72 sps:$4 sm:$0xff]  }
 0x171   :  { %v4045_v15 = vsel %vm4018_vm0, %v7168_v17, 0.0  ;;  %v7174_v11 = vadd.f32 %v3014_v13, %v2943_v8  ;;  %v3016_v2 = vpop.f32.mrf.mxu0  ;;  %3619 = vmatprep.mubr.bf16.mxu0 %v6973_v9 }
 0x172   :  { %v4046_v63 = vadd.f32 %v4045_v15, %v4044_v10  ;;  %v2945_v22 = vpop.f32.mrf.mxu1  ;;  %3602 = vmatpush1.bf16.msra.mxu0 %v6478_v39  ;;  %v6498_v10 = vld [vmem:[#allocation5 + $0x784] ss:$72 sps:$4 sm:$0xff]   ;;  %v6504_v2 = vld [vmem:[#allocation5 + $0x6f4] ss:$72 sps:$4 sm:$0xff]  }
 0x173   :  { %v4058_v26 = vsel %vm4018_vm0, %v7174_v11, 0.0  ;;  %3673 = vmatpush1.bf16.msra.mxu1 %v6481_v48  ;;  %v3017_v38 = vpop.f32.mrf.mxu0  ;;  %3603 = vmatprep.subr.bf16.mxu0 %v6486_v42 }
 0x174   :  { %v4047_v28 = vrot.slane %v4046_v63, 4  ;;  %v4059_v32 = vadd.f32 %v4058_v26, %v4057_v14  ;;  %3729 = vmatprep.subr.bf16.mxu1 %v6489_v40  ;;  %v2946_v33 = vpop.f32.mrf.mxu1  ;;  %v6499_v40 = vld [vmem:[#allocation5 + $0x308] ss:$72 sps:$4 sm:$0xff]   ;;  %v6513_v38 = vld [vmem:[#allocation5 + $0x1ec] ss:$72 sps:$4 sm:$0xff]  }
 0x175   :  { %v6496_v14 = vld [vmem:[#allocation5 + $0x780] ss:$72 sps:$4 sm:$0xff]   ;;  %v6502_v33 = vld [vmem:[#allocation5 + $0x6f0] ss:$72 sps:$4 sm:$0xff]  }
 0x176   :  { %v4048_v44 = vadd.f32 %v4047_v28, %v4046_v63  ;;  %v4060_v46 = vrot.slane %v4059_v32, 4  ;;  %3691 = vmatmul.mubr.bf16.vlgmr.msra.gmra.mxu1 %v7181_v47  ;;  %v7184_v9 = vpop.f32.mrf.mxu1  ;;  %3604 = vmatpush2.bf16.msra.mxu0 %v6484_v45  ;;  %v6507_v63 = vld [vmem:[#allocation5 + $0x27c] ss:$72 sps:$4 sm:$0xff]   ;;  %v6505_v45 = vld [vmem:[#allocation5 + $0x278] ss:$72 sps:$4 sm:$0xff]  }
 0x177   :  { %3730 = vmatpush1.bf16.msra.mxu1 %v6487_v51  ;;  %3700 = vmatprep.mubr.bf16.mxu1 %v8950_v0 }
 0x178   :  { %v4049_v59 = vrot.slane %v4048_v44, 2  ;;  %v4061_v1 = vadd.f32 %v4060_v46, %v4059_v32  ;;  %3731 = vmatprep.subr.bf16.mxu1 %v6495_v12  ;;  %v7187_v48 = vpop.f32.mrf.mxu1  ;;  %3605 = vmatprep.subr.bf16.mxu0 %v6492_v35  ;;  %v7195_v32 = vld [vmem:[#allocation2 + $0x20] ss:$12 sps:$4 sm:$0xff]  }
 0x17a   :  { %v4050_v8 = vadd.f32 %v4049_v59, %v4048_v44  ;;  %v4062_v13 = vrot.slane %v4061_v1, 2  ;;  %v7189_v39 = vpop.f32.mrf.mxu1  ;;  %3606 = vmatpush2.bf16.msra.mxu0 %v6490_v29  ;;  %v6510_v44 = vld [vmem:[#allocation5 + $0x664] ss:$72 sps:$4 sm:$0xff]  }
 0x17b   :  { %3732 = vmatpush1.bf16.msra.mxu1 %v6493_v19  ;;  %3607 = vmatprep.subr.bf16.mxu0 %v6498_v10 }
 0x17c   :  { %v4051_v15 = vrot.slane %v4050_v8, 1  ;;  %v4063_v42 = vadd.f32 %v4062_v13, %v4061_v1  ;;  %3733 = vmatprep.subr.bf16.mxu1 %v6501_v54  ;;  %v7191_v22 = vpop.f32.mrf.mxu1 }
 0x17e   :  { %v4052_v26 = vadd.f32 %v4051_v15, %v4050_v8  ;;  %v4064_v51 = vrot.slane %v4063_v42, 1  ;;  %v7193_v28 = vpop.f32.mrf.mxu1  ;;  %3701 = vmatmul.mubr.bf16.gmra.mxu1 %v7195_v32  ;;  %3608 = vmatpush2.bf16.msra.mxu0 %v6496_v14 }
 0x17f   :  { %3734 = vmatpush1.bf16.msra.mxu1 %v6499_v40  ;;  %3710 = vmatprep.mubr.bf16.mxu1 %v8950_v0  ;;  %v6519_v40 = vld [vmem:[#allocation5 + $0x15c] ss:$72 sps:$4 sm:$0xff]  }
 0x180   :  { %v4250_v12 = vmul.f32 0.020408163, %v4052_v26  ;;  %3735 = vmatprep.subr.bf16.mxu1 %v6507_v63  ;;  %v7199_v35 = vpop.f32.mrf.mxu1  ;;  %3609 = vmatprep.subr.bf16.mxu0 %v6504_v2  ;;  %v4065_v59 = vadd.f32 %v4064_v51, %v4063_v42  ;;  %v7234_v63 = vld [vmem:[#allocation2 + $0x38] ss:$12 sps:$4 sm:$0xff]   ;;  %v6517_v26 = vld [vmem:[#allocation5 + $0x158] ss:$72 sps:$4 sm:$0xff]  }
 0x182   :  { %v7202_v46 = vsub.f32 %v7084_v61, %v4250_v12  ;;  %v7205_v19 = vsub.f32 %v7090_v18, %v4250_v12  ;;  %v7207_v1 = vpop.f32.mrf.mxu1  ;;  %v7210_v29 = vsub.f32 %v7096_v37, %v4250_v12  ;;  %v7213_v54 = vsub.f32 %v7149_v27, %v4250_v12  ;;  %v6511_v61 = vld [vmem:[#allocation5 + $0x1e8] ss:$72 sps:$4 sm:$0xff]   ;;  %3610 = vmatpush2.bf16.msra.mxu0 %v6502_v33 }
 0x183   :  { %v7216_v10 = vsub.f32 %v7153_v31, %v4250_v12  ;;  %v7219_v8 = vsub.f32 %v7159_v34, %v4250_v12  ;;  %3736 = vmatpush1.bf16.msra.mxu1 %v6505_v45  ;;  %v7222_v18 = vsub.f32 %v7168_v17, %v4250_v12  ;;  %v6508_v27 = vld [vmem:[#allocation5 + $0x660] ss:$72 sps:$4 sm:$0xff]   ;;  %3611 = vmatprep.subr.bf16.mxu0 %v6510_v44  ;;  %v6516_v34 = vld [vmem:[#allocation5 + $0x5d4] ss:$72 sps:$4 sm:$0xff]   ;;  %v4251_v17 = vmul.f32 0.020408163, %v4065_v59 }
 0x184   :  { %9099 = vst [vmem:[#allocation27_spill] sm:$0xff] %v7202_v46  ;;  %9100 = vst [vmem:[#allocation28_spill] sm:$0xff] %v7205_v19  ;;  %v4394_v13 = vmul.f32 %v7202_v46, %v7202_v46  ;;  %v4412_v37 = vmul.f32 %v7205_v19, %v7205_v19  ;;  %3737 = vmatprep.subr.bf16.mxu1 %v6513_v38  ;;  %v7228_v31 = vpop.f32.mrf.mxu1  ;;  %v4430_v15 = vmul.f32 %v7210_v29, %v7210_v29  ;;  %v6514_v33 = vld [vmem:[#allocation5 + $0x5d0] ss:$72 sps:$4 sm:$0xff]   ;;  %v6525_v38 = vld [vmem:[#allocation5 + $0xcc] ss:$72 sps:$4 sm:$0xff]  }
 0x185   :  { %9101 = vst [vmem:[#allocation29_spill] sm:$0xff] %v7210_v29  ;;  %9102 = vst [vmem:[#allocation30_spill] sm:$0xff] %v7213_v54  ;;  %v4448_v2 = vmul.f32 %v7213_v54, %v7213_v54  ;;  %v7241_v45 = vsub.f32 %v7086_v60, %v4251_v17  ;;  %v7244_v12 = vsub.f32 %v7126_v30, %v4251_v17  ;;  %v6522_v30 = vld [vmem:[#allocation5 + $0x544] ss:$72 sps:$4 sm:$0xff]   ;;  %v6528_v54 = vld [vmem:[#allocation5 + $0x4b4] ss:$72 sps:$4 sm:$0xff]  }
 0x186   :  { %9103 = vst [vmem:[#allocation31_spill] sm:$0xff] %v7216_v10  ;;  %9104 = vst [vmem:[#allocation32_spill] sm:$0xff] %v7219_v8  ;;  %v4544_v42 = vadd.f32 %v4412_v37, %v4394_v13  ;;  %v7232_v14 = vpop.f32.mrf.mxu1  ;;  %3711 = vmatmul.mubr.bf16.gmra.mxu1 %v7234_v63  ;;  %3612 = vmatpush2.bf16.msra.mxu0 %v6508_v27  ;;  %v4466_v59 = vmul.f32 %v7216_v10, %v7216_v10  ;;  %v6613_v46 = vld [vmem:[#allocation5 + $0xc10] ss:$72 sps:$4 sm:$0xff]  }
 0x187   :  { %9105 = vst [vmem:[#allocation33_spill] sm:$0xff] %v7222_v18  ;;  %3738 = vmatpush1.bf16.msra.mxu1 %v6511_v61  ;;  %3720 = vmatprep.mubr.bf16.mxu1 %v8950_v0  ;;  %9106 = vst [vmem:[#allocation34_spill] sm:$0xff] %v7241_v45  ;;  %v7251_v61 = vsub.f32 %v7099_v49, %v4251_v17  ;;  %v7254_v13 = vsub.f32 %v7151_v5, %v4251_v17  ;;  %v6531_v0 = vld [vmem:[#allocation5 + $0x3c] ss:$72 sps:$4 sm:$0xff]  }
 0x188   :  { %v4545_v51 = vadd.f32 %v4544_v42, %v4430_v15  ;;  %9107 = vst [vmem:[#allocation35_spill] sm:$0xff] %v7244_v12  ;;  %3739 = vmatprep.subr.bf16.mxu1 %v6519_v40  ;;  %v7246_v44 = vpop.f32.mrf.mxu1  ;;  %v7257_v60 = vsub.f32 %v7155_v7, %v4251_v17  ;;  %3613 = vmatprep.subr.bf16.mxu0 %v6516_v34  ;;  %v6523_v34 = vld [vmem:[#allocation5 + $0xc8] ss:$72 sps:$4 sm:$0xff]  }
 0x189   :  { %9108 = vst [vmem:[#allocation36_spill] sm:$0xff] %v7251_v61  ;;  %9109 = vst [vmem:[#allocation37_spill] sm:$0xff] %v7254_v13  ;;  %v7260_v27 = vsub.f32 %v7174_v11, %v4251_v17  ;;  %v4395_v40 = vmul.f32 %v7241_v45, %v7241_v45  ;;  %v4413_v15 = vmul.f32 %v7244_v12, %v7244_v12  ;;  %v7299_v45 = vld [vmem:[#allocation2] ss:$12 sps:$4 sm:$0xff]  }
 0x18a   :  { %9110 = vst [vmem:[#allocation38_spill] sm:$0xff] %v7257_v60  ;;  %v4546_v37 = vadd.f32 %v4545_v51, %v4448_v2  ;;  %v7266_v49 = vpop.f32.mrf.mxu1  ;;  %v4484_v5 = vmul.f32 %v7219_v8, %v7219_v8  ;;  %v4502_v7 = vmul.f32 %v7222_v18, %v7222_v18  ;;  %v4431_v11 = vmul.f32 %v7251_v61, %v7251_v61  ;;  %v6520_v51 = vld [vmem:[#allocation5 + $0x540] ss:$72 sps:$4 sm:$0xff]   ;;  %v7283_v18 = vld [vmem:[#allocation2 + $0x50] ss:$0 sps:$4 sm:$0x11]  }
 0x18b   :  { %9111 = vst [vmem:[#allocation39_spill] sm:$0xff] %v7260_v27  ;;  %3740 = vmatpush1.bf16.msra.mxu1 %v6517_v26  ;;  %v4557_v2 = vadd.f32 %v4413_v15, %v4395_v40  ;;  %3614 = vmatpush2.bf16.msra.mxu0 %v6514_v33  ;;  %v7277_v8 = vsub.f32 %v7164_v50, %v4251_v17  ;;  %v6526_v15 = vld [vmem:[#allocation5 + $0x4b0] ss:$72 sps:$4 sm:$0xff]  }
 0x18c   :  { %v4547_v42 = vadd.f32 %v4546_v37, %v4466_v59  ;;  %3741 = vmatprep.subr.bf16.mxu1 %v6525_v38  ;;  %v7274_v10 = vpop.f32.mrf.mxu1  ;;  %3615 = vmatprep.subr.bf16.mxu0 %v6522_v30  ;;  %v4449_v26 = vmul.f32 %v7254_v13, %v7254_v13  ;;  %v4549_v33 = vsel %vm4018_vm0, %v4502_v7, 0.0  ;;  %v6529_v38 = vld [vmem:[#allocation5 + $0x38] ss:$72 sps:$4 sm:$0xff]   ;;  %v7287_v30 = vld [vmem:[#allocation2 + $0x4] ss:$12 sps:$4 sm:$0xff]   ;;  %v4467_v17 = vmul.f32 %v7257_v60, %v7257_v60 }
 0x18d   :  { %9112 = vst [vmem:[#allocation40_spill] sm:$0xff] %v7277_v8  ;;  %v4558_v59 = vadd.f32 %v4557_v2, %v4431_v11  ;;  %v4503_v7 = vmul.f32 %v7260_v27, %v7260_v27  ;;  %v4485_v2 = vmul.f32 %v7277_v8, %v7277_v8  ;;  %v6532_v60 = vld [vmem:[#allocation5 + $0x8a8] ss:$72 sps:$4 sm:$0xff]  }
 0x18e   :  { %v4548_v29 = vadd.f32 %v4547_v42, %v4484_v5  ;;  %v7281_v37 = vpop.f32.mrf.mxu1  ;;  %3721 = vmatmul.mubr.bf16.gmra.mxu1 %v7283_v18  ;;  %v6534_v5 = vld [vmem:[#allocation5 + $0x8ac] ss:$72 sps:$4 sm:$0xff]  }
 0x18f   :  { %3742 = vmatpush1.bf16.msra.mxu1 %v6523_v34  ;;  %3761 = vmatprep.mubr.bf16.mxu1 %v7287_v30  ;;  %v4559_v40 = vadd.f32 %v4558_v59, %v4449_v26  ;;  %v6537_v34 = vld [vmem:[#allocation5 + $0xd2c] ss:$72 sps:$4 sm:$0xff]   ;;  %v6540_v59 = vld [vmem:[#allocation5 + $0x81c] ss:$72 sps:$4 sm:$0xff]   ;;  %v4562_v61 = vsel %vm4018_vm0, %v4503_v7, 0.0 }
 0x190   :  { %v4550_v50 = vadd.f32 %v4549_v33, %v4548_v29  ;;  %3616 = vmatpush2.bf16.msra.mxu0 %v6520_v51  ;;  %3743 = vmatprep.subr.bf16.mxu1 %v6531_v0  ;;  %v7292_v42 = vpop.f32.mrf.mxu1  ;;  %v6535_v0 = vld [vmem:[#allocation5 + $0xd28] ss:$72 sps:$4 sm:$0xff]  }
 0x191   :  { %3617 = vmatprep.subr.bf16.mxu0 %v6528_v54  ;;  %v4560_v29 = vadd.f32 %v4559_v40, %v4467_v17  ;;  %v6543_v54 = vld [vmem:[#allocation5 + $0xc9c] ss:$72 sps:$4 sm:$0xff]  }
 0x192   :  { %v4551_v11 = vrot.slane %v4550_v50, 4  ;;  %v3158_v33 = vpop.f32.mrf.mxu1 }
 0x193   :  { %3744 = vmatpush1.bf16.msra.mxu1 %v6529_v38  ;;  %v4561_v51 = vadd.f32 %v4560_v29, %v4485_v2  ;;  %v6538_v38 = vld [vmem:[#allocation5 + $0x818] ss:$72 sps:$4 sm:$0xff]  }
 0x194   :  { %v4552_v26 = vadd.f32 %v4551_v11, %v4550_v50  ;;  %3618 = vmatpush2.bf16.msra.mxu0 %v6526_v15  ;;  %3745 = vmatprep.subr.bf16.mxu1 %v6534_v5  ;;  %v3159_v13 = vpop.f32.mrf.mxu1  ;;  %v6541_v15 = vld [vmem:[#allocation5 + $0xc98] ss:$72 sps:$4 sm:$0xff]   ;;  %v7302_v5 = vld [vmem:[#allocation2 + $0x1c] ss:$12 sps:$4 sm:$0xff]  }
 0x195   :  { %3800 = vmatprep.subr.bf16.mxu0 %v6537_v34  ;;  %v4563_v12 = vadd.f32 %v4562_v61, %v4561_v51  ;;  %v3053_v19 = vpop.f32.mrf.mxu0  ;;  %v6546_v13 = vld [vmem:[#allocation5 + $0x78c] ss:$72 sps:$4 sm:$0xff]   ;;  %v6547_v51 = vld [vmem:[#allocation5 + $0xc08] ss:$72 sps:$4 sm:$0xff]  }
 0x196   :  { %v4553_v27 = vrot.slane %v4552_v26, 2  ;;  %v6549_v61 = vld [vmem:[#allocation5 + $0xc0c] ss:$72 sps:$4 sm:$0xff]   ;;  %v7306_v2 = vadd.f32 %v7184_v9, %v3053_v19 }
 0x197   :  { %3620 = vmatmul.mubr.bf16.vlgmr.msra.gmra.mxu0 %v7299_v45  ;;  %3746 = vmatpush2.bf16.msra.mxu1 %v6532_v60  ;;  %v4564_v17 = vrot.slane %v4563_v12, 4  ;;  %v3055_v40 = vpop.f32.mrf.mxu0 }
 0x198   :  { %v4554_v50 = vadd.f32 %v4553_v27, %v4552_v26  ;;  %3801 = vmatpush1.bf16.msra.mxu0 %v6535_v0  ;;  %3747 = vmatprep.subr.bf16.mxu1 %v6540_v59  ;;  %v6544_v27 = vld [vmem:[#allocation5 + $0x788] ss:$72 sps:$4 sm:$0xff]   ;;  %v6552_v0 = vld [vmem:[#allocation5 + $0x6fc] ss:$72 sps:$4 sm:$0xff]   ;;  %v7312_v59 = vadd.f32 %v7187_v48, %v3055_v40  ;;  %v6550_v48 = vld [vmem:[#allocation5 + $0x6f8] ss:$72 sps:$4 sm:$0xff]  }
 0x199   :  { %3802 = vmatprep.subr.bf16.mxu0 %v6543_v54  ;;  %3629 = vmatprep.mubr.bf16.mxu0 %v7302_v5  ;;  %v4565_v34 = vadd.f32 %v4564_v17, %v4563_v12  ;;  %v3057_v11 = vpop.f32.mrf.mxu0 }
 0x19a   :  { %v4555_v7 = vrot.slane %v4554_v50, 1  ;;  %v7309_v60 = vadd.f32 %v7189_v39, %v3057_v11  ;;  %v6555_v39 = vld [vmem:[#allocation5 + $0xb7c] ss:$72 sps:$4 sm:$0xff]  }
 0x19b   :  { %3748 = vmatpush2.bf16.msra.mxu1 %v6538_v38  ;;  %v4566_v33 = vrot.slane %v4565_v34, 2  ;;  %v3059_v26 = vpop.f32.mrf.mxu0 }
 0x19c   :  { %v4556_v29 = vadd.f32 %v4555_v7, %v4554_v50  ;;  %3803 = vmatpush1.bf16.msra.mxu0 %v6541_v15  ;;  %3749 = vmatprep.subr.bf16.mxu1 %v6546_v13  ;;  %v4066_v12 = vadd.f32 %v7309_v60, %v7306_v2  ;;  %v7317_v9 = vadd.f32 %v7191_v22, %v3059_v26  ;;  %v7324_v15 = vld [vmem:[#allocation2 + $0x18] ss:$12 sps:$4 sm:$0xff]   ;;  %v6553_v13 = vld [vmem:[#allocation5 + $0xb78] ss:$72 sps:$4 sm:$0xff]  }
 0x19d   :  { %3804 = vmatprep.subr.bf16.mxu0 %v6549_v61  ;;  %v4567_v19 = vadd.f32 %v4566_v33, %v4565_v34  ;;  %v3063_v54 = vpop.f32.mrf.mxu0  ;;  %v6558_v61 = vld [vmem:[#allocation5 + $0x66c] ss:$72 sps:$4 sm:$0xff]  }
 0x19e   :  { %v4754_v38 = vmul.f32 0.020408163, %v4556_v29  ;;  %v4079_v50 = vadd.f32 %v7317_v9, %v7312_v59  ;;  %v7322_v17 = vadd.f32 %v7193_v28, %v3063_v54  ;;  %v6561_v28 = vld [vmem:[#allocation5 + $0xaec] ss:$72 sps:$4 sm:$0xff]   ;;  %v6564_v54 = vld [vmem:[#allocation5 + $0x5dc] ss:$72 sps:$4 sm:$0xff]  }
 0x19f   :  { %3630 = vmatmul.mubr.bf16.gmra.mxu0 %v7324_v15  ;;  %3750 = vmatpush2.bf16.msra.mxu1 %v6544_v27  ;;  %v4568_v40 = vrot.slane %v4567_v19, 1  ;;  %v3065_v22 = vpop.f32.mrf.mxu0 }
 0x1a0   :  { %3805 = vmatpush1.bf16.msra.mxu0 %v6547_v51  ;;  %3751 = vmatprep.subr.bf16.mxu1 %v6552_v0  ;;  %v4067_v7 = vadd.f32 %v4066_v12, %v7322_v17  ;;  %v7329_v34 = vadd.f32 %v7199_v35, %v3065_v22  ;;  %v4772_v33 = vadd.f32 0.001, %v4754_v38  ;;  %v6556_v51 = vld [vmem:[#allocation5 + $0x668] ss:$72 sps:$4 sm:$0xff]  }
 0x1a1   :  { %3806 = vmatprep.subr.bf16.mxu0 %v6555_v39  ;;  %3639 = vmatprep.mubr.bf16.mxu0 %v7038_v43  ;;  %v4569_v11 = vadd.f32 %v4568_v40, %v4567_v19  ;;  %v3067_v29 = vpop.f32.mrf.mxu0  ;;  %v6559_v35 = vld [vmem:[#allocation5 + $0xae8] ss:$72 sps:$4 sm:$0xff]   ;;  %v6567_v19 = vld [vmem:[#allocation5 + $0xa5c] ss:$72 sps:$4 sm:$0xff]   ;;  %v6562_v40 = vld [vmem:[#allocation5 + $0x5d8] ss:$72 sps:$4 sm:$0xff]  }
 0x1a2   :  { %v4080_v27 = vadd.f32 %v4079_v50, %v7329_v34  ;;  %v7334_v26 = vadd.f32 %v7207_v1, %v3067_v29  ;;  %6652 = vrsqrt.f32 %v4772_v33  ;;  %v6568_v29 = vld [vmem:[#allocation5 + $0x548] ss:$72 sps:$4 sm:$0xff]  }
 0x1a3   :  { %3752 = vmatpush2.bf16.msra.mxu1 %v6550_v48  ;;  %v4755_v0 = vmul.f32 0.020408163, %v4569_v11  ;;  %v3069_v12 = vpop.f32.mrf.mxu0 }
 0x1a4   :  { %3807 = vmatpush1.bf16.msra.mxu0 %v6553_v13  ;;  %3753 = vmatprep.subr.bf16.mxu1 %v6558_v61  ;;  %v4068_v39 = vadd.f32 %v4067_v7, %v7334_v26  ;;  %v7338_v43 = vadd.f32 %v7228_v31, %v3069_v12  ;;  %v6565_v31 = vld [vmem:[#allocation5 + $0xa58] ss:$72 sps:$4 sm:$0xff]   ;;  %v6570_v13 = vld [vmem:[#allocation5 + $0x54c] ss:$72 sps:$4 sm:$0xff]   ;;  %v6579_v12 = vld [vmem:[#allocation5 + $0x93c] ss:$72 sps:$4 sm:$0xff]  }
 0x1a5   :  { %3808 = vmatprep.subr.bf16.mxu0 %v6561_v28  ;;  %v4773_v38 = vadd.f32 0.001, %v4755_v0  ;;  %v3073_v50 = vpop.f32.mrf.mxu0 }
 0x1a6   :  { %v4081_v1 = vadd.f32 %v4080_v27, %v7338_v43  ;;  %v7342_v48 = vadd.f32 %v7232_v14, %v3073_v50  ;;  %v6573_v14 = vld [vmem:[#allocation5 + $0x9cc] ss:$72 sps:$4 sm:$0xff]   ;;  %v6571_v27 = vld [vmem:[#allocation5 + $0x9c8] ss:$72 sps:$4 sm:$0xff]  }
 0x1a7   :  { %3640 = vmatmul.mubr.bf16.gmra.mxu0 %v7049_v24  ;;  %3754 = vmatpush2.bf16.msra.mxu1 %v6556_v51  ;;  %6654 = vrsqrt.f32 %v4773_v38  ;;  %v3075_v22 = vpop.f32.mrf.mxu0  ;;  %v6576_v51 = vld [vmem:[#allocation5 + $0x4bc] ss:$72 sps:$4 sm:$0xff]   ;;  %v6577_v38 = vld [vmem:[#allocation5 + $0x938] ss:$72 sps:$4 sm:$0xff]  }
 0x1a8   :  { %3809 = vmatpush1.bf16.msra.mxu0 %v6559_v35  ;;  %3755 = vmatprep.subr.bf16.mxu1 %v6564_v54  ;;  %v4069_v61 = vadd.f32 %v4068_v39, %v7342_v48  ;;  %v7347_v7 = vadd.f32 %v7246_v44, %v3075_v22  ;;  %v6574_v39 = vld [vmem:[#allocation5 + $0x4b8] ss:$72 sps:$4 sm:$0xff]   ;;  %v6603_v50 = vld [vmem:[#allocation5 + $0xd34] ss:$72 sps:$4 sm:$0xff]  }
 0x1a9   :  { %3810 = vmatprep.subr.bf16.mxu0 %v6567_v19  ;;  %3649 = vmatprep.mubr.bf16.mxu0 %v6904_v36  ;;  %v3077_v28 = vpop.f32.mrf.mxu0 }
 0x1aa   :  { %v4082_v24 = vadd.f32 %v4081_v1, %v7347_v7  ;;  %v7352_v11 = vadd.f32 %v7266_v49, %v3077_v28 }
 0x1ab   :  { %3756 = vmatpush2.bf16.msra.mxu1 %v6562_v40  ;;  %v3079_v33 = vpop.f32.mrf.mxu0  ;;  %v9113_v40 = vmov 0  }
 0x1ac   :  { %3811 = vmatpush1.bf16.msra.mxu0 %v6565_v31  ;;  %3757 = vmatprep.subr.bf16.mxu1 %v6570_v13  ;;  %v4070_v44 = vadd.f32 %v4069_v61, %v7352_v11  ;;  %v7356_v0 = vadd.f32 %v7274_v10, %v3079_v33  ;;  %v4392_v33 = vmul.f32 %v7104_v52, %v7104_v52 }
 0x1ad   :  { %3812 = vmatprep.subr.bf16.mxu0 %v6573_v14  ;;  %v3083_v35 = vpop.f32.mrf.mxu0 }
 0x1ae   :  { %v4083_v54 = vadd.f32 %v4082_v24, %v7356_v0  ;;  %v7360_v49 = vadd.f32 %v7281_v37, %v3083_v35  ;;  %v6582_v37 = vld [vmem:[#allocation5 + $0x434] ss:$72 sps:$4 sm:$0xff]  }
 0x1af   :  { %3650 = vmatmul.mubr.bf16.gmra.mxu0 %v6908_v41  ;;  %3758 = vmatpush2.bf16.msra.mxu1 %v6568_v29  ;;  %v3085_v19 = vpop.f32.mrf.mxu0  ;;  %v7371_v61 = vpop.eup %6652  ;;  %v6580_v29 = vld [vmem:[#allocation5 + $0x430] ss:$72 sps:$4 sm:$0xff]  }
 0x1b0   :  { %3813 = vmatpush1.bf16.msra.mxu0 %v6571_v27  ;;  %3759 = vmatprep.subr.bf16.mxu1 %v6576_v51  ;;  %v4071_v10 = vsel %vm4018_vm0, %v7360_v49, 0.0  ;;  %v7366_v1 = vadd.f32 %v7292_v42, %v3085_v19  ;;  %9114 = vst [vmem:[#allocation41_spill] sm:$0xff] %v7371_v61  ;;  %v6585_v27 = vld [vmem:[#allocation5 + $0x3a4] ss:$72 sps:$4 sm:$0xff]   ;;  %v6601_v51 = vld [vmem:[#allocation5 + $0xd30] ss:$72 sps:$4 sm:$0xff]  }
 0x1b1   :  { %3814 = vmatprep.subr.bf16.mxu0 %v6579_v12  ;;  %3832 = vmatprep.mubr.bf16.mxu0 %v9113_v40  ;;  %v4072_v22 = vadd.f32 %v4071_v10, %v4070_v44  ;;  %v3087_v31 = vpop.f32.mrf.mxu0  ;;  %v4410_v44 = vmul.f32 %v7107_v55, %v7107_v55 }
 0x1b2   :  { %v4084_v13 = vsel %vm4018_vm0, %v7366_v1, 0.0 }
 0x1b3   :  { %3760 = vmatpush2.bf16.msra.mxu1 %v6574_v39  ;;  %v4073_v14 = vrot.slane %v4072_v22, 4  ;;  %v4085_v28 = vadd.f32 %v4084_v13, %v4083_v54  ;;  %v3088_v24 = vpop.f32.mrf.mxu0  ;;  %v4518_v12 = vadd.f32 %v4410_v44, %v4392_v33 }
 0x1b4   :  { %3815 = vmatpush1.bf16.msra.mxu0 %v6577_v38  ;;  %3942 = vmatprep.subr.bf16.mxu1 %v6603_v50  ;;  %v7373_v42 = vpop.eup %6654  ;;  %v6609_v38 = vld [vmem:[#allocation5 + $0xca4] ss:$72 sps:$4 sm:$0xff]   ;;  %v7386_v50 = vsub.f32 %v7026_v23, %v7124_v4  ;;  %v6607_v24 = vld [vmem:[#allocation5 + $0xca0] ss:$72 sps:$4 sm:$0xff]   ;;  %v6615_v23 = vld [vmem:[#allocation5 + $0xc14] ss:$72 sps:$4 sm:$0xff]  }
 0x1b5   :  { %9115 = vst [vmem:[#allocation42_spill] sm:$0xff] %v7373_v42  ;;  %3871 = vmatprep.subr.bf16.mxu0 %v6582_v37  ;;  %v4074_v35 = vadd.f32 %v4073_v14, %v4072_v22  ;;  %v4086_v54 = vrot.slane %v4085_v28, 4  ;;  %v3266_v19 = vpop.f32.mrf.mxu0  ;;  %v6583_v22 = vld [vmem:[#allocation5 + $0x3a0] ss:$72 sps:$4 sm:$0xff]   ;;  %v6588_v14 = vld [vmem:[#allocation5 + $0x314] ss:$72 sps:$4 sm:$0xff]  }
 0x1b6   :  { %v3195_v39 = vpop.f32.mrf.mxu1  ;;  %3762 = vmatmul.mubr.bf16.vlgmr.msra.gmra.mxu1 %v7299_v45  ;;  %9116 = vst [vmem:[#allocation43_spill] sm:$0xff] %v7386_v50 }
 0x1b7   :  { %3833 = vmatmul.mubr.bf16.vlgmr.msra.gmra.mxu0 %v7181_v47  ;;  %3771 = vmatprep.mubr.bf16.mxu1 %v7302_v5  ;;  %v4075_v10 = vrot.slane %v4074_v35, 2  ;;  %v4087_v37 = vadd.f32 %v4086_v54, %v4085_v28  ;;  %v3268_v13 = vpop.f32.mrf.mxu0  ;;  %v4428_v28 = vmul.f32 %v7110_v58, %v7110_v58  ;;  %v6591_v58 = vld [vmem:[#allocation5 + $0x284] ss:$72 sps:$4 sm:$0xff]  }
 0x1b8   :  { %3872 = vmatpush1.bf16.msra.mxu0 %v6580_v29  ;;  %v3197_v31 = vpop.f32.mrf.mxu1  ;;  %3842 = vmatprep.mubr.bf16.mxu0 %v9113_v40  ;;  %v7393_v29 = vsub.f32 %v7047_v56, %v7124_v4  ;;  %v7403_v56 = vmul.f32 %v7113_v62, %v7113_v62  ;;  %v6589_v62 = vld [vmem:[#allocation5 + $0x280] ss:$72 sps:$4 sm:$0xff]  }
 0x1b9   :  { %3873 = vmatprep.subr.bf16.mxu0 %v6585_v27  ;;  %3943 = vmatpush1.bf16.msra.mxu1 %v6601_v51  ;;  %v4076_v47 = vadd.f32 %v4075_v10, %v4074_v35  ;;  %v4088_v55 = vrot.slane %v4087_v37, 2  ;;  %v3270_v8 = vpop.f32.mrf.mxu0  ;;  %v4393_v27 = vmul.f32 %v7130_v53, %v7130_v53  ;;  %v4411_v51 = vmul.f32 %v7386_v50, %v7386_v50 }
 0x1ba   :  { %v3199_v52 = vpop.f32.mrf.mxu1  ;;  %3944 = vmatprep.subr.bf16.mxu1 %v6609_v38  ;;  %9117 = vst [vmem:[#allocation44_spill] sm:$0xff] %v7393_v29  ;;  %v6586_v38 = vld [vmem:[#allocation5 + $0x310] ss:$72 sps:$4 sm:$0xff]   ;;  %v7405_v53 = vadd.f32 %v4518_v12, %v4428_v28  ;;  %v7417_v12 = vld [vmem:[#allocation2 + $0x34] ss:$12 sps:$4 sm:$0xff]  }
 0x1bb   :  { %v4077_v33 = vrot.slane %v4076_v47, 1  ;;  %v4089_v44 = vadd.f32 %v4088_v55, %v4087_v37  ;;  %v3272_v54 = vpop.f32.mrf.mxu0  ;;  %v7399_v10 = vadd.f32 %v3270_v8, %v3199_v52  ;;  %v6621_v37 = vld [vmem:[#allocation5 + $0xb84] ss:$72 sps:$4 sm:$0xff]   ;;  %v4429_v52 = vmul.f32 %v7134_v25, %v7134_v25 }
 0x1bc   :  { %3874 = vmatpush1.bf16.msra.mxu0 %v6583_v22  ;;  %v3201_v35 = vpop.f32.mrf.mxu1  ;;  %v7412_v8 = vmul.f32 %v7393_v29, %v7393_v29  ;;  %v7414_v22 = vadd.f32 %v3266_v19, %v3195_v39  ;;  %v7423_v29 = vadd.f32 %v3268_v13, %v3197_v31  ;;  %v6594_v19 = vld [vmem:[#allocation5 + $0x1f4] ss:$72 sps:$4 sm:$0xff]  }
 0x1bd   :  { %3875 = vmatprep.subr.bf16.mxu0 %v6588_v14  ;;  %3945 = vmatpush1.bf16.msra.mxu1 %v6607_v24  ;;  %v4078_v42 = vadd.f32 %v4077_v33, %v4076_v47  ;;  %v4090_v50 = vrot.slane %v4089_v44, 1  ;;  %v3276_v55 = vpop.f32.mrf.mxu0  ;;  %v4531_v14 = vadd.f32 %v4411_v51, %v4393_v27 }
 0x1be   :  { %v3205_v61 = vpop.f32.mrf.mxu1  ;;  %3772 = vmatmul.mubr.bf16.gmra.mxu1 %v7324_v15  ;;  %3946 = vmatprep.subr.bf16.mxu1 %v6615_v23  ;;  %v7420_v23 = vadd.f32 %v3272_v54, %v3201_v35 }
 0x1bf   :  { %3843 = vmatmul.mubr.bf16.gmra.mxu0 %v7195_v32  ;;  %3781 = vmatprep.mubr.bf16.mxu1 %v7417_v12  ;;  %v4252_v24 = vmul.f32 0.020408163, %v4078_v42  ;;  %v4091_v47 = vadd.f32 %v4090_v50, %v4089_v44  ;;  %v3278_v33 = vpop.f32.mrf.mxu0  ;;  %v4092_v32 = vadd.f32 %v7399_v10, %v7414_v22  ;;  %v7427_v39 = vadd.f32 %v3276_v55, %v3205_v61 }
 0x1c0   :  { %3876 = vmatpush1.bf16.msra.mxu0 %v6586_v38  ;;  %v3207_v28 = vpop.f32.mrf.mxu1  ;;  %3852 = vmatprep.mubr.bf16.mxu0 %v9113_v40  ;;  %v4105_v44 = vadd.f32 %v7420_v23, %v7423_v29 }
 0x1c1   :  { %3877 = vmatprep.subr.bf16.mxu0 %v6591_v58  ;;  %3947 = vmatpush1.bf16.msra.mxu1 %v6613_v46  ;;  %v7430_v42 = vsub.f32 %v7306_v2, %v4252_v24  ;;  %v7433_v50 = vsub.f32 %v7309_v60, %v4252_v24  ;;  %v7436_v27 = vsub.f32 %v7322_v17, %v4252_v24  ;;  %v3280_v51 = vpop.f32.mrf.mxu0  ;;  %v4253_v2 = vmul.f32 0.020408163, %v4091_v47 }
 0x1c2   :  { %v7439_v31 = vsub.f32 %v7334_v26, %v4252_v24  ;;  %v3209_v13 = vpop.f32.mrf.mxu1  ;;  %3948 = vmatprep.subr.bf16.mxu1 %v6621_v37  ;;  %v7442_v61 = vsub.f32 %v7342_v48, %v4252_v24  ;;  %v7445_v58 = vsub.f32 %v7352_v11, %v4252_v24  ;;  %v7448_v46 = vsub.f32 %v7360_v49, %v4252_v24  ;;  %v6592_v11 = vld [vmem:[#allocation5 + $0x1f0] ss:$72 sps:$4 sm:$0xff]   ;;  %v6597_v37 = vld [vmem:[#allocation5 + $0x164] ss:$72 sps:$4 sm:$0xff]  }
 0x1c3   :  { %9118 = vst [vmem:[#allocation45_spill] sm:$0xff] %v7430_v42  ;;  %9119 = vst [vmem:[#allocation46_spill] sm:$0xff] %v7433_v50  ;;  %v7450_v60 = vadd.f32 %v4531_v14, %v4429_v52  ;;  %v4396_v17 = vmul.f32 %v7430_v42, %v7430_v42  ;;  %v4414_v26 = vmul.f32 %v7433_v50, %v7433_v50  ;;  %v3282_v35 = vpop.f32.mrf.mxu0 }
 0x1c4   :  { %9120 = vst [vmem:[#allocation47_spill] sm:$0xff] %v7436_v27  ;;  %9121 = vst [vmem:[#allocation48_spill] sm:$0xff] %v7439_v31  ;;  %3878 = vmatpush1.bf16.msra.mxu0 %v6589_v62  ;;  %v3211_v48 = vpop.f32.mrf.mxu1  ;;  %v4432_v49 = vmul.f32 %v7436_v27, %v7436_v27  ;;  %v7461_v54 = vsub.f32 %v7312_v59, %v4253_v2  ;;  %v4093_v38 = vadd.f32 %v4092_v32, %v7427_v39  ;;  %v7475_v59 = vld [vmem:[#allocation2 + $0x30] ss:$12 sps:$4 sm:$0xff]  }
 0x1c5   :  { %9122 = vst [vmem:[#allocation49_spill] sm:$0xff] %v7442_v61  ;;  %9123 = vst [vmem:[#allocation50_spill] sm:$0xff] %v7445_v58  ;;  %v7464_v55 = vadd.f32 %v3278_v33, %v3207_v28  ;;  %3879 = vmatprep.subr.bf16.mxu0 %v6594_v19  ;;  %v4570_v52 = vadd.f32 %v4414_v26, %v4396_v17  ;;  %v7467_v14 = vsub.f32 %v7317_v9, %v4253_v2  ;;  %v3286_v25 = vpop.f32.mrf.mxu0 }
 0x1c6   :  { %9124 = vst [vmem:[#allocation51_spill] sm:$0xff] %v7448_v46  ;;  %9125 = vst [vmem:[#allocation52_spill] sm:$0xff] %v7461_v54  ;;  %v7470_v62 = vsub.f32 %v7329_v34, %v4253_v2  ;;  %v7473_v24 = vsub.f32 %v7338_v43, %v4253_v2  ;;  %v3215_v47 = vpop.f32.mrf.mxu1  ;;  %3782 = vmatmul.mubr.bf16.gmra.mxu1 %v7475_v59  ;;  %v7479_v28 = vsub.f32 %v7347_v7, %v4253_v2  ;;  %v6619_v34 = vld [vmem:[#allocation5 + $0xb80] ss:$72 sps:$4 sm:$0xff]  }
 0x1c7   :  { %9126 = vst [vmem:[#allocation53_spill] sm:$0xff] %v7467_v14  ;;  %v7482_v33 = vsub.f32 %v7356_v0, %v4253_v2  ;;  %v7485_v9 = vsub.f32 %v7366_v1, %v4253_v2  ;;  %3853 = vmatmul.mubr.bf16.gmra.mxu0 %v7234_v63  ;;  %3791 = vmatprep.mubr.bf16.mxu1 %v6904_v36  ;;  %v3288_v17 = vpop.f32.mrf.mxu0  ;;  %v6595_v1 = vld [vmem:[#allocation5 + $0x160] ss:$72 sps:$4 sm:$0xff]   ;;  %v6633_v36 = vld [vmem:[#allocation5 + $0xa64] ss:$72 sps:$4 sm:$0xff]  }
 0x1c8   :  { %9127 = vst [vmem:[#allocation54_spill] sm:$0xff] %v7470_v62  ;;  %9128 = vst [vmem:[#allocation55_spill] sm:$0xff] %v7473_v24  ;;  %v4450_v43 = vmul.f32 %v7439_v31, %v7439_v31  ;;  %v4571_v32 = vadd.f32 %v4570_v52, %v4432_v49  ;;  %v4397_v19 = vmul.f32 %v7461_v54, %v7461_v54  ;;  %3880 = vmatpush1.bf16.msra.mxu0 %v6592_v11  ;;  %v3217_v0 = vpop.f32.mrf.mxu1  ;;  %v6600_v52 = vld [vmem:[#allocation5 + $0xd4] ss:$72 sps:$4 sm:$0xff]  }
 0x1c9   :  { %v4415_v7 = vmul.f32 %v7467_v14, %v7467_v14  ;;  %v4468_v63 = vmul.f32 %v7442_v61, %v7442_v61  ;;  %v4486_v2 = vmul.f32 %v7445_v58, %v7445_v58  ;;  %v4504_v26 = vmul.f32 %v7448_v46, %v7448_v46  ;;  %3881 = vmatprep.subr.bf16.mxu0 %v6597_v37  ;;  %v6627_v31 = vld [vmem:[#allocation5 + $0xaf4] ss:$72 sps:$4 sm:$0xff]   ;;  %v3290_v54 = vpop.f32.mrf.mxu0 }
 0x1ca   :  { %v4433_v49 = vmul.f32 %v7470_v62, %v7470_v62  ;;  %v4572_v27 = vadd.f32 %v4571_v32, %v4450_v43  ;;  %v4451_v11 = vmul.f32 %v7473_v24, %v7473_v24  ;;  %v7505_v50 = vadd.f32 %v3280_v51, %v3209_v13  ;;  %v3219_v61 = vpop.f32.mrf.mxu1  ;;  %3862 = vmatprep.mubr.bf16.mxu0 %v9113_v40  ;;  %v6625_v43 = vld [vmem:[#allocation5 + $0xaf0] ss:$72 sps:$4 sm:$0xff]  }
 0x1cb   :  { %v4583_v14 = vadd.f32 %v4415_v7, %v4397_v19  ;;  %v4106_v58 = vadd.f32 %v4105_v44, %v7464_v55  ;;  %v7509_v46 = vadd.f32 %v3282_v35, %v3211_v48  ;;  %v7511_v42 = vadd.f32 %v3286_v25, %v3215_v47  ;;  %3949 = vmatpush1.bf16.msra.mxu1 %v6619_v34  ;;  %v3292_v7 = vpop.f32.mrf.mxu0  ;;  %v6598_v24 = vld [vmem:[#allocation5 + $0xd0] ss:$72 sps:$4 sm:$0xff]  }
 0x1cc   :  { %v7513_v37 = vadd.f32 %v3288_v17, %v3217_v0  ;;  %v4573_v32 = vadd.f32 %v4572_v27, %v4468_v63  ;;  %v4094_v19 = vadd.f32 %v4093_v38, %v7505_v50  ;;  %v7516_v13 = vadd.f32 %v3290_v54, %v3219_v61  ;;  %3882 = vmatpush1.bf16.msra.mxu0 %v6595_v1  ;;  %v3221_v51 = vpop.f32.mrf.mxu1  ;;  %v6606_v27 = vld [vmem:[#allocation5 + $0x44] ss:$72 sps:$4 sm:$0xff]  }
 0x1cd   :  { %v4584_v62 = vadd.f32 %v4583_v14, %v4433_v49  ;;  %v4469_v44 = vmul.f32 %v7479_v28, %v7479_v28  ;;  %v4487_v25 = vmul.f32 %v7482_v33, %v7482_v33  ;;  %v4107_v48 = vadd.f32 %v4106_v58, %v7509_v46  ;;  %3883 = vmatprep.subr.bf16.mxu0 %v6600_v52  ;;  %v3296_v47 = vpop.f32.mrf.mxu0  ;;  %v6604_v52 = vld [vmem:[#allocation5 + $0x40] ss:$72 sps:$4 sm:$0xff]  }
 0x1ce   :  { %3950 = vmatprep.subr.bf16.mxu1 %v6627_v31  ;;  %v4574_v35 = vadd.f32 %v4573_v32, %v4486_v2  ;;  %v4095_v61 = vadd.f32 %v4094_v19, %v7511_v42  ;;  %v7524_v54 = vadd.f32 %v3292_v7, %v3221_v51  ;;  %v3225_v14 = vpop.f32.mrf.mxu1  ;;  %3792 = vmatmul.mubr.bf16.gmra.mxu1 %v6908_v41  ;;  %v4575_v34 = vsel %vm4018_vm0, %v4504_v26, 0.0  ;;  %v6631_v31 = vld [vmem:[#allocation5 + $0xa60] ss:$72 sps:$4 sm:$0xff]   ;;  %v6639_v26 = vld [vmem:[#allocation5 + $0x9d4] ss:$72 sps:$4 sm:$0xff]  }
 0x1cf   :  { %v4585_v38 = vadd.f32 %v4584_v62, %v4451_v11  ;;  %v4505_v0 = vmul.f32 %v7485_v9, %v7485_v9  ;;  %v4108_v58 = vadd.f32 %v4107_v48, %v7513_v37  ;;  %v7531_v17 = vadd.f32 %v3296_v47, %v3225_v14  ;;  %3863 = vmatmul.mubr.bf16.gmra.mxu0 %v7283_v18  ;;  %v3298_v49 = vpop.f32.mrf.mxu0  ;;  %v6612_v19 = vld [vmem:[#allocation5 + $0x8b4] ss:$72 sps:$4 sm:$0xff]   ;;  %v6610_v14 = vld [vmem:[#allocation5 + $0x8b0] ss:$72 sps:$4 sm:$0xff]  }
 0x1d0   :  { %3951 = vmatpush1.bf16.msra.mxu1 %v6625_v43  ;;  %v4576_v62 = vadd.f32 %v4575_v34, %v4574_v35  ;;  %v4096_v63 = vadd.f32 %v4095_v61, %v7516_v13  ;;  %3884 = vmatpush1.bf16.msra.mxu0 %v6598_v24  ;;  %v3227_v2 = vpop.f32.mrf.mxu1  ;;  %v7537_v11 = vsub.f32 %v7067_v21, %v7124_v4 }
 0x1d1   :  { %v4586_v1 = vadd.f32 %v4585_v38, %v4469_v44  ;;  %3952 = vmatprep.subr.bf16.mxu1 %v6633_v36  ;;  %v4533_v32 = vadd.f32 %v7450_v60, %v7412_v8  ;;  %v4097_v18 = vsel %vm4018_vm0, %v7531_v17, 0.0  ;;  %v7543_v43 = vadd.f32 %v3298_v49, %v3227_v2  ;;  %3885 = vmatprep.subr.bf16.mxu0 %v6606_v27  ;;  %v3300_v21 = vpop.f32.mrf.mxu0 }
 0x1d2   :  { %9129 = vst [vmem:[#allocation56_spill] sm:$0xff] %v7537_v11  ;;  %3974 = vmatprep.mubr.bf16.mxu1 %v9113_v40  ;;  %v4577_v24 = vrot.slane %v4576_v62, 4  ;;  %v4109_v36 = vadd.f32 %v4108_v58, %v7524_v54  ;;  %v4098_v7 = vadd.f32 %v4097_v18, %v4096_v63  ;;  %v3229_v44 = vpop.f32.mrf.mxu1  ;;  %3903 = vmatprep.mubr.bf16.mxu0 %v7287_v30  ;;  %v4588_v60 = vsel %vm4018_vm0, %v4505_v0, 0.0  ;;  %v6645_v30 = vld [vmem:[#allocation5 + $0x944] ss:$72 sps:$4 sm:$0xff]  }
 0x1d3   :  { %v4587_v51 = vadd.f32 %v4586_v1, %v4487_v25  ;;  %v4520_v4 = vadd.f32 %v7405_v53, %v7403_v56  ;;  %v4465_v8 = vmul.f32 %v7139_v16, %v7139_v16  ;;  %v4110_v48 = vsel %vm4018_vm0, %v7543_v43, 0.0  ;;  %v6637_v25 = vld [vmem:[#allocation5 + $0x9d0] ss:$72 sps:$4 sm:$0xff]   ;;  %v3301_v53 = vpop.f32.mrf.mxu0  ;;  %v6618_v0 = vld [vmem:[#allocation5 + $0x824] ss:$72 sps:$4 sm:$0xff]  }
 0x1d4   :  { %3953 = vmatpush1.bf16.msra.mxu1 %v6631_v31  ;;  %v4578_v27 = vadd.f32 %v4577_v24, %v4576_v62  ;;  %v4099_v38 = vrot.slane %v4098_v7, 4  ;;  %v4111_v61 = vadd.f32 %v4110_v48, %v4109_v36  ;;  %3886 = vmatpush1.bf16.msra.mxu0 %v6604_v52  ;;  %v3230_v47 = vpop.f32.mrf.mxu1  ;;  %v4464_v56 = vmul.f32 %v7116_v3, %v7116_v3  ;;  %v6622_v53 = vld [vmem:[#allocation5 + $0x790] ss:$72 sps:$4 sm:$0xff]   ;;  %v9172_v3 = vld [vmem:[#allocation52_spill] sm:$0xff] }
 0x1d5   :  { %v4589_v35 = vadd.f32 %v4588_v60, %v4587_v51  ;;  %3954 = vmatprep.subr.bf16.mxu1 %v6639_v26  ;;  %v4534_v34 = vadd.f32 %v4533_v32, %v4465_v8  ;;  %3887 = vmatprep.subr.bf16.mxu0 %v6612_v19  ;;  %v4483_v49 = vmul.f32 %v7537_v11, %v7537_v11  ;;  %v6643_v26 = vld [vmem:[#allocation5 + $0x940] ss:$72 sps:$4 sm:$0xff]  }
 0x1d6   :  { %v4579_v58 = vrot.slane %v4578_v27, 2  ;;  %v4100_v31 = vadd.f32 %v4099_v38, %v4098_v7  ;;  %v4112_v63 = vrot.slane %v4111_v61, 4  ;;  %v7557_v62 = vpop.f32.mrf.mxu1  ;;  %v4521_v2 = vadd.f32 %v4520_v4, %v4464_v56  ;;  %v6616_v51 = vld [vmem:[#allocation5 + $0x820] ss:$72 sps:$4 sm:$0xff]   ;;  %v6624_v4 = vld [vmem:[#allocation5 + $0x794] ss:$72 sps:$4 sm:$0xff]  }
 0x1d7   :  { %v4590_v1 = vrot.slane %v4589_v35, 4  ;;  %v4501_v52 = vmul.f32 %v7143_v20, %v7143_v20  ;;  %v4482_v7 = vmul.f32 %v7119_v57, %v7119_v57  ;;  %v4500_v44 = vmul.f32 %v7122_v6, %v7122_v6  ;;  %v6710_v20 = vld [vmem:[#allocation2 + $0x38] ss:$12 sps:$4 sm:$0xff]   ;;  %v6711_v57 = vld [vmem:[#allocation2 + $0x50] ss:$0 sps:$4 sm:$0x11]  }
 0x1d8   :  { %3955 = vmatpush1.bf16.msra.mxu1 %v6637_v25  ;;  %v4580_v18 = vadd.f32 %v4579_v58, %v4578_v27  ;;  %v4101_v32 = vrot.slane %v4100_v31, 2  ;;  %v4113_v19 = vadd.f32 %v4112_v63, %v4111_v61  ;;  %3888 = vmatpush2.bf16.msra.mxu0 %v6610_v14  ;;  %v7563_v36 = vpop.f32.mrf.mxu1  ;;  %v4535_v21 = vadd.f32 %v4534_v34, %v4483_v49  ;;  %v6630_v58 = vld [vmem:[#allocation5 + $0x704] ss:$72 sps:$4 sm:$0xff]   ;;  %v6708_v49 = vld [vmem:[#allocation2 + $0x8] ss:$12 sps:$4 sm:$0xff]  }
 0x1d9   :  { %v4591_v24 = vadd.f32 %v4590_v1, %v4589_v35  ;;  %3956 = vmatprep.subr.bf16.mxu1 %v6645_v30  ;;  %3889 = vmatprep.subr.bf16.mxu0 %v6618_v0  ;;  %v4522_v35 = vadd.f32 %v4521_v2, %v4482_v7  ;;  %v4536_v38 = vsel %vm4018_vm0, %v4501_v52, 0.0  ;;  %v4523_v34 = vsel %vm4018_vm0, %v4500_v44, 0.0  ;;  %v6636_v44 = vld [vmem:[#allocation5 + $0x674] ss:$72 sps:$4 sm:$0xff]  }
 0x1da   :  { %v4581_v8 = vrot.slane %v4580_v18, 1  ;;  %v4102_v48 = vadd.f32 %v4101_v32, %v4100_v31  ;;  %v4114_v25 = vrot.slane %v4113_v19, 2  ;;  %v7569_v27 = vpop.f32.mrf.mxu1  ;;  %v4537_v0 = vadd.f32 %v4536_v38, %v4535_v21  ;;  %v6628_v32 = vld [vmem:[#allocation5 + $0x700] ss:$72 sps:$4 sm:$0xff]  }
 0x1db   :  { %v4592_v60 = vrot.slane %v4591_v24, 2 }
 0x1dc   :  { %3957 = vmatpush1.bf16.msra.mxu1 %v6643_v26  ;;  %v4582_v61 = vadd.f32 %v4581_v8, %v4580_v18  ;;  %v4103_v30 = vrot.slane %v4102_v48, 1  ;;  %v4115_v47 = vadd.f32 %v4114_v25, %v4113_v19  ;;  %3890 = vmatpush2.bf16.msra.mxu0 %v6616_v51  ;;  %v7572_v56 = vpop.f32.mrf.mxu1  ;;  %v4524_v26 = vadd.f32 %v4523_v34, %v4522_v35 }
 0x1dd   :  { %v4593_v14 = vadd.f32 %v4592_v60, %v4591_v24  ;;  %3891 = vmatprep.subr.bf16.mxu0 %v6624_v4  ;;  %v4538_v51 = vrot.slane %v4537_v0, 4 }
 0x1de   :  { %v4756_v1 = vmul.f32 0.020408163, %v4582_v61  ;;  %v4104_v63 = vadd.f32 %v4103_v30, %v4102_v48  ;;  %v4116_v2 = vrot.slane %v4115_v47, 1  ;;  %v7575_v52 = vpop.f32.mrf.mxu1  ;;  %v4525_v25 = vrot.slane %v4524_v26, 4 }
 0x1df   :  { %v4594_v31 = vrot.slane %v4593_v14, 1  ;;  %3975 = vmatmul.mubr.bf16.vlgmr.msra.gmra.mxu1 %v6708_v49 }
 0x1e0   :  { %3984 = vmatprep.mubr.bf16.mxu1 %v9113_v40  ;;  %v4254_v24 = vmul.f32 0.020408163, %v4104_v63  ;;  %3892 = vmatpush2.bf16.msra.mxu0 %v6622_v53  ;;  %v7578_v19 = vpop.f32.mrf.mxu1  ;;  %v4774_v7 = vadd.f32 0.001, %v4756_v1  ;;  %v4117_v60 = vadd.f32 %v4116_v2, %v4115_v47  ;;  %v4539_v47 = vadd.f32 %v4538_v51, %v4537_v0  ;;  %v6709_v1 = vld [vmem:[#allocation2 + $0x20] ss:$12 sps:$4 sm:$0xff]  }
 0x1e1   :  { %v4595_v18 = vadd.f32 %v4594_v31, %v4593_v14  ;;  %3893 = vmatprep.subr.bf16.mxu0 %v6630_v58  ;;  %v4526_v63 = vadd.f32 %v4525_v25, %v4524_v26  ;;  %v6640_v26 = vld [vmem:[#allocation5 + $0x5e0] ss:$72 sps:$4 sm:$0xff]  }
 0x1e2   :  { %v7581_v4 = vsub.f32 %v7414_v22, %v4254_v24  ;;  %v7584_v8 = vsub.f32 %v7399_v10, %v4254_v24  ;;  %v7586_v48 = vpop.f32.mrf.mxu1  ;;  %v7589_v35 = vsub.f32 %v7427_v39, %v4254_v24  ;;  %v7592_v61 = vsub.f32 %v7505_v50, %v4254_v24  ;;  %v6634_v10 = vld [vmem:[#allocation5 + $0x670] ss:$72 sps:$4 sm:$0xff]   ;;  %v6642_v39 = vld [vmem:[#allocation5 + $0x5e4] ss:$72 sps:$4 sm:$0xff]  }
 0x1e3   :  { %v4757_v21 = vmul.f32 0.020408163, %v4595_v18  ;;  %6656 = vrsqrt.f32 %v4774_v7  ;;  %v7601_v53 = vsub.f32 %v7511_v42, %v4254_v24  ;;  %v4255_v58 = vmul.f32 0.020408163, %v4117_v60  ;;  %v6648_v7 = vld [vmem:[#allocation5 + $0x554] ss:$72 sps:$4 sm:$0xff]  }
 0x1e4   :  { %v4398_v14 = vmul.f32 %v7581_v4, %v7581_v4  ;;  %v4416_v22 = vmul.f32 %v7584_v8, %v7584_v8  ;;  %3894 = vmatpush2.bf16.msra.mxu0 %v6628_v32  ;;  %v7598_v30 = vpop.f32.mrf.mxu1  ;;  %v4434_v50 = vmul.f32 %v7589_v35, %v7589_v35  ;;  %v7608_v2 = vsub.f32 %v7516_v13, %v4254_v24 }
 0x1e5   :  { %v4775_v38 = vadd.f32 0.001, %v4757_v21  ;;  %3895 = vmatprep.subr.bf16.mxu0 %v6636_v44  ;;  %v7611_v0 = vsub.f32 %v7531_v17, %v4254_v24  ;;  %v4452_v42 = vmul.f32 %v7592_v61, %v7592_v61  ;;  %v7617_v18 = vsub.f32 %v7423_v29, %v4255_v58 }
 0x1e6   :  { %v4596_v34 = vadd.f32 %v4416_v22, %v4398_v14  ;;  %v7605_v31 = vpop.f32.mrf.mxu1  ;;  %v7620_v32 = vsub.f32 %v7420_v23, %v4255_v58  ;;  %v4540_v13 = vrot.slane %v4539_v47, 2  ;;  %v4470_v17 = vmul.f32 %v7601_v53, %v7601_v53 }
 0x1e7   :  { %6658 = vrsqrt.f32 %v4775_v38  ;;  %3985 = vmatmul.mubr.bf16.gmra.mxu1 %v6709_v1  ;;  %v7627_v24 = vsub.f32 %v7464_v55, %v4255_v58  ;;  %v7630_v29 = vsub.f32 %v7509_v46, %v4255_v58  ;;  %v4399_v23 = vmul.f32 %v7617_v18, %v7617_v18 }
 0x1e8   :  { %3994 = vmatprep.mubr.bf16.mxu1 %v9113_v40  ;;  %v4597_v49 = vadd.f32 %v4596_v34, %v4434_v50  ;;  %3896 = vmatpush2.bf16.msra.mxu0 %v6634_v10  ;;  %v7622_v51 = vpop.f32.mrf.mxu1  ;;  %v4417_v21 = vmul.f32 %v7620_v32, %v7620_v32  ;;  %v4527_v25 = vrot.slane %v4526_v63, 2  ;;  %v4488_v38 = vmul.f32 %v7608_v2, %v7608_v2 }
 0x1e9   :  { %3897 = vmatprep.subr.bf16.mxu0 %v6642_v39  ;;  %v4506_v55 = vmul.f32 %v7611_v0, %v7611_v0  ;;  %v7643_v22 = vsub.f32 %v7513_v37, %v4255_v58  ;;  %v4435_v46 = vmul.f32 %v7627_v24, %v7627_v24  ;;  %v6646_v39 = vld [vmem:[#allocation5 + $0x550] ss:$72 sps:$4 sm:$0xff]   ;;  %v4541_v34 = vadd.f32 %v4540_v13, %v4539_v47 }
 0x1ea   :  { %v4598_v44 = vadd.f32 %v4597_v49, %v4452_v42  ;;  %v7636_v60 = vpop.f32.mrf.mxu1  ;;  %v4609_v10 = vadd.f32 %v4417_v21, %v4399_v23  ;;  %v7650_v1 = vsub.f32 %v7543_v43, %v4255_v58  ;;  %v6651_v42 = vld [vmem:[#allocation5 + $0x4c4] ss:$72 sps:$4 sm:$0xff]   ;;  %v4453_v37 = vmul.f32 %v7630_v29, %v7630_v29 }
 0x1eb   :  { %v4528_v23 = vadd.f32 %v4527_v25, %v4526_v63  ;;  %v4601_v47 = vsel %vm4018_vm0, %v4506_v55, 0.0  ;;  %v4471_v13 = vmul.f32 %v7643_v22, %v7643_v22  ;;  %v4542_v21 = vrot.slane %v4541_v34, 1 }
 0x1ec   :  { %v4599_v14 = vadd.f32 %v4598_v44, %v4470_v17  ;;  %3898 = vmatpush2.bf16.msra.mxu0 %v6640_v26  ;;  %v7647_v50 = vpop.f32.mrf.mxu1  ;;  %v7653_v17 = vsub.f32 %v7524_v54, %v4255_v58  ;;  %v4610_v44 = vadd.f32 %v4609_v10, %v4435_v46  ;;  %v6649_v54 = vld [vmem:[#allocation5 + $0x4c0] ss:$72 sps:$4 sm:$0xff]  }
 0x1ed   :  { %3899 = vmatprep.subr.bf16.mxu0 %v6648_v7  ;;  %v4529_v46 = vrot.slane %v4528_v23, 1 }
 0x1ee   :  { %v4600_v49 = vadd.f32 %v4599_v14, %v4488_v38  ;;  %v7657_v26 = vpop.f32.mrf.mxu1  ;;  %v4611_v7 = vadd.f32 %v4610_v44, %v4453_v37  ;;  %v4543_v44 = vadd.f32 %v4542_v21, %v4541_v34 }
 0x1ef   :  { %3995 = vmatmul.mubr.bf16.gmra.mxu1 %v6710_v20  ;;  %v4507_v20 = vmul.f32 %v7650_v1, %v7650_v1 }
 0x1f0   :  { %4004 = vmatprep.mubr.bf16.mxu1 %v9113_v40  ;;  %v4602_v43 = vadd.f32 %v4601_v47, %v4600_v49  ;;  %3900 = vmatpush2.bf16.msra.mxu0 %v6646_v39  ;;  %v7663_v58 = vpop.f32.mrf.mxu1  ;;  %v7667_v38 = vpop.eup %6656  ;;  %v4489_v40 = vmul.f32 %v7653_v17, %v7653_v17  ;;  %v4612_v25 = vadd.f32 %v4611_v7, %v4471_v13 }
 0x1f1   :  { %3901 = vmatprep.subr.bf16.mxu0 %v6651_v42  ;;  %v4614_v42 = vsel %vm4018_vm0, %v4507_v20, 0.0  ;;  %v4530_v13 = vadd.f32 %v4529_v46, %v4528_v23 }
 0x1f2   :  { %v4603_v63 = vrot.slane %v4602_v43, 4  ;;  %v3442_v55 = vpop.f32.mrf.mxu1  ;;  %v4613_v49 = vadd.f32 %v4612_v25, %v4489_v40 }
 0x1f3   :  { %v4752_v40 = vmul.f32 0.020408163, %v4530_v13 }
 0x1f4   :  { %v7671_v14 = vpop.eup %6658  ;;  %v4604_v39 = vadd.f32 %v4603_v63, %v4602_v43  ;;  %3902 = vmatpush2.bf16.msra.mxu0 %v6649_v54  ;;  %v3443_v37 = vpop.f32.mrf.mxu1  ;;  %v4615_v6 = vadd.f32 %v4614_v42, %v4613_v49  ;;  %v4753_v54 = vmul.f32 0.020408163, %v4543_v44 }
 0x1f5   :  { %v3337_v11 = vpop.f32.mrf.mxu0 }
 0x1f6   :  { %v4605_v47 = vrot.slane %v4604_v39, 2  ;;  %v7677_v7 = vadd.f32 %v7557_v62, %v3337_v11  ;;  %v4616_v10 = vrot.slane %v4615_v6, 4 }
 0x1f7   :  { %4005 = vmatmul.mubr.bf16.gmra.mxu1 %v6711_v57  ;;  %3904 = vmatmul.mubr.bf16.vlgmr.msra.gmra.mxu0 %v7299_v45  ;;  %v3339_v43 = vpop.f32.mrf.mxu0  ;;  %v4771_v45 = vadd.f32 0.001, %v4753_v54 }
 0x1f8   :  { %v4606_v55 = vadd.f32 %v4605_v47, %v4604_v39  ;;  %3913 = vmatprep.mubr.bf16.mxu0 %v7302_v5  ;;  %v7682_v34 = vadd.f32 %v7563_v36, %v3339_v43  ;;  %v4617_v20 = vadd.f32 %v4616_v10, %v4615_v6  ;;  %v4770_v39 = vadd.f32 0.001, %v4752_v40  ;;  %v9136_v40 = vld [vmem:[#allocation15_spill] sm:$0xff] }
 0x1f9   :  { %v3341_v63 = vpop.f32.mrf.mxu0  ;;  %6660 = vrsqrt.f32 %v4771_v45 }
 0x1fa   :  { %9130 = vst [vmem:[#allocation57_spill] sm:$0xff] %v7682_v34  ;;  %v4607_v21 = vrot.slane %v4606_v55, 1  ;;  %v7685_v57 = vadd.f32 %v7569_v27, %v3341_v63  ;;  %v4618_v62 = vrot.slane %v4617_v20, 2  ;;  %6662 = vrsqrt.f32 %v4770_v39 }
 0x1fb   :  { %v3343_v23 = vpop.f32.mrf.mxu0 }
 0x1fc   :  { %v4608_v11 = vadd.f32 %v4607_v21, %v4606_v55  ;;  %v4118_v25 = vadd.f32 %v7685_v57, %v7677_v7  ;;  %v7690_v5 = vadd.f32 %v7572_v56, %v3343_v23  ;;  %v4619_v46 = vadd.f32 %v4618_v62, %v4617_v20 }
 0x1fd   :  { %v3347_v36 = vpop.f32.mrf.mxu0  ;;  %v4834_v23 = vlaneseq }
 0x1fe   :  { %9131 = vst [vmem:[#allocation58_spill] sm:$0xff] %v7690_v5  ;;  %v4758_v49 = vmul.f32 0.020408163, %v4608_v11  ;;  %v4131_v6 = vadd.f32 %v7690_v5, %v7682_v34  ;;  %v7695_v27 = vadd.f32 %v7575_v52, %v3347_v36  ;;  %v4620_v10 = vrot.slane %v4619_v46, 1  ;;  %v9193_v5 = vld [vmem:[#allocation49_spill] sm:$0xff]  ;;  %v9196_v34 = vld [vmem:[#allocation40_spill] sm:$0xff] }
 0x1ff   :  { %3914 = vmatmul.mubr.bf16.gmra.mxu0 %v7324_v15  ;;  %v3349_v37 = vpop.f32.mrf.mxu0  ;;  %v6829_v11 = vmov 1966171168   ;;  %v7725_v39 = vshrl.u32 %v4834_v23, 7 }
 0x200   :  { %3923 = vmatprep.mubr.bf16.mxu0 %v7417_v12  ;;  %v4119_v56 = vadd.f32 %v4118_v25, %v7695_v27  ;;  %v7701_v44 = vadd.f32 %v7578_v19, %v3349_v37  ;;  %v4621_v42 = vadd.f32 %v4620_v10, %v4619_v46  ;;  %v4776_v13 = vadd.f32 0.001, %v4758_v49 }
 0x201   :  { %v3351_v47 = vpop.f32.mrf.mxu0  ;;  %v4832_v62 = vunpack.c.l.s4 %v6829_v11  ;;  %9139 = vst [vmem:[#allocation64_spill] sm:$0xff] %v7725_v39 }
 0x202   :  { %9132 = vst [vmem:[#allocation59_spill] sm:$0xff] %v7701_v44  ;;  %v4132_v55 = vadd.f32 %v4131_v6, %v7701_v44  ;;  %v7705_v52 = vadd.f32 %v7586_v48, %v3351_v47  ;;  %v4759_v15 = vmul.f32 0.020408163, %v4621_v42  ;;  %6664 = vrsqrt.f32 %v4776_v13  ;;  %v9192_v44 = vld [vmem:[#allocation38_spill] sm:$0xff] }
 0x203   :  { %v3353_v43 = vpop.f32.mrf.mxu0 }
 0x204   :  { %9133 = vst [vmem:[#allocation60_spill] sm:$0xff] %v7705_v52  ;;  %v4120_v54 = vadd.f32 %v4119_v56, %v7705_v52  ;;  %v7709_v12 = vadd.f32 %v7598_v30, %v3353_v43  ;;  %v4777_v21 = vadd.f32 0.001, %v4759_v15 }
 0x205   :  { %v3357_v20 = vpop.f32.mrf.mxu0 }
 0x206   :  { %9134 = vst [vmem:[#allocation61_spill] sm:$0xff] %v7709_v12  ;;  %v4133_v19 = vadd.f32 %v4132_v55, %v7709_v12  ;;  %v7713_v63 = vadd.f32 %v7605_v31, %v3357_v20  ;;  %6666 = vrsqrt.f32 %v4777_v21  ;;  %v6661_v10 = vpop.eup %6660  ;;  %v9189_v12 = vld [vmem:[#allocation55_spill] sm:$0xff] }
 0x207   :  { %3924 = vmatmul.mubr.bf16.gmra.mxu0 %v7475_v59  ;;  %v3359_v48 = vpop.f32.mrf.mxu0  ;;  %v4833_v59 = vunpack.c.0.s8 %v4832_v62 }
 0x208   :  { %9135 = vst [vmem:[#allocation62_spill] sm:$0xff] %v7713_v63  ;;  %3933 = vmatprep.mubr.bf16.mxu0 %v9136_v40  ;;  %v4121_v30 = vadd.f32 %v4120_v54, %v7713_v63  ;;  %v7719_v45 = vadd.f32 %v7622_v51, %v3359_v48  ;;  %v9144_v54 = vld [vmem:[#allocation41_spill] sm:$0xff] }
 0x209   :  { %v3361_v25 = vpop.f32.mrf.mxu0  ;;  %v7737_v13 = vsub.s32 %v4833_v59, %v7725_v39 }
 0x20a   :  { %9137 = vst [vmem:[#allocation15_spill] sm:$0xff] %v7719_v45  ;;  %v4134_v46 = vadd.f32 %v4133_v19, %v7719_v45  ;;  %v7723_v31 = vadd.f32 %v7636_v60, %v3361_v25  ;;  %v6663_v60 = vpop.eup %6662 }
 0x20b   :  { %v3363_v36 = vpop.f32.mrf.mxu0  ;;  %v4827_v47 = vcombine.low %v6663_v60, %v6661_v10  ;;  %9142 = vst [vmem:[#allocation67_spill] sm:$0xff] %v7737_v13  ;;  %v9148_v10 = vcombine.low %v7667_v38, %v7671_v14  ;;  %v7767_v38 = vsub.s32 4, %v7725_v39  ;;  %v7770_v14 = vsub.s32 5, %v7725_v39 }
 0x20c   :  { %9138 = vst [vmem:[#allocation63_spill] sm:$0xff] %v7723_v31  ;;  %v4122_v49 = vadd.f32 %v4121_v30, %v7723_v31  ;;  %v7729_v6 = vadd.f32 %v7647_v50, %v3363_v36 }
 0x20d   :  { %v3367_v37 = vpop.f32.mrf.mxu0  ;;  %v4837_v23 = vrot.slane %v4827_v47, %v7737_v13  ;;  %9152 = vst [vmem:[#allocation71_spill] sm:$0xff] %v7767_v38  ;;  %9153 = vst [vmem:[#allocation72_spill] sm:$0xff] %v7770_v14 }
 0x20e   :  { %9140 = vst [vmem:[#allocation65_spill] sm:$0xff] %v7729_v6  ;;  %v4135_v51 = vadd.f32 %v4134_v46, %v7729_v6  ;;  %v7733_v56 = vadd.f32 %v7657_v26, %v3367_v37  ;;  %v9145_v26 = vld [vmem:[#allocation42_spill] sm:$0xff]  ;;  %v4851_v37 = vrot.slane %v9148_v10, %v7737_v13  ;;  %v7782_v10 = vsub.s32 7, %v7725_v39 }
 0x20f   :  { %3934 = vmatmul.mubr.bf16.gmra.mxu0 %v6908_v41  ;;  %v3369_v42 = vpop.f32.mrf.mxu0  ;;  %v9146_v21 = vcombine.low %v9144_v54, %v9145_v26  ;;  %v6665_v19 = vpop.eup %6664  ;;  %v7761_v54 = vsub.s32 2, %v7725_v39 }
 0x210   :  { %9141 = vst [vmem:[#allocation66_spill] sm:$0xff] %v7733_v56  ;;  %v4123_v55 = vsel %vm4018_vm0, %v7733_v56, 0.0  ;;  %v7742_v50 = vadd.f32 %v7663_v58, %v3369_v42  ;;  %9157 = vst [vmem:[#allocation76_spill] sm:$0xff] %v7782_v10 }
 0x211   :  { %v4124_v15 = vadd.f32 %v4123_v55, %v4122_v49  ;;  %v3371_v43 = vpop.f32.mrf.mxu0  ;;  %v4844_v20 = vrot.slane %v9146_v21, %v7737_v13  ;;  %9150 = vst [vmem:[#allocation69_spill] sm:$0xff] %v7761_v54 }
 0x212   :  { %9143 = vst [vmem:[#allocation68_spill] sm:$0xff] %v7742_v50  ;;  %v4136_v41 = vsel %vm4018_vm0, %v7742_v50, 0.0  ;;  %v9183_v50 = vld [vmem:[#allocation54_spill] sm:$0xff] }
 0x213   :  { %v4125_v48 = vrot.slane %v4124_v15, 4  ;;  %v4137_v40 = vadd.f32 %v4136_v41, %v4135_v51  ;;  %v3372_v11 = vpop.f32.mrf.mxu0  ;;  %v6667_v62 = vpop.eup %6666  ;;  %v4859_v59 = vcombine.low %v4837_v23, %v4844_v20 }
 0x214   :  { %v4830_v30 = vcombine.low %v6665_v19, %v6667_v62  ;;  %v7764_v19 = vsub.s32 3, %v7725_v39 }
 0x215   :  { %v4126_v58 = vadd.f32 %v4125_v48, %v4124_v15  ;;  %v4138_v25 = vrot.slane %v4137_v40, 4  ;;  %v3550_v36 = vpop.f32.mrf.mxu0  ;;  %v7772_v48 = vld [vmem:[#allocation8] sm:$0xff]  ;;  %v4867_v11 = vrot.slane %v4859_v59, %v7737_v13 }
 0x216   :  { %v3479_v46 = vpop.f32.mrf.mxu1  ;;  %v4858_v60 = vrot.slane %v4830_v30, %v7737_v13  ;;  %9151 = vst [vmem:[#allocation70_spill] sm:$0xff] %v7764_v19  ;;  %9154 = vst [vmem:[#allocation73_spill] sm:$0xff] %v7772_v48  ;;  %v7790_v59 = vrot.slane %v7772_v48, %v7761_v54 }
 0x217   :  { %v7751_v49 = vadd.f32 %v3550_v36, %v3479_v46  ;;  %v4127_v51 = vrot.slane %v4126_v58, 2  ;;  %v4139_v42 = vadd.f32 %v4138_v25, %v4137_v40  ;;  %v3552_v43 = vpop.f32.mrf.mxu0  ;;  %v4806_v46 = vld [vmem:[#allocation7] sm:$0xff]  ;;  %v7779_v36 = vsub.s32 6, %v7725_v39  ;;  %v9177_v39 = vld [vmem:[#allocation46_spill] sm:$0xff] }
 0x218   :  { %v3481_v55 = vpop.f32.mrf.mxu1  ;;  %v4860_v15 = vcombine.low %v4851_v37, %v4858_v60 }
 0x219   :  { %9147 = vst [vmem:[#allocation41_spill] sm:$0xff] %v7751_v49  ;;  %v7758_v47 = vadd.f32 %v3552_v43, %v3481_v55  ;;  %v4128_v26 = vadd.f32 %v4127_v51, %v4126_v58  ;;  %v4140_v21 = vrot.slane %v4139_v42, 2  ;;  %v3554_v41 = vpop.f32.mrf.mxu0  ;;  %9156 = vst [vmem:[#allocation75_spill] sm:$0xff] %v7779_v36 }
 0x21a   :  { %v3483_v20 = vpop.f32.mrf.mxu1  ;;  %v4874_v62 = vrot.slane %v4860_v15, %v7737_v13 }
 0x21b   :  { %9149 = vst [vmem:[#allocation42_spill] sm:$0xff] %v7758_v47  ;;  %v7774_v40 = vadd.f32 %v3554_v41, %v3483_v20  ;;  %v4129_v23 = vrot.slane %v4128_v26, 1  ;;  %v4141_v30 = vadd.f32 %v4140_v21, %v4139_v42  ;;  %v3556_v25 = vpop.f32.mrf.mxu0  ;;  %v7794_v21 = vrot.slane %v7772_v48, %v7764_v19 }
 0x21c   :  { %v3485_v58 = vpop.f32.mrf.mxu1  ;;  %v4875_v51 = vcombine.low %v4867_v11, %v4874_v62  ;;  %v7798_v20 = vrot.slane %v7772_v48, %v7767_v38 }
 0x21d   :  { %9155 = vst [vmem:[#allocation74_spill] sm:$0xff] %v7774_v40  ;;  %v4144_v37 = vadd.f32 %v7774_v40, %v7751_v49  ;;  %v7786_v60 = vadd.f32 %v3556_v25, %v3485_v58  ;;  %v4130_v42 = vadd.f32 %v4129_v23, %v4128_v26  ;;  %v4142_v55 = vrot.slane %v4141_v30, 1  ;;  %v3560_v15 = vpop.f32.mrf.mxu0 }
 0x21e   :  { %v3489_v43 = vpop.f32.mrf.mxu1  ;;  %v7806_v62 = vmul.f32 %v4875_v51, %v4806_v46  ;;  %v7810_v26 = vrot.slane %v7772_v48, %v7770_v14  ;;  %v7814_v23 = vrot.slane %v7772_v48, %v7779_v36 }
 0x21f   :  { %9158 = vst [vmem:[#allocation77_spill] sm:$0xff] %v7786_v60  ;;  %v7802_v41 = vadd.f32 %v7786_v60, %v7758_v47  ;;  %v7804_v11 = vadd.f32 %v3560_v15, %v3489_v43  ;;  %v7816_v58 = vmul.f32 0.020408163, %v4130_v42  ;;  %v3562_v13 = vpop.f32.mrf.mxu0  ;;  %v7820_v60 = vrot.slane %v7772_v48, %v7782_v10 }
 0x220   :  { %9161 = vst [vmem:[#allocation80_spill] sm:$0xff] %v7806_v62  ;;  %v3491_v25 = vpop.f32.mrf.mxu1  ;;  %v7822_v43 = vadd.f32 %v4142_v55, %v4141_v30  ;;  %v4960_v15 = vrot.slane %v7806_v62, %v7761_v54  ;;  %v4964_v42 = vrot.slane %v7806_v62, %v7764_v19  ;;  %v4968_v47 = vrot.slane %v7806_v62, %v7767_v38  ;;  %v9169_v38 = vld [vmem:[#allocation27_spill] sm:$0xff]  ;;  %v9170_v19 = vld [vmem:[#allocation34_spill] sm:$0xff] }
 0x221   :  { %9159 = vst [vmem:[#allocation78_spill] sm:$0xff] %v7802_v41  ;;  %9160 = vst [vmem:[#allocation79_spill] sm:$0xff] %v7804_v11  ;;  %v7825_v46 = vadd.f32 %v4144_v37, %v7804_v11  ;;  %v7827_v51 = vadd.f32 %v3562_v13, %v3491_v25  ;;  %v4972_v40 = vrot.slane %v7806_v62, %v7770_v14  ;;  %v7839_v30 = vpop.f32.mrf.mxu0  ;;  %v9171_v11 = vld [vmem:[#allocation45_spill] sm:$0xff]  ;;  %v9181_v41 = vld [vmem:[#allocation36_spill] sm:$0xff] }
 0x222   :  { %9162 = vst [vmem:[#allocation81_spill] sm:$0xff] %v7822_v43  ;;  %v7837_v49 = vpop.f32.mrf.mxu1  ;;  %9166 = vst [vmem:[#allocation85_spill] sm:$0xff] %v7839_v30  ;;  %v4976_v13 = vrot.slane %v7806_v62, %v7779_v36  ;;  %v4980_v37 = vrot.slane %v7806_v62, %v7782_v10  ;;  %v7847_v55 = vsub.f32 %v7677_v7, %v7816_v58  ;;  %v9178_v30 = vld [vmem:[#allocation53_spill] sm:$0xff] }
 0x223   :  { %9163 = vst [vmem:[#allocation82_spill] sm:$0xff] %v7825_v46  ;;  %9164 = vst [vmem:[#allocation83_spill] sm:$0xff] %v7827_v51  ;;  %v7851_v25 = vsub.f32 %v7685_v57, %v7816_v58  ;;  %v5041_v14 = vmul.f32 %v4960_v15, %v9169_v38  ;;  %v5042_v54 = vmul.f32 %v4964_v42, %v9170_v19  ;;  %v7859_v46 = vpop.f32.mrf.mxu0  ;;  %v9176_v57 = vld [vmem:[#allocation35_spill] sm:$0xff] }
 0x224   :  { %9165 = vst [vmem:[#allocation84_spill] sm:$0xff] %v7837_v49  ;;  %9167 = vst [vmem:[#allocation86_spill] sm:$0xff] %v7847_v55  ;;  %v5043_v16 = vmul.f32 %v4968_v47, %v9171_v11  ;;  %v5044_v48 = vmul.f32 %v4972_v40, %v9172_v3  ;;  %v7857_v36 = vpop.f32.mrf.mxu1  ;;  %v5045_v10 = vmul.f32 %v4976_v13, %v7581_v4  ;;  %v9175_v55 = vld [vmem:[#allocation28_spill] sm:$0xff]  ;;  %v9182_v51 = vld [vmem:[#allocation47_spill] sm:$0xff] }
 0x225   :  { %9168 = vst [vmem:[#allocation87_spill] sm:$0xff] %v7851_v25  ;;  %9173 = vst [vmem:[#allocation27_spill] sm:$0xff] %v7857_v36  ;;  %v5046_v7 = vmul.f32 %v4980_v37, %v7617_v18  ;;  %v5059_v62 = vmul.f32 %v4960_v15, %v9175_v55  ;;  %v5060_v25 = vmul.f32 %v4964_v42, %v9176_v57  ;;  %v9180_v36 = vld [vmem:[#allocation29_spill] sm:$0xff]  ;;  %v7875_v6 = vpop.f32.mrf.mxu0  ;;  %v9185_v57 = vld [vmem:[#allocation30_spill] sm:$0xff] }
 0x226   :  { %9174 = vst [vmem:[#allocation34_spill] sm:$0xff] %v7859_v46  ;;  %v5061_v38 = vmul.f32 %v4968_v47, %v9177_v39  ;;  %v5062_v19 = vmul.f32 %v4972_v40, %v9178_v30  ;;  %v5063_v11 = vmul.f32 %v4976_v13, %v7584_v8  ;;  %v5064_v3 = vmul.f32 %v4980_v37, %v7620_v32  ;;  %v7869_v49 = vpop.f32.mrf.mxu1  ;;  %v9186_v32 = vld [vmem:[#allocation37_spill] sm:$0xff] }
 0x227   :  { %9179 = vst [vmem:[#allocation45_spill] sm:$0xff] %v7869_v49  ;;  %v5077_v46 = vmul.f32 %v4960_v15, %v9180_v36  ;;  %v5078_v4 = vmul.f32 %v4964_v42, %v9181_v41  ;;  %v5079_v18 = vmul.f32 %v4968_v47, %v9182_v51  ;;  %v5080_v55 = vmul.f32 %v4972_v40, %v9183_v50  ;;  %v9188_v36 = vld [vmem:[#allocation48_spill] sm:$0xff] }
 0x228   :  { %9184 = vst [vmem:[#allocation52_spill] sm:$0xff] %v7875_v6  ;;  %v5081_v39 = vmul.f32 %v4976_v13, %v7589_v35  ;;  %v5082_v30 = vmul.f32 %v4980_v37, %v7627_v24  ;;  %v7880_v8 = vmul.f32 %v4960_v15, %v9185_v57  ;;  %v7883_v45 = vmul.f32 %v4964_v42, %v9186_v32  ;;  %v7885_v49 = vpop.f32.mrf.mxu1  ;;  %v7895_v35 = vpop.f32.mrf.mxu0  ;;  %v9191_v24 = vld [vmem:[#allocation31_spill] sm:$0xff] }
 0x229   :  { %9187 = vst [vmem:[#allocation28_spill] sm:$0xff] %v7885_v49  ;;  %v5097_v41 = vmul.f32 %v4968_v47, %v9188_v36  ;;  %v5098_v51 = vmul.f32 %v4972_v40, %v9189_v12  ;;  %v7890_v50 = vmul.f32 %v4976_v13, %v7592_v61  ;;  %v7893_v6 = vmul.f32 %v4980_v37, %v7630_v29 }
 0x22a   :  { %9190 = vst [vmem:[#allocation35_spill] sm:$0xff] %v7895_v35  ;;  %v7898_v57 = vmul.f32 %v4960_v15, %v9191_v24  ;;  %v7901_v32 = vmul.f32 %v4964_v42, %v9192_v44  ;;  %v7904_v49 = vmul.f32 %v4968_v47, %v9193_v5  ;;  %v7907_v36 = vmul.f32 %v4972_v40, %v7479_v28  ;;  %v7909_v12 = vpop.f32.mrf.mxu1  ;;  %v9195_v35 = vld [vmem:[#allocation32_spill] sm:$0xff]  ;;  %v7923_v43 = vpop.f32.mrf.mxu0  ;;  %v9198_v5 = vld [vmem:[#allocation50_spill] sm:$0xff] }
 0x22b   :  { %9194 = vst [vmem:[#allocation46_spill] sm:$0xff] %v7909_v12  ;;  %v7912_v61 = vmul.f32 %v4976_v13, %v7601_v53  ;;  %v7915_v29 = vmul.f32 %v4980_v37, %v7643_v22  ;;  %v7918_v24 = vmul.f32 %v4960_v15, %v9195_v35  ;;  %v7921_v44 = vmul.f32 %v4964_v42, %v9196_v34  ;;  %v9199_v35 = vld [vmem:[#allocation33_spill] sm:$0xff]  ;;  %v9200_v34 = vld [vmem:[#allocation39_spill] sm:$0xff] }
 0x22c   :  { %9197 = vst [vmem:[#allocation53_spill] sm:$0xff] %v7923_v43  ;;  %v7926_v56 = vmul.f32 %v4968_v47, %v9198_v5  ;;  %v7929_v28 = vmul.f32 %v4972_v40, %v7482_v33  ;;  %v7932_v53 = vmul.f32 %v4976_v13, %v7608_v2  ;;  %v7935_v22 = vmul.f32 %v4980_v37, %v7653_v17  ;;  %v7937_v12 = vpop.f32.mrf.mxu1  ;;  %v9201_v43 = vld [vmem:[#allocation51_spill] sm:$0xff]  ;;  %v7951_v52 = vpop.f32.mrf.mxu0 }
 0x22d   :  { %v7940_v31 = vmul.f32 %v4960_v15, %v9199_v35  ;;  %v7943_v63 = vmul.f32 %v4964_v42, %v9200_v34  ;;  %v7946_v5 = vmul.f32 %v4968_v47, %v9201_v43  ;;  %v7949_v33 = vmul.f32 %v4972_v40, %v7485_v9 }
 0x22e   :  { %v7954_v2 = vmul.f32 %v4976_v13, %v7611_v0  ;;  %v7957_v17 = vmul.f32 %v4980_v37, %v7650_v1  ;;  %v5263_v15 = vadd.f32 %v7790_v59, %v5041_v14  ;;  %v5264_v35 = vadd.f32 %v7794_v21, %v5042_v54  ;;  %v7961_v42 = vpop.f32.mrf.mxu1  ;;  %v7967_v34 = vpop.f32.mrf.mxu0 }
 0x22f   :  { %v5265_v47 = vadd.f32 %v7798_v20, %v5043_v16  ;;  %v5266_v43 = vadd.f32 %v7810_v26, %v5044_v48  ;;  %v5267_v9 = vadd.f32 %v7814_v23, %v5045_v10  ;;  %v5268_v40 = vadd.f32 %v7820_v60, %v5046_v7 }
 0x230   :  { %v5281_v0 = vadd.f32 %v7790_v59, %v5059_v62  ;;  %v5282_v1 = vadd.f32 %v7794_v21, %v5060_v25  ;;  %v5283_v14 = vadd.f32 %v7798_v20, %v5061_v38  ;;  %v5284_v54 = vadd.f32 %v7810_v26, %v5062_v19  ;;  %5389 = vst [vmem:[#allocation10 + $0x10] sm:$0xff] %v5263_v15  ;;  %v7973_v13 = vpop.f32.mrf.mxu1  ;;  %v7979_v62 = vpop.f32.mrf.mxu0 }
 0x231   :  { %5390 = vst [vmem:[#allocation10 + $0x18] sm:$0xff] %v5264_v35  ;;  %v5285_v16 = vadd.f32 %v7814_v23, %v5063_v11  ;;  %v5286_v48 = vadd.f32 %v7820_v60, %v5064_v3  ;;  %v5299_v10 = vadd.f32 %v7790_v59, %v5077_v46  ;;  %v5300_v37 = vadd.f32 %v7794_v21, %v5078_v4 }
 0x232   :  { %5391 = vst [vmem:[#allocation10 + $0x20] sm:$0xff] %v5265_v47  ;;  %5392 = vst [vmem:[#allocation10 + $0x28] sm:$0xff] %v5266_v43  ;;  %v5301_v25 = vadd.f32 %v7798_v20, %v5079_v18  ;;  %v5302_v7 = vadd.f32 %v7810_v26, %v5080_v55  ;;  %v5303_v38 = vadd.f32 %v7814_v23, %v5081_v39  ;;  %v3513_v46 = vpop.f32.mrf.mxu1  ;;  %v3584_v55 = vpop.f32.mrf.mxu0  ;;  %v9212_v43 = vld [vmem:[#allocation57_spill] sm:$0xff] }
 0x233   :  { %5393 = vst [vmem:[#allocation10 + $0x30] sm:$0xff] %v5267_v9  ;;  %5394 = vst [vmem:[#allocation10 + $0x38] sm:$0xff] %v5268_v40  ;;  %v5304_v19 = vadd.f32 %v7820_v60, %v5082_v30  ;;  %v5317_v11 = vadd.f32 %v7790_v59, %v7880_v8  ;;  %v5318_v3 = vadd.f32 %v7794_v21, %v7883_v45  ;;  %v9214_v40 = vld [vmem:[#allocation58_spill] sm:$0xff]  ;;  %v9226_v46 = vld [vmem:[#allocation83_spill] sm:$0xff] }
 0x234   :  { %5407 = vst [vmem:[#allocation10 + $0xa0] sm:$0xff] %v5281_v0  ;;  %5408 = vst [vmem:[#allocation10 + $0xa8] sm:$0xff] %v5282_v1  ;;  %v5319_v4 = vadd.f32 %v7798_v20, %v5097_v41  ;;  %v5320_v18 = vadd.f32 %v7810_v26, %v5098_v51  ;;  %v5321_v39 = vadd.f32 %v7814_v23, %v7890_v50  ;;  %v3514_v41 = vpop.f32.mrf.mxu1  ;;  %v9229_v55 = vld [vmem:[#allocation85_spill] sm:$0xff] }
 0x235   :  { %5409 = vst [vmem:[#allocation10 + $0xb0] sm:$0xff] %v5283_v14  ;;  %5410 = vst [vmem:[#allocation10 + $0xb8] sm:$0xff] %v5284_v54  ;;  %v5322_v30 = vadd.f32 %v7820_v60, %v7893_v6  ;;  %v5335_v8 = vadd.f32 %v7790_v59, %v7898_v57  ;;  %v5336_v45 = vadd.f32 %v7794_v21, %v7901_v32  ;;  %v3585_v32 = vpop.f32.mrf.mxu0  ;;  %v9216_v14 = vld [vmem:[#allocation59_spill] sm:$0xff]  ;;  %v9232_v41 = vld [vmem:[#allocation45_spill] sm:$0xff] }
 0x236   :  { %5411 = vst [vmem:[#allocation10 + $0xc0] sm:$0xff] %v5285_v16  ;;  %5412 = vst [vmem:[#allocation10 + $0xc8] sm:$0xff] %v5286_v48  ;;  %v5337_v51 = vadd.f32 %v7798_v20, %v7904_v49  ;;  %v5338_v50 = vadd.f32 %v7810_v26, %v7907_v36  ;;  %v5339_v6 = vadd.f32 %v7814_v23, %v7912_v61  ;;  %v9218_v16 = vld [vmem:[#allocation61_spill] sm:$0xff] }
 0x237   :  { %5425 = vst [vmem:[#allocation10 + $0x130] sm:$0xff] %v5299_v10  ;;  %5426 = vst [vmem:[#allocation10 + $0x138] sm:$0xff] %v5300_v37  ;;  %v5340_v57 = vadd.f32 %v7820_v60, %v7915_v29  ;;  %v5353_v15 = vadd.f32 %v7790_v59, %v7918_v24  ;;  %v5354_v49 = vadd.f32 %v7794_v21, %v7921_v44  ;;  %v8015_v29 = vpop.f32.mrf.mxu1  ;;  %v9222_v37 = vld [vmem:[#allocation65_spill] sm:$0xff] }
 0x238   :  { %5427 = vst [vmem:[#allocation10 + $0x140] sm:$0xff] %v5301_v25  ;;  %5428 = vst [vmem:[#allocation10 + $0x148] sm:$0xff] %v5302_v7  ;;  %v5355_v36 = vadd.f32 %v7798_v20, %v7926_v56  ;;  %v5356_v61 = vadd.f32 %v7810_v26, %v7929_v28  ;;  %v5357_v35 = vadd.f32 %v7814_v23, %v7932_v53  ;;  %v9224_v7 = vld [vmem:[#allocation68_spill] sm:$0xff] }
 0x239   :  { %5429 = vst [vmem:[#allocation10 + $0x150] sm:$0xff] %v5303_v38  ;;  %5430 = vst [vmem:[#allocation10 + $0x158] sm:$0xff] %v5304_v19  ;;  %v5358_v24 = vadd.f32 %v7820_v60, %v7935_v22  ;;  %v5371_v44 = vadd.f32 %v7790_v59, %v7940_v31  ;;  %v5372_v56 = vadd.f32 %v7794_v21, %v7943_v63  ;;  %v8033_v63 = vpop.f32.mrf.mxu1  ;;  %v9203_v59 = vld [vmem:[#allocation60_spill] sm:$0xff] }
 0x23a   :  { %5443 = vst [vmem:[#allocation10 + $0x1c0] sm:$0xff] %v5317_v11  ;;  %5444 = vst [vmem:[#allocation10 + $0x1c8] sm:$0xff] %v5318_v3  ;;  %v5373_v28 = vadd.f32 %v7798_v20, %v7946_v5  ;;  %v5374_v47 = vadd.f32 %v7810_v26, %v7949_v33  ;;  %v5375_v53 = vadd.f32 %v7814_v23, %v7954_v2  ;;  %v9207_v26 = vld [vmem:[#allocation63_spill] sm:$0xff]  ;;  %v9209_v5 = vld [vmem:[#allocation66_spill] sm:$0xff] }
 0x23b   :  { %5445 = vst [vmem:[#allocation10 + $0x1d0] sm:$0xff] %v5319_v4  ;;  %5446 = vst [vmem:[#allocation10 + $0x1d8] sm:$0xff] %v5320_v18  ;;  %v5376_v22 = vadd.f32 %v7820_v60, %v7957_v17  ;;  %v8037_v31 = vsub.f32 %v7695_v27, %v7816_v58  ;;  %v8041_v21 = vsub.f32 %v9203_v59, %v7816_v58  ;;  %v9205_v60 = vld [vmem:[#allocation62_spill] sm:$0xff]  ;;  %v9211_v33 = vld [vmem:[#allocation81_spill] sm:$0xff]  ;;  %v8056_v17 = vpop.f32.mrf.mxu1 }
 0x23c   :  { %5447 = vst [vmem:[#allocation10 + $0x1e0] sm:$0xff] %v5321_v39  ;;  %5448 = vst [vmem:[#allocation10 + $0x1e8] sm:$0xff] %v5322_v30  ;;  %v8045_v20 = vsub.f32 %v9205_v60, %v7816_v58  ;;  %v8049_v23 = vsub.f32 %v9207_v26, %v7816_v58  ;;  %v8053_v27 = vsub.f32 %v9209_v5, %v7816_v58  ;;  %v4257_v2 = vmul.f32 0.020408163, %v9211_v33  ;;  %v9220_v58 = vld [vmem:[#allocation15_spill] sm:$0xff]  ;;  %v9227_v11 = vld [vmem:[#allocation78_spill] sm:$0xff] }
 0x23d   :  { %5461 = vst [vmem:[#allocation10 + $0x250] sm:$0xff] %v5335_v8  ;;  %5462 = vst [vmem:[#allocation10 + $0x258] sm:$0xff] %v5336_v45  ;;  %v8064_v1 = vpop.f32.mrf.mxu1  ;;  %v4158_v3 = vadd.f32 %v9227_v11, %v9226_v46  ;;  %v9228_v18 = vld [vmem:[#allocation84_spill] sm:$0xff]  ;;  %v9230_v30 = vld [vmem:[#allocation27_spill] sm:$0xff]  ;;  %v8128_v59 = vadd.f32 %v7979_v62, %v7973_v13 }
 0x23e   :  { %5463 = vst [vmem:[#allocation10 + $0x260] sm:$0xff] %v5337_v51  ;;  %5464 = vst [vmem:[#allocation10 + $0x268] sm:$0xff] %v5338_v50  ;;  %v8059_v9 = vsub.f32 %v9212_v43, %v4257_v2  ;;  %v8062_v0 = vsub.f32 %v9214_v40, %v4257_v2  ;;  %v8067_v54 = vsub.f32 %v9216_v14, %v4257_v2  ;;  %v9231_v8 = vld [vmem:[#allocation34_spill] sm:$0xff]  ;;  %v9233_v51 = vld [vmem:[#allocation52_spill] sm:$0xff] }
 0x23f   :  { %5465 = vst [vmem:[#allocation10 + $0x270] sm:$0xff] %v5339_v6  ;;  %5466 = vst [vmem:[#allocation10 + $0x278] sm:$0xff] %v5340_v57  ;;  %v8070_v48 = vsub.f32 %v9218_v16, %v4257_v2  ;;  %v8073_v10 = vsub.f32 %v9220_v58, %v4257_v2  ;;  %v8076_v25 = vsub.f32 %v9222_v37, %v4257_v2  ;;  %v8081_v19 = vpop.f32.mrf.mxu1  ;;  %v9234_v6 = vld [vmem:[#allocation28_spill] sm:$0xff]  ;;  %v9235_v57 = vld [vmem:[#allocation35_spill] sm:$0xff] }
 0x240   :  { %5479 = vst [vmem:[#allocation10 + $0x2e0] sm:$0xff] %v5353_v15  ;;  %5480 = vst [vmem:[#allocation10 + $0x2e8] sm:$0xff] %v5354_v49  ;;  %v8079_v38 = vsub.f32 %v9224_v7, %v4257_v2  ;;  %v8089_v39 = vadd.f32 %v9229_v55, %v9228_v18  ;;  %v8093_v45 = vadd.f32 %v9231_v8, %v9230_v30  ;;  %v9236_v15 = vld [vmem:[#allocation46_spill] sm:$0xff]  ;;  %v9237_v49 = vld [vmem:[#allocation53_spill] sm:$0xff] }
 0x241   :  { %5481 = vst [vmem:[#allocation10 + $0x2f0] sm:$0xff] %v5355_v36  ;;  %5482 = vst [vmem:[#allocation10 + $0x2f8] sm:$0xff] %v5356_v61  ;;  %v8085_v4 = vpop.f32.mrf.mxu1  ;;  %v8097_v50 = vadd.f32 %v9233_v51, %v9232_v41  ;;  %v8101_v32 = vadd.f32 %v9235_v57, %v9234_v6  ;;  %v8105_v36 = vadd.f32 %v9237_v49, %v9236_v15  ;;  %v9243_v16 = vld [vmem:[#allocation73_spill] sm:$0xff]  ;;  %v9244_v7 = vld [vmem:[#allocation16_spill] sm:$0xff] }
 0x242   :  { %5483 = vst [vmem:[#allocation10 + $0x300] sm:$0xff] %v5357_v35  ;;  %5484 = vst [vmem:[#allocation10 + $0x308] sm:$0xff] %v5358_v24  ;;  %v9238_v35 = vld [vmem:[#allocation64_spill] sm:$0xff]  ;;  %v9246_v55 = vld [vmem:[#allocation17_spill] sm:$0xff] }
 0x243   :  { %5497 = vst [vmem:[#allocation10 + $0x370] sm:$0x1] %v5371_v44  ;;  %5498 = vst [vmem:[#allocation10 + $0x378] sm:$0x1] %v5372_v56  ;;  %v8107_v61 = vpop.f32.mrf.mxu1  ;;  %v8110_v24 = vsub.s32 0, %v9238_v35  ;;  %v8113_v44 = vsub.s32 1, %v9238_v35 }
 0x244   :  { %9202 = vst [vmem:[#allocation29_spill] sm:$0xff] %v8037_v31  ;;  %9204 = vst [vmem:[#allocation36_spill] sm:$0xff] %v8041_v21  ;;  %v9241_v56 = vld [vmem:[#allocation82_spill] sm:$0xff]  ;;  %v9247_v6 = vld [vmem:[#allocation43_spill] sm:$0xff] }
 0x245   :  { %9206 = vst [vmem:[#allocation47_spill] sm:$0xff] %v8045_v20  ;;  %9208 = vst [vmem:[#allocation54_spill] sm:$0xff] %v8049_v23  ;;  %v8130_v60 = vpop.f32.mrf.mxu1  ;;  %v5174_v58 = vrot.slane %v9243_v16, %v8110_v24  ;;  %v5178_v8 = vrot.slane %v9243_v16, %v8113_v44  ;;  %v9248_v15 = vld [vmem:[#allocation18_spill] sm:$0xff] }
 0x246   :  { %5499 = vst [vmem:[#allocation10 + $0x380] sm:$0x1] %v5373_v28  ;;  %5500 = vst [vmem:[#allocation10 + $0x388] sm:$0x1] %v5374_v47  ;;  %v4146_v28 = vadd.f32 %v9241_v56, %v8089_v39  ;;  %v4159_v47 = vadd.f32 %v4158_v3, %v8093_v45  ;;  %v9245_v3 = vld [vmem:[#allocation23_spill] sm:$0xff]  ;;  %v9249_v56 = vld [vmem:[#allocation24_spill] sm:$0xff] }
 0x247   :  { %5501 = vst [vmem:[#allocation10 + $0x390] sm:$0x1] %v5375_v53  ;;  %5502 = vst [vmem:[#allocation10 + $0x398] sm:$0x1] %v5376_v22  ;;  %v8120_v53 = vadd.f32 %v7951_v52, %v7937_v12  ;;  %v8124_v22 = vadd.f32 %v7967_v34, %v7961_v42  ;;  %v4162_v52 = vsel %vm4018_vm0, %v8128_v59, 0.0  ;;  %v8138_v12 = vpop.f32.mrf.mxu1  ;;  %v9242_v42 = vld [vmem:[#allocation80_spill] sm:$0xff] }
 0x248   :  { %9210 = vst [vmem:[#allocation30_spill] sm:$0xff] %v8053_v27  ;;  %9213 = vst [vmem:[#allocation37_spill] sm:$0xff] %v8059_v9  ;;  %v4147_v26 = vadd.f32 %v4146_v28, %v8097_v50  ;;  %v4160_v5 = vadd.f32 %v4159_v47, %v8101_v32  ;;  %v4952_v34 = vrot.slane %v9242_v42, %v8110_v24  ;;  %v9250_v47 = vld [vmem:[#allocation19_spill] sm:$0xff] }
 0x249   :  { %9215 = vst [vmem:[#allocation48_spill] sm:$0xff] %v8062_v0  ;;  %9217 = vst [vmem:[#allocation55_spill] sm:$0xff] %v8067_v54  ;;  %v4149_v33 = vsel %vm4018_vm0, %v8124_v22, 0.0  ;;  %v4956_v13 = vrot.slane %v9242_v42, %v8113_v44  ;;  %v8146_v43 = vpop.f32.mrf.mxu1 }
 0x24a   :  { %9219 = vst [vmem:[#allocation31_spill] sm:$0xff] %v8070_v48  ;;  %9221 = vst [vmem:[#allocation38_spill] sm:$0xff] %v8073_v10  ;;  %v4148_v62 = vadd.f32 %v4147_v26, %v8105_v36  ;;  %v4161_v2 = vadd.f32 %v4160_v5, %v8120_v53  ;;  %v5039_v11 = vmul.f32 %v4952_v34, %v9244_v7  ;;  %v9251_v5 = vld [vmem:[#allocation44_spill] sm:$0xff]  ;;  %v9253_v7 = vld [vmem:[#allocation25_spill] sm:$0xff] }
 0x24b   :  { %9223 = vst [vmem:[#allocation49_spill] sm:$0xff] %v8076_v25  ;;  %9225 = vst [vmem:[#allocation32_spill] sm:$0xff] %v8079_v38  ;;  %v8150_v37 = vpop.f32.mrf.mxu1  ;;  %v5040_v18 = vmul.f32 %v4956_v13, %v9245_v3  ;;  %v5057_v30 = vmul.f32 %v4952_v34, %v9246_v55  ;;  %v5058_v57 = vmul.f32 %v4956_v13, %v9247_v6  ;;  %v9254_v3 = vld [vmem:[#allocation21_spill] sm:$0xff]  ;;  %v9255_v6 = vld [vmem:[#allocation56_spill] sm:$0xff] }
 0x24c   :  { %9239 = vst [vmem:[#allocation40_spill] sm:$0xff] %v8110_v24  ;;  %9240 = vst [vmem:[#allocation50_spill] sm:$0xff] %v8113_v44  ;;  %v4150_v40 = vadd.f32 %v4149_v33, %v4148_v62  ;;  %v4163_v14 = vadd.f32 %v4162_v52, %v4161_v2  ;;  %v5075_v49 = vmul.f32 %v4952_v34, %v9248_v15  ;;  %v9252_v52 = vld [vmem:[#allocation20_spill] sm:$0xff] }
 0x24d   :  { %v8159_v35 = vpop.f32.mrf.mxu1  ;;  %v5076_v28 = vmul.f32 %v4956_v13, %v9249_v56  ;;  %v5093_v26 = vmul.f32 %v4952_v34, %v9250_v47  ;;  %v5094_v33 = vmul.f32 %v4956_v13, %v9251_v5  ;;  %v5111_v42 = vmul.f32 %v4952_v34, %v9252_v52  ;;  %v9256_v47 = vld [vmem:[#allocation22_spill] sm:$0xff] }
 0x24e   :  { %v4151_v41 = vrot.slane %v4150_v40, 4  ;;  %v4164_v51 = vrot.slane %v4163_v14, 4  ;;  %v5112_v16 = vmul.f32 %v4956_v13, %v9253_v7  ;;  %v5129_v55 = vmul.f32 %v4952_v34, %v9254_v3 }
 0x24f   :  { %v8167_v44 = vpop.f32.mrf.mxu1  ;;  %v5130_v15 = vmul.f32 %v4956_v13, %v9255_v6  ;;  %v5261_v24 = vadd.f32 %v5174_v58, %v5039_v11  ;;  %v5262_v27 = vadd.f32 %v5178_v8, %v5040_v18  ;;  %v5279_v23 = vadd.f32 %v5174_v58, %v5057_v30 }
 0x250   :  { %v4152_v62 = vadd.f32 %v4151_v41, %v4150_v40  ;;  %v4165_v2 = vadd.f32 %v4164_v51, %v4163_v14  ;;  %v5147_v25 = vmul.f32 %v4952_v34, %v9256_v47  ;;  %v5280_v5 = vadd.f32 %v5178_v8, %v5058_v57  ;;  %v9257_v40 = vld [vmem:[#allocation26_spill] sm:$0xff] }
 0x251   :  { %v8171_v20 = vpop.f32.mrf.mxu1  ;;  %v5148_v14 = vmul.f32 %v4956_v13, %v9257_v40  ;;  %v5297_v41 = vadd.f32 %v5174_v58, %v5075_v49  ;;  %v5298_v51 = vadd.f32 %v5178_v8, %v5076_v28  ;;  %v5315_v52 = vadd.f32 %v5174_v58, %v5093_v26  ;;  %5387 = vst [vmem:[#allocation10] sm:$0xff] %v5261_v24 }
 0x252   :  { %v4153_v56 = vrot.slane %v4152_v62, 2  ;;  %v4166_v38 = vrot.slane %v4165_v2, 2  ;;  %5388 = vst [vmem:[#allocation10 + $0x8] sm:$0xff] %v5262_v27  ;;  %5405 = vst [vmem:[#allocation10 + $0x90] sm:$0xff] %v5279_v23  ;;  %v5316_v11 = vadd.f32 %v5178_v8, %v5094_v33  ;;  %v5333_v30 = vadd.f32 %v5174_v58, %v5111_v42  ;;  %v9258_v33 = vld [vmem:[#allocation41_spill] sm:$0xff] }
 0x253   :  { %5406 = vst [vmem:[#allocation10 + $0x98] sm:$0xff] %v5280_v5  ;;  %v3726_v18 = vpop.f32.mrf.mxu1  ;;  %v5334_v6 = vadd.f32 %v5178_v8, %v5112_v16  ;;  %v5351_v10 = vadd.f32 %v5174_v58, %v5129_v55  ;;  %5423 = vst [vmem:[#allocation10 + $0x120] sm:$0xff] %v5297_v41  ;;  %v5352_v13 = vadd.f32 %v5178_v8, %v5130_v15  ;;  %v9260_v16 = vld [vmem:[#allocation79_spill] sm:$0xff]  ;;  %v9264_v41 = vld [vmem:[#allocation42_spill] sm:$0xff] }
 0x254   :  { %v4154_v7 = vadd.f32 %v4153_v56, %v4152_v62  ;;  %v4167_v3 = vadd.f32 %v4166_v38, %v4165_v2  ;;  %5424 = vst [vmem:[#allocation10 + $0x128] sm:$0xff] %v5298_v51  ;;  %5441 = vst [vmem:[#allocation10 + $0x1b0] sm:$0xff] %v5315_v52  ;;  %v5369_v28 = vadd.f32 %v5174_v58, %v5147_v25  ;;  %v9259_v62 = vld [vmem:[#allocation74_spill] sm:$0xff]  ;;  %v9265_v51 = vld [vmem:[#allocation77_spill] sm:$0xff] }
 0x255   :  { %5442 = vst [vmem:[#allocation10 + $0x1b8] sm:$0xff] %v5316_v11  ;;  %v3727_v49 = vpop.f32.mrf.mxu1  ;;  %v5370_v24 = vadd.f32 %v5178_v8, %v5148_v14  ;;  %5459 = vst [vmem:[#allocation10 + $0x240] sm:$0xff] %v5333_v30 }
 0x256   :  { %v4155_v34 = vrot.slane %v4154_v7, 1  ;;  %v4168_v57 = vrot.slane %v4167_v3, 1  ;;  %5460 = vst [vmem:[#allocation10 + $0x248] sm:$0xff] %v5334_v6  ;;  %5477 = vst [vmem:[#allocation10 + $0x2d0] sm:$0xff] %v5351_v10 }
 0x257   :  { %5478 = vst [vmem:[#allocation10 + $0x2d8] sm:$0xff] %v5352_v13  ;;  %5495 = vst [vmem:[#allocation10 + $0x360] sm:$0x1] %v5369_v28  ;;  %v3621_v26 = vpop.f32.mrf.mxu0 }
 0x258   :  { %v4156_v23 = vadd.f32 %v4155_v34, %v4154_v7  ;;  %v4169_v27 = vadd.f32 %v4168_v57, %v4167_v3  ;;  %5496 = vst [vmem:[#allocation10 + $0x368] sm:$0x1] %v5370_v24 }
 0x259   :  { %v3623_v58 = vpop.f32.mrf.mxu0 }
 0x25a   :  { %v4258_v38 = vmul.f32 0.020408163, %v4156_v23  ;;  %v4259_v25 = vmul.f32 0.020408163, %v4169_v27  ;;  %v8238_v49 = vadd.f32 %v8033_v63, %v3623_v58 }
 0x25b   :  { %v3625_v40 = vpop.f32.mrf.mxu0 }
 0x25c   :  { %v8175_v42 = vsub.f32 %v9258_v33, %v4258_v38  ;;  %v8178_v2 = vsub.f32 %v9259_v62, %v4258_v38  ;;  %v8181_v55 = vsub.f32 %v9260_v16, %v4258_v38  ;;  %v8184_v10 = vsub.f32 %v8089_v39, %v4258_v38 }
 0x25d   :  { %v8187_v8 = vsub.f32 %v8097_v50, %v4258_v38  ;;  %v8190_v15 = vsub.f32 %v8105_v36, %v4258_v38  ;;  %v8193_v56 = vsub.f32 %v8124_v22, %v4258_v38  ;;  %v8202_v50 = vsub.f32 %v9264_v41, %v4259_v25  ;;  %v3627_v52 = vpop.f32.mrf.mxu0 }
 0x25e   :  { %v4402_v47 = vmul.f32 %v8175_v42, %v8175_v42  ;;  %v4420_v5 = vmul.f32 %v8178_v2, %v8178_v2  ;;  %v4438_v39 = vmul.f32 %v8181_v55, %v8181_v55  ;;  %v8205_v36 = vsub.f32 %v9265_v51, %v4259_v25 }
 0x25f   :  { %9261 = vst [vmem:[#allocation33_spill] sm:$0xff] %v8187_v8  ;;  %9262 = vst [vmem:[#allocation39_spill] sm:$0xff] %v8190_v15  ;;  %v4456_v22 = vmul.f32 %v8184_v10, %v8184_v10  ;;  %v8210_v7 = vsub.f32 %v9226_v46, %v4259_v25  ;;  %v8213_v3 = vsub.f32 %v8093_v45, %v4259_v25  ;;  %v3631_v57 = vpop.f32.mrf.mxu0 }
 0x260   :  { %9263 = vst [vmem:[#allocation51_spill] sm:$0xff] %v8193_v56  ;;  %v4648_v14 = vadd.f32 %v4420_v5, %v4402_v47  ;;  %v8216_v11 = vsub.f32 %v8101_v32, %v4259_v25  ;;  %v8219_v30 = vsub.f32 %v8120_v53, %v4259_v25  ;;  %v8222_v6 = vsub.f32 %v8128_v59, %v4259_v25 }
 0x261   :  { %v4403_v34 = vmul.f32 %v8202_v50, %v8202_v50  ;;  %v4474_v46 = vmul.f32 %v8187_v8, %v8187_v8  ;;  %v4421_v45 = vmul.f32 %v8205_v36, %v8205_v36  ;;  %v8231_v32 = vadd.f32 %v8015_v29, %v3621_v26  ;;  %v3633_v28 = vpop.f32.mrf.mxu0 }
 0x262   :  { %9266 = vst [vmem:[#allocation60_spill] sm:$0xff] %v8216_v11  ;;  %v4649_v18 = vadd.f32 %v4648_v14, %v4438_v39  ;;  %9267 = vst [vmem:[#allocation62_spill] sm:$0xff] %v8219_v30  ;;  %v4510_v53 = vmul.f32 %v8193_v56, %v8193_v56  ;;  %v4439_v59 = vmul.f32 %v8210_v7, %v8210_v7  ;;  %v9280_v56 = vld [vmem:[#allocation49_spill] sm:$0xff] }
 0x263   :  { %9268 = vst [vmem:[#allocation63_spill] sm:$0xff] %v8222_v6  ;;  %v4661_v24 = vadd.f32 %v4421_v45, %v4403_v34  ;;  %v8241_v23 = vadd.f32 %v8056_v17, %v3625_v40  ;;  %v8244_v27 = vadd.f32 %v8064_v1, %v3627_v52  ;;  %v8247_v29 = vadd.f32 %v8081_v19, %v3631_v57  ;;  %v3635_v62 = vpop.f32.mrf.mxu0 }
 0x264   :  { %v4650_v13 = vadd.f32 %v4649_v18, %v4456_v22  ;;  %v4492_v38 = vmul.f32 %v8190_v15, %v8190_v15  ;;  %v4457_v33 = vmul.f32 %v8213_v3, %v8213_v3  ;;  %v8254_v63 = vadd.f32 %v8085_v4, %v3633_v28 }
 0x265   :  { %v4662_v16 = vadd.f32 %v4661_v24, %v4439_v59  ;;  %v4170_v17 = vadd.f32 %v8241_v23, %v8231_v32  ;;  %v4183_v1 = vadd.f32 %v8244_v27, %v8238_v49  ;;  %v8261_v19 = vadd.f32 %v8107_v61, %v3635_v62  ;;  %v3637_v5 = vpop.f32.mrf.mxu0 }
 0x266   :  { %v4651_v26 = vadd.f32 %v4650_v13, %v4474_v46  ;;  %v4653_v58 = vsel %vm4018_vm0, %v4510_v53, 0.0  ;;  %v4475_v47 = vmul.f32 %v8216_v11, %v8216_v11  ;;  %v8269_v14 = vadd.f32 %v8130_v60, %v3637_v5 }
 0x267   :  { %v4663_v4 = vadd.f32 %v4662_v16, %v4457_v33  ;;  %v4171_v40 = vadd.f32 %v4170_v17, %v8247_v29  ;;  %v4184_v39 = vadd.f32 %v4183_v1, %v8254_v63  ;;  %v4493_v61 = vmul.f32 %v8219_v30, %v8219_v30  ;;  %v3641_v52 = vpop.f32.mrf.mxu0 }
 0x268   :  { %v4652_v25 = vadd.f32 %v4651_v26, %v4492_v38  ;;  %v4511_v51 = vmul.f32 %v8222_v6, %v8222_v6  ;;  %v8278_v57 = vadd.f32 %v8138_v12, %v3641_v52 }
 0x269   :  { %v4664_v22 = vadd.f32 %v4663_v4, %v4475_v47  ;;  %v4172_v18 = vadd.f32 %v4171_v40, %v8261_v19  ;;  %v4185_v34 = vadd.f32 %v4184_v39, %v8269_v14  ;;  %v3643_v45 = vpop.f32.mrf.mxu0 }
 0x26a   :  { %v4654_v41 = vadd.f32 %v4653_v58, %v4652_v25  ;;  %v8282_v13 = vadd.f32 %v8146_v43, %v3643_v45  ;;  %v4666_v28 = vsel %vm4018_vm0, %v4511_v51, 0.0 }
 0x26b   :  { %v4665_v60 = vadd.f32 %v4664_v22, %v4493_v61  ;;  %v4173_v53 = vadd.f32 %v4172_v18, %v8278_v57  ;;  %v3645_v24 = vpop.f32.mrf.mxu0 }
 0x26c   :  { %v4655_v46 = vrot.slane %v4654_v41, 4  ;;  %v4186_v26 = vadd.f32 %v4185_v34, %v8282_v13  ;;  %v8287_v33 = vadd.f32 %v8150_v37, %v3645_v24  ;;  %v9269_v24 = vld [vmem:[#allocation86_spill] sm:$0xff] }
 0x26d   :  { %v4667_v38 = vadd.f32 %v4666_v28, %v4665_v60  ;;  %v3647_v62 = vpop.f32.mrf.mxu0 }
 0x26e   :  { %v4656_v59 = vadd.f32 %v4655_v46, %v4654_v41  ;;  %v4174_v17 = vadd.f32 %v4173_v53, %v8287_v33  ;;  %v8291_v1 = vadd.f32 %v8159_v35, %v3647_v62 }
 0x26f   :  { %v4668_v16 = vrot.slane %v4667_v38, 4  ;;  %v3651_v25 = vpop.f32.mrf.mxu0 }
 0x270   :  { %v4657_v12 = vrot.slane %v4656_v59, 2  ;;  %v4187_v47 = vadd.f32 %v4186_v26, %v8291_v1  ;;  %v8295_v5 = vadd.f32 %v8167_v44, %v3651_v25 }
 0x271   :  { %v4669_v58 = vadd.f32 %v4668_v16, %v4667_v38  ;;  %v3653_v40 = vpop.f32.mrf.mxu0  ;;  %v9270_v38 = vld [vmem:[#allocation87_spill] sm:$0xff] }
 0x272   :  { %v4658_v43 = vadd.f32 %v4657_v12, %v4656_v59  ;;  %v4175_v39 = vsel %vm4018_vm0, %v8295_v5, 0.0  ;;  %v8300_v41 = vadd.f32 %v8171_v20, %v3653_v40  ;;  %v4400_v20 = vmul.f32 %v9269_v24, %v9269_v24 }
 0x273   :  { %v4670_v37 = vrot.slane %v4669_v58, 2  ;;  %v4176_v35 = vadd.f32 %v4175_v39, %v4174_v17  ;;  %v3655_v51 = vpop.f32.mrf.mxu0  ;;  %v4418_v26 = vmul.f32 %v9270_v38, %v9270_v38 }
 0x274   :  { %v4659_v4 = vrot.slane %v4658_v43, 1  ;;  %v4188_v22 = vsel %vm4018_vm0, %v8300_v41, 0.0 }
 0x275   :  { %v4671_v52 = vadd.f32 %v4670_v37, %v4669_v58  ;;  %v4177_v34 = vrot.slane %v4176_v35, 4  ;;  %v4189_v44 = vadd.f32 %v4188_v22, %v4187_v47  ;;  %v3656_v46 = vpop.f32.mrf.mxu0  ;;  %v4622_v39 = vadd.f32 %v4418_v26, %v4400_v20 }
 0x276   :  { %v4660_v61 = vadd.f32 %v4659_v4, %v4658_v43  ;;  %v3763_v60 = vpop.f32.mrf.mxu1  ;;  %v4401_v20 = vmul.f32 %v8059_v9, %v8059_v9 }
 0x277   :  { %v4672_v45 = vrot.slane %v4671_v52, 1  ;;  %v4178_v53 = vadd.f32 %v4177_v34, %v4176_v35  ;;  %v4190_v59 = vrot.slane %v4189_v44, 4  ;;  %v3834_v28 = vpop.f32.mrf.mxu0 }
 0x278   :  { %v4762_v18 = vmul.f32 0.020408163, %v4660_v61  ;;  %v3765_v62 = vpop.f32.mrf.mxu1  ;;  %v8316_v26 = vadd.f32 %v3834_v28, %v3763_v60 }
 0x279   :  { %v4673_v12 = vadd.f32 %v4672_v45, %v4671_v52  ;;  %v4179_v17 = vrot.slane %v4178_v53, 2  ;;  %v4191_v43 = vadd.f32 %v4190_v59, %v4189_v44  ;;  %v3836_v25 = vpop.f32.mrf.mxu0  ;;  %v4436_v52 = vmul.f32 %v8037_v31, %v8037_v31 }
 0x27a   :  { %v4780_v16 = vadd.f32 0.001, %v4762_v18  ;;  %v3767_v47 = vpop.f32.mrf.mxu1 }
 0x27b   :  { %v4763_v58 = vmul.f32 0.020408163, %v4673_v12  ;;  %v4180_v4 = vadd.f32 %v4179_v17, %v4178_v53  ;;  %v4192_v40 = vrot.slane %v4191_v43, 2  ;;  %v3838_v37 = vpop.f32.mrf.mxu0  ;;  %v8312_v53 = vadd.f32 %v4622_v39, %v4436_v52 }
 0x27c   :  { %v3769_v35 = vpop.f32.mrf.mxu1  ;;  %6668 = vrsqrt.f32 %v4780_v16  ;;  %v8310_v18 = vadd.f32 %v3838_v37, %v3767_v47  ;;  %v4419_v16 = vmul.f32 %v8062_v0, %v8062_v0  ;;  %v8322_v17 = vmul.f32 %v8067_v54, %v8067_v54 }
 0x27d   :  { %v4781_v61 = vadd.f32 0.001, %v4763_v58  ;;  %v4181_v51 = vrot.slane %v4180_v4, 1  ;;  %v4193_v22 = vadd.f32 %v4192_v40, %v4191_v43  ;;  %v3840_v34 = vpop.f32.mrf.mxu0 }
 0x27e   :  { %v3773_v44 = vpop.f32.mrf.mxu1  ;;  %v4196_v40 = vadd.f32 %v8310_v18, %v8316_v26  ;;  %v8328_v37 = vadd.f32 %v3840_v34, %v3769_v35 }
 0x27f   :  { %6670 = vrsqrt.f32 %v4781_v61  ;;  %v4182_v46 = vadd.f32 %v4181_v51, %v4180_v4  ;;  %v4194_v45 = vrot.slane %v4193_v22, 1  ;;  %v3844_v59 = vpop.f32.mrf.mxu0  ;;  %v8324_v4 = vadd.f32 %v3836_v25, %v3765_v62 }
 0x280   :  { %v3775_v12 = vpop.f32.mrf.mxu1  ;;  %v8330_v60 = vadd.f32 %v3844_v59, %v3773_v44 }
 0x281   :  { %v4260_v43 = vmul.f32 0.020408163, %v4182_v46  ;;  %v4195_v58 = vadd.f32 %v4194_v45, %v4193_v22  ;;  %v3846_v47 = vpop.f32.mrf.mxu0  ;;  %v4209_v46 = vadd.f32 %v8328_v37, %v8324_v4 }
 0x282   :  { %v3777_v28 = vpop.f32.mrf.mxu1  ;;  %v4197_v45 = vadd.f32 %v4196_v40, %v8330_v60 }
 0x283   :  { %v8333_v39 = vsub.f32 %v8231_v32, %v4260_v43  ;;  %v8336_v61 = vsub.f32 %v8241_v23, %v4260_v43  ;;  %v8339_v51 = vsub.f32 %v8247_v29, %v4260_v43  ;;  %v8342_v62 = vsub.f32 %v8261_v19, %v4260_v43  ;;  %v3848_v25 = vpop.f32.mrf.mxu0 }
 0x284   :  { %v8345_v22 = vsub.f32 %v8278_v57, %v4260_v43  ;;  %v8348_v35 = vsub.f32 %v8287_v33, %v4260_v43  ;;  %v8351_v34 = vsub.f32 %v8295_v5, %v4260_v43  ;;  %v4261_v32 = vmul.f32 0.020408163, %v4195_v58  ;;  %v3779_v52 = vpop.f32.mrf.mxu1 }
 0x285   :  { %v8355_v23 = vmul.f32 %v8070_v48, %v8070_v48  ;;  %v4635_v29 = vadd.f32 %v4419_v16, %v4401_v20  ;;  %v4404_v19 = vmul.f32 %v8333_v39, %v8333_v39  ;;  %v4422_v57 = vmul.f32 %v8336_v61, %v8336_v61  ;;  %v3850_v44 = vpop.f32.mrf.mxu0 }
 0x286   :  { %9271 = vst [vmem:[#allocation66_spill] sm:$0xff] %v8345_v22  ;;  %9272 = vst [vmem:[#allocation81_spill] sm:$0xff] %v8348_v35  ;;  %v4440_v33 = vmul.f32 %v8339_v51, %v8339_v51  ;;  %v8364_v5 = vsub.f32 %v8238_v49, %v4261_v32  ;;  %v3783_v59 = vpop.f32.mrf.mxu1  ;;  %v8370_v16 = vsub.f32 %v8244_v27, %v4261_v32 }
 0x287   :  { %9273 = vst [vmem:[#allocation57_spill] sm:$0xff] %v8351_v34  ;;  %v4674_v20 = vadd.f32 %v4422_v57, %v4404_v19  ;;  %v8373_v43 = vsub.f32 %v8254_v63, %v4261_v32  ;;  %v8376_v58 = vsub.f32 %v8269_v14, %v4261_v32  ;;  %v3854_v48 = vpop.f32.mrf.mxu0  ;;  %v8379_v49 = vsub.f32 %v8282_v13, %v4261_v32 }
 0x288   :  { %v8382_v54 = vsub.f32 %v8291_v1, %v4261_v32  ;;  %v8385_v40 = vsub.f32 %v8300_v41, %v4261_v32  ;;  %v8387_v19 = vadd.f32 %v3846_v47, %v3775_v12  ;;  %v3785_v27 = vpop.f32.mrf.mxu1  ;;  %v4458_v63 = vmul.f32 %v8342_v62, %v8342_v62 }
 0x289   :  { %9274 = vst [vmem:[#allocation58_spill] sm:$0xff] %v8376_v58  ;;  %9275 = vst [vmem:[#allocation59_spill] sm:$0xff] %v8379_v49  ;;  %v4675_v57 = vadd.f32 %v4674_v20, %v4440_v33  ;;  %v4405_v14 = vmul.f32 %v8364_v5, %v8364_v5  ;;  %v4423_v13 = vmul.f32 %v8370_v16, %v8370_v16  ;;  %v3856_v31 = vpop.f32.mrf.mxu0  ;;  %v8395_v0 = vpop.eup %6668 }
 0x28a   :  { %9276 = vst [vmem:[#allocation61_spill] sm:$0xff] %v8382_v54  ;;  %9277 = vst [vmem:[#allocation15_spill] sm:$0xff] %v8385_v40  ;;  %v4476_v1 = vmul.f32 %v8345_v22, %v8345_v22  ;;  %v4494_v41 = vmul.f32 %v8348_v35, %v8348_v35  ;;  %v4512_v12 = vmul.f32 %v8351_v34, %v8351_v34  ;;  %v3787_v32 = vpop.f32.mrf.mxu1 }
 0x28b   :  { %v4441_v47 = vmul.f32 %v8373_v43, %v8373_v43  ;;  %v4676_v20 = vadd.f32 %v4675_v57, %v4458_v63  ;;  %v4459_v9 = vmul.f32 %v8376_v58, %v8376_v58  ;;  %v4687_v38 = vadd.f32 %v4423_v13, %v4405_v14  ;;  %v3858_v6 = vpop.f32.mrf.mxu0 }
 0x28c   :  { %v8405_v33 = vpop.eup %6670  ;;  %v8409_v24 = vadd.f32 %v3848_v25, %v3777_v28  ;;  %v4210_v35 = vadd.f32 %v4209_v46, %v8387_v19  ;;  %v8414_v34 = vadd.f32 %v3850_v44, %v3779_v52  ;;  %v8416_v30 = vadd.f32 %v3854_v48, %v3783_v59  ;;  %v3789_v15 = vpop.f32.mrf.mxu1 }
 0x28d   :  { %v4677_v22 = vadd.f32 %v4676_v20, %v4476_v1  ;;  %v4688_v11 = vadd.f32 %v4687_v38, %v4441_v47  ;;  %v8419_v57 = vadd.f32 %v3856_v31, %v3785_v27  ;;  %v3860_v14 = vpop.f32.mrf.mxu0  ;;  %v4636_v28 = vadd.f32 %v4635_v29, %v8322_v17 }
 0x28e   :  { %v4198_v63 = vadd.f32 %v4197_v45, %v8409_v24  ;;  %v4477_v25 = vmul.f32 %v8379_v49, %v8379_v49  ;;  %v4211_v13 = vadd.f32 %v4210_v35, %v8414_v34  ;;  %v8425_v46 = vadd.f32 %v3858_v6, %v3787_v32  ;;  %v3793_v52 = vpop.f32.mrf.mxu1 }
 0x28f   :  { %v4678_v48 = vadd.f32 %v4677_v22, %v4494_v41  ;;  %v4689_v44 = vadd.f32 %v4688_v11, %v4459_v9  ;;  %v8428_v38 = vadd.f32 %v3860_v14, %v3789_v15  ;;  %v3864_v45 = vpop.f32.mrf.mxu0  ;;  %v4679_v31 = vsel %vm4018_vm0, %v4512_v12, 0.0 }
 0x290   :  { %v4199_v59 = vadd.f32 %v4198_v63, %v8416_v30  ;;  %v4495_v17 = vmul.f32 %v8382_v54, %v8382_v54  ;;  %v4513_v29 = vmul.f32 %v8385_v40, %v8385_v40  ;;  %v8435_v27 = vadd.f32 %v3864_v45, %v3793_v52  ;;  %v3795_v6 = vpop.f32.mrf.mxu1 }
 0x291   :  { %v4680_v35 = vadd.f32 %v4679_v31, %v4678_v48  ;;  %v4690_v1 = vadd.f32 %v4689_v44, %v4477_v25  ;;  %v4212_v9 = vadd.f32 %v4211_v13, %v8419_v57  ;;  %v3866_v15 = vpop.f32.mrf.mxu0  ;;  %v4454_v22 = vmul.f32 %v8041_v21, %v8041_v21  ;;  %v9278_v48 = vld [vmem:[#allocation38_spill] sm:$0xff] }
 0x292   :  { %v4200_v11 = vadd.f32 %v4199_v59, %v8425_v46  ;;  %v4637_v41 = vadd.f32 %v4636_v28, %v8355_v23  ;;  %v4201_v12 = vsel %vm4018_vm0, %v8435_v27, 0.0  ;;  %v8444_v47 = vadd.f32 %v3866_v15, %v3795_v6  ;;  %v3797_v32 = vpop.f32.mrf.mxu1 }
 0x293   :  { %v4681_v20 = vrot.slane %v4680_v35, 4  ;;  %v4691_v63 = vadd.f32 %v4690_v1, %v4495_v17  ;;  %v4213_v14 = vadd.f32 %v4212_v9, %v8428_v38  ;;  %v3868_v13 = vpop.f32.mrf.mxu0  ;;  %v4624_v52 = vadd.f32 %v8312_v53, %v4454_v22  ;;  %v9279_v1 = vld [vmem:[#allocation47_spill] sm:$0xff] }
 0x294   :  { %v4202_v25 = vadd.f32 %v4201_v12, %v4200_v11  ;;  %v4473_v44 = vmul.f32 %v9278_v48, %v9278_v48  ;;  %v4692_v59 = vsel %vm4018_vm0, %v4513_v29, 0.0  ;;  %v4214_v23 = vsel %vm4018_vm0, %v8444_v47, 0.0  ;;  %v3798_v28 = vpop.f32.mrf.mxu1  ;;  %v9281_v48 = vld [vmem:[#allocation32_spill] sm:$0xff] }
 0x295   :  { %v4682_v45 = vadd.f32 %v4681_v20, %v4680_v35  ;;  %v4693_v31 = vadd.f32 %v4692_v59, %v4691_v63  ;;  %v4215_v15 = vadd.f32 %v4214_v23, %v4213_v14  ;;  %v3869_v17 = vpop.f32.mrf.mxu0  ;;  %v4472_v9 = vmul.f32 %v9279_v1, %v9279_v1  ;;  %v9282_v59 = vld [vmem:[#allocation54_spill] sm:$0xff] }
 0x296   :  { %v4203_v6 = vrot.slane %v4202_v25, 4  ;;  %v4638_v11 = vadd.f32 %v4637_v41, %v4473_v44  ;;  %v4491_v29 = vmul.f32 %v9280_v56, %v9280_v56  ;;  %v4509_v28 = vmul.f32 %v9281_v48, %v9281_v48  ;;  %v9283_v17 = vld [vmem:[#allocation30_spill] sm:$0xff] }
 0x297   :  { %v4683_v12 = vrot.slane %v4682_v45, 2  ;;  %v4694_v53 = vrot.slane %v4693_v31, 4  ;;  %v4216_v32 = vrot.slane %v4215_v15, 4  ;;  %v4625_v13 = vadd.f32 %v4624_v52, %v4472_v9 }
 0x298   :  { %v4204_v22 = vadd.f32 %v4203_v6, %v4202_v25  ;;  %v4490_v23 = vmul.f32 %v9282_v59, %v9282_v59  ;;  %v4508_v41 = vmul.f32 %v9283_v17, %v9283_v17  ;;  %v4639_v44 = vadd.f32 %v4638_v11, %v4491_v29 }
 0x299   :  { %v4684_v35 = vadd.f32 %v4683_v12, %v4682_v45  ;;  %v4695_v20 = vadd.f32 %v4694_v53, %v4693_v31  ;;  %v4217_v14 = vadd.f32 %v4216_v32, %v4215_v15  ;;  %v4640_v56 = vsel %vm4018_vm0, %v4509_v28, 0.0 }
 0x29a   :  { %v4205_v63 = vrot.slane %v4204_v22, 2  ;;  %v4626_v1 = vadd.f32 %v4625_v13, %v4490_v23  ;;  %v4627_v15 = vsel %vm4018_vm0, %v4508_v41, 0.0  ;;  %v4641_v12 = vadd.f32 %v4640_v56, %v4639_v44 }
 0x29b   :  { %v4685_v25 = vrot.slane %v4684_v35, 1  ;;  %v4696_v6 = vrot.slane %v4695_v20, 2  ;;  %v4218_v9 = vrot.slane %v4217_v14, 2 }
 0x29c   :  { %v4206_v52 = vadd.f32 %v4205_v63, %v4204_v22  ;;  %v4628_v29 = vadd.f32 %v4627_v15, %v4626_v1  ;;  %v4642_v63 = vrot.slane %v4641_v12, 4 }
 0x29d   :  { %v4686_v21 = vadd.f32 %v4685_v25, %v4684_v35  ;;  %v4697_v48 = vadd.f32 %v4696_v6, %v4695_v20  ;;  %v4219_v31 = vadd.f32 %v4218_v9, %v4217_v14 }
 0x29e   :  { %v4207_v45 = vrot.slane %v4206_v52, 1  ;;  %v4629_v23 = vrot.slane %v4628_v29, 4  ;;  %v4643_v44 = vadd.f32 %v4642_v63, %v4641_v12 }
 0x29f   :  { %v8465_v53 = vpop.f32.mrf.mxu1  ;;  %v4764_v32 = vmul.f32 0.020408163, %v4686_v21  ;;  %v4698_v59 = vrot.slane %v4697_v48, 1  ;;  %v4220_v11 = vrot.slane %v4219_v31, 1 }
 0x2a0   :  { %v4208_v17 = vadd.f32 %v4207_v45, %v4206_v52  ;;  %v4630_v52 = vadd.f32 %v4629_v23, %v4628_v29 }
 0x2a1   :  { %v8467_v40 = vpop.f32.mrf.mxu1  ;;  %v4699_v22 = vadd.f32 %v4698_v59, %v4697_v48  ;;  %v4782_v28 = vadd.f32 0.001, %v4764_v32  ;;  %v4221_v21 = vadd.f32 %v4220_v11, %v4219_v31  ;;  %v4644_v11 = vrot.slane %v4643_v44, 2 }
 0x2a2   :  { %v4262_v13 = vmul.f32 0.020408163, %v4208_v17  ;;  %v4631_v63 = vrot.slane %v4630_v52, 2 }
 0x2a3   :  { %v8469_v35 = vpop.f32.mrf.mxu1  ;;  %v4765_v20 = vmul.f32 0.020408163, %v4699_v22  ;;  %6672 = vrsqrt.f32 %v4782_v28 }
 0x2a4   :  { %v8472_v14 = vsub.f32 %v8316_v26, %v4262_v13  ;;  %v8475_v56 = vsub.f32 %v8310_v18, %v4262_v13  ;;  %v8478_v41 = vsub.f32 %v8330_v60, %v4262_v13  ;;  %v8483_v59 = vsub.f32 %v8409_v24, %v4262_v13 }
 0x2a5   :  { %v8480_v1 = vpop.f32.mrf.mxu1  ;;  %v4783_v48 = vadd.f32 0.001, %v4765_v20  ;;  %v8490_v18 = vsub.f32 %v8416_v30, %v4262_v13  ;;  %v4263_v24 = vmul.f32 0.020408163, %v4221_v21  ;;  %v8497_v9 = vsub.f32 %v8425_v46, %v4262_v13 }
 0x2a6   :  { %9284 = vst [vmem:[#allocation65_spill] sm:$0xff] %v8483_v59  ;;  %v4406_v17 = vmul.f32 %v8472_v14, %v8472_v14  ;;  %v4424_v26 = vmul.f32 %v8475_v56, %v8475_v56  ;;  %v4442_v60 = vmul.f32 %v8478_v41, %v8478_v41  ;;  %v8500_v45 = vsub.f32 %v8435_v27, %v4262_v13 }
 0x2a7   :  { %9285 = vst [vmem:[#allocation68_spill] sm:$0xff] %v8490_v18  ;;  %v8492_v25 = vpop.f32.mrf.mxu1  ;;  %6674 = vrsqrt.f32 %v4783_v48  ;;  %9286 = vst [vmem:[#allocation83_spill] sm:$0xff] %v8497_v9  ;;  %v4460_v30 = vmul.f32 %v8483_v59, %v8483_v59  ;;  %v8507_v12 = vsub.f32 %v8324_v4, %v4263_v24  ;;  %v8510_v32 = vsub.f32 %v8328_v37, %v4263_v24 }
 0x2a8   :  { %v4700_v6 = vadd.f32 %v4424_v26, %v4406_v17  ;;  %9287 = vst [vmem:[#allocation78_spill] sm:$0xff] %v8500_v45  ;;  %v4478_v46 = vmul.f32 %v8490_v18, %v8490_v18  ;;  %v8515_v29 = vsub.f32 %v8387_v19, %v4263_v24  ;;  %v8520_v13 = vsub.f32 %v8414_v34, %v4263_v24 }
 0x2a9   :  { %v8502_v31 = vpop.f32.mrf.mxu1  ;;  %v4407_v4 = vmul.f32 %v8507_v12, %v8507_v12  ;;  %v4425_v37 = vmul.f32 %v8510_v32, %v8510_v32  ;;  %v4496_v28 = vmul.f32 %v8497_v9, %v8497_v9  ;;  %v4514_v19 = vmul.f32 %v8500_v45, %v8500_v45 }
 0x2aa   :  { %v4701_v15 = vadd.f32 %v4700_v6, %v4442_v60  ;;  %9288 = vst [vmem:[#allocation84_spill] sm:$0xff] %v8520_v13  ;;  %v8533_v23 = vsub.f32 %v8419_v57, %v4263_v24  ;;  %v4443_v34 = vmul.f32 %v8515_v29, %v8515_v29  ;;  %v4645_v17 = vadd.f32 %v4644_v11, %v4643_v44 }
 0x2ab   :  { %v8517_v27 = vpop.f32.mrf.mxu1  ;;  %v4713_v48 = vadd.f32 %v4425_v37, %v4407_v4  ;;  %v8538_v26 = vsub.f32 %v8444_v47, %v4263_v24  ;;  %v4632_v57 = vadd.f32 %v4631_v63, %v4630_v52 }
 0x2ac   :  { %v4702_v22 = vadd.f32 %v4701_v15, %v4460_v30  ;;  %9289 = vst [vmem:[#allocation85_spill] sm:$0xff] %v8533_v23  ;;  %v8543_v30 = vsub.f32 %v8428_v38, %v4263_v24  ;;  %v4461_v15 = vmul.f32 %v8520_v13, %v8520_v13  ;;  %v4479_v47 = vmul.f32 %v8533_v23, %v8533_v23 }
 0x2ad   :  { %v8530_v20 = vpop.f32.mrf.mxu1  ;;  %9290 = vst [vmem:[#allocation27_spill] sm:$0xff] %v8538_v26  ;;  %v4646_v11 = vrot.slane %v4645_v17, 1  ;;  %v4515_v37 = vmul.f32 %v8538_v26, %v8538_v26 }
 0x2ae   :  { %v4703_v21 = vadd.f32 %v4702_v22, %v4478_v46  ;;  %9291 = vst [vmem:[#allocation34_spill] sm:$0xff] %v8543_v30  ;;  %v4714_v46 = vadd.f32 %v4713_v48, %v4443_v34  ;;  %v4705_v22 = vsel %vm4018_vm0, %v4514_v19, 0.0  ;;  %v4497_v52 = vmul.f32 %v8543_v30, %v8543_v30 }
 0x2af   :  { %v8540_v60 = vpop.f32.mrf.mxu1 }
 0x2b0   :  { %v4704_v6 = vadd.f32 %v4703_v21, %v4496_v28  ;;  %v4715_v44 = vadd.f32 %v4714_v46, %v4461_v15  ;;  %v8556_v24 = vpop.eup %6672  ;;  %v4633_v21 = vrot.slane %v4632_v57, 1  ;;  %v4647_v46 = vadd.f32 %v4646_v11, %v4645_v17 }
 0x2b1   :  { %v8548_v45 = vpop.f32.mrf.mxu1 }
 0x2b2   :  { %v4706_v4 = vadd.f32 %v4705_v22, %v4704_v6  ;;  %v4716_v63 = vadd.f32 %v4715_v44, %v4479_v47  ;;  %v4718_v22 = vsel %vm4018_vm0, %v4515_v37, 0.0  ;;  %v4634_v18 = vadd.f32 %v4633_v21, %v4632_v57 }
 0x2b3   :  { %v8554_v38 = vpop.f32.mrf.mxu1  ;;  %v4761_v8 = vmul.f32 0.020408163, %v4647_v46 }
 0x2b4   :  { %v4707_v28 = vrot.slane %v4706_v4, 4  ;;  %v8560_v19 = vpop.eup %6674  ;;  %v4717_v15 = vadd.f32 %v4716_v63, %v4497_v52 }
 0x2b5   :  { %v8562_v34 = vpop.f32.mrf.mxu1  ;;  %v4779_v63 = vadd.f32 0.001, %v4761_v8 }
 0x2b6   :  { %v4708_v6 = vadd.f32 %v4707_v28, %v4706_v4  ;;  %v4719_v54 = vadd.f32 %v4718_v22, %v4717_v15  ;;  %v4760_v4 = vmul.f32 0.020408163, %v4634_v18 }
 0x2b7   :  { %v4006_v26 = vpop.f32.mrf.mxu1  ;;  %v3905_v23 = vpop.f32.mrf.mxu0  ;;  %6676 = vrsqrt.f32 %v4779_v63 }
 0x2b8   :  { %v4709_v9 = vrot.slane %v4708_v6, 2  ;;  %v4720_v44 = vrot.slane %v4719_v54, 4  ;;  %v8570_v17 = vadd.f32 %v8465_v53, %v3905_v23 }
 0x2b9   :  { %v8567_v30 = vpop.f32.mrf.mxu1  ;;  %v3907_v49 = vpop.f32.mrf.mxu0 }
 0x2ba   :  { %v4710_v47 = vadd.f32 %v4709_v9, %v4708_v6  ;;  %v4721_v58 = vadd.f32 %v4720_v44, %v4719_v54  ;;  %v4778_v6 = vadd.f32 0.001, %v4760_v4 }
 0x2bb   :  { %v4010_v13 = vpop.f32.mrf.mxu1  ;;  %v3909_v48 = vpop.f32.mrf.mxu0 }
 0x2bc   :  { %v4711_v59 = vrot.slane %v4710_v47, 1  ;;  %v8573_v11 = vadd.f32 %v8469_v35, %v3909_v48  ;;  %v4722_v57 = vrot.slane %v4721_v58, 2  ;;  %6678 = vrsqrt.f32 %v4778_v6 }
 0x2bd   :  { %v4011_v37 = vpop.f32.mrf.mxu1  ;;  %v3911_v52 = vpop.f32.mrf.mxu0 }
 0x2be   :  { %v4712_v28 = vadd.f32 %v4711_v59, %v4710_v47  ;;  %v4222_v9 = vadd.f32 %v8573_v11, %v8570_v17  ;;  %v4723_v21 = vadd.f32 %v4722_v57, %v4721_v58  ;;  %v8578_v22 = vadd.f32 %v8480_v1, %v3911_v52 }
 0x2bf   :  { %v3915_v13 = vpop.f32.mrf.mxu0  ;;  %v8584_v47 = vadd.f32 %v8467_v40, %v3907_v49 }
 0x2c0   :  { %v4766_v54 = vmul.f32 0.020408163, %v4712_v28  ;;  %v4724_v15 = vrot.slane %v4723_v21, 1  ;;  %9292 = vst [vmem:[#allocation45_spill] sm:$0xff] %v8578_v22  ;;  %v8581_v8 = vadd.f32 %v8492_v25, %v3915_v13 }
 0x2c1   :  { %v3917_v18 = vpop.f32.mrf.mxu0  ;;  %9293 = vst [vmem:[#allocation52_spill] sm:$0xff] %v8584_v47  ;;  %v4235_v1 = vadd.f32 %v8578_v22, %v8584_v47  ;;  %v9325_v22 = vld [vmem:[#allocation39_spill] sm:$0xff] }
 0x2c2   :  { %v4725_v53 = vadd.f32 %v4724_v15, %v4723_v21  ;;  %v4784_v35 = vadd.f32 0.001, %v4766_v54  ;;  %v8587_v44 = vadd.f32 %v8502_v31, %v3917_v18  ;;  %v4223_v28 = vadd.f32 %v4222_v9, %v8581_v8 }
 0x2c3   :  { %v3919_v23 = vpop.f32.mrf.mxu0 }
 0x2c4   :  { %v4767_v48 = vmul.f32 0.020408163, %v4725_v53  ;;  %6680 = vrsqrt.f32 %v4784_v35  ;;  %9294 = vst [vmem:[#allocation28_spill] sm:$0xff] %v8587_v44  ;;  %v8590_v4 = vadd.f32 %v8517_v27, %v3919_v23  ;;  %v4236_v40 = vadd.f32 %v4235_v1, %v8587_v44  ;;  %v6677_v21 = vpop.eup %6676  ;;  %v9324_v44 = vld [vmem:[#allocation85_spill] sm:$0xff] }
 0x2c5   :  { %v3921_v46 = vpop.f32.mrf.mxu0 }
 0x2c6   :  { %v4785_v59 = vadd.f32 0.001, %v4767_v48  ;;  %v8596_v25 = vadd.f32 %v8530_v20, %v3921_v46  ;;  %v4224_v31 = vadd.f32 %v4223_v28, %v8590_v4  ;;  %v9302_v46 = vld [vmem:[#allocation67_spill] sm:$0xff] }
 0x2c7   :  { %v3925_v58 = vpop.f32.mrf.mxu0 }
 0x2c8   :  { %6682 = vrsqrt.f32 %v4785_v59  ;;  %9295 = vst [vmem:[#allocation35_spill] sm:$0xff] %v8596_v25  ;;  %v8599_v57 = vadd.f32 %v8540_v60, %v3925_v58  ;;  %v4237_v9 = vadd.f32 %v4236_v40, %v8596_v25  ;;  %v9323_v25 = vld [vmem:[#allocation68_spill] sm:$0xff] }
 0x2c9   :  { %v3927_v37 = vpop.f32.mrf.mxu0  ;;  %v6679_v54 = vpop.eup %6678 }
 0x2ca   :  { %9296 = vst [vmem:[#allocation46_spill] sm:$0xff] %v8599_v57  ;;  %v8604_v27 = vadd.f32 %v8548_v45, %v3927_v37  ;;  %v4225_v20 = vadd.f32 %v4224_v31, %v8599_v57 }
 0x2cb   :  { %v3929_v49 = vpop.f32.mrf.mxu0 }
 0x2cc   :  { %9297 = vst [vmem:[#allocation53_spill] sm:$0xff] %v8604_v27  ;;  %v8607_v52 = vadd.f32 %v8554_v38, %v3929_v49  ;;  %v4238_v15 = vadd.f32 %v4237_v9, %v8604_v27  ;;  %v4876_v38 = vcombine.low %v6679_v54, %v6677_v21  ;;  %v9322_v27 = vld [vmem:[#allocation59_spill] sm:$0xff] }
 0x2cd   :  { %v3931_v63 = vpop.f32.mrf.mxu0 }
 0x2ce   :  { %9298 = vst [vmem:[#allocation64_spill] sm:$0xff] %v8607_v52  ;;  %v8612_v60 = vadd.f32 %v8562_v34, %v3931_v63  ;;  %v4226_v45 = vadd.f32 %v4225_v20, %v8607_v52  ;;  %v9304_v20 = vcombine.low %v8556_v24, %v8560_v19  ;;  %v9306_v19 = vld [vmem:[#allocation69_spill] sm:$0xff] }
 0x2cf   :  { %v3935_v13 = vpop.f32.mrf.mxu0 }
 0x2d0   :  { %9299 = vst [vmem:[#allocation82_spill] sm:$0xff] %v8612_v60  ;;  %v8614_v6 = vadd.f32 %v4006_v26, %v3935_v13  ;;  %v4239_v35 = vadd.f32 %v4238_v15, %v8612_v60  ;;  %v9303_v26 = vcombine.low %v8395_v0, %v8405_v33  ;;  %v4900_v0 = vrot.slane %v9304_v20, %v9302_v46  ;;  %v9321_v60 = vld [vmem:[#allocation66_spill] sm:$0xff] }
 0x2d1   :  { %v3937_v18 = vpop.f32.mrf.mxu0  ;;  %v6681_v37 = vpop.eup %6680 }
 0x2d2   :  { %9300 = vst [vmem:[#allocation80_spill] sm:$0xff] %v8614_v6  ;;  %v4227_v53 = vsel %vm4018_vm0, %v8614_v6, 0.0  ;;  %v8621_v23 = vadd.f32 %v8567_v30, %v3937_v18  ;;  %v4893_v59 = vrot.slane %v9303_v26, %v9302_v46  ;;  %v4886_v30 = vrot.slane %v4876_v38, %v9302_v46  ;;  %v4807_v26 = vld [vmem:[#allocation7 + $0x8] sm:$0xff] }
 0x2d3   :  { %v4228_v34 = vadd.f32 %v4227_v53, %v4226_v45  ;;  %v3939_v48 = vpop.f32.mrf.mxu0 }
 0x2d4   :  { %9301 = vst [vmem:[#allocation73_spill] sm:$0xff] %v8621_v23  ;;  %v4240_v58 = vsel %vm4018_vm0, %v8621_v23, 0.0  ;;  %v4908_v9 = vcombine.low %v4886_v30, %v4893_v59  ;;  %v9320_v23 = vld [vmem:[#allocation60_spill] sm:$0xff] }
 0x2d5   :  { %v4229_v1 = vrot.slane %v4228_v34, 4  ;;  %v4241_v28 = vadd.f32 %v4240_v58, %v4239_v35  ;;  %v3940_v49 = vpop.f32.mrf.mxu0  ;;  %v6683_v40 = vpop.eup %6682  ;;  %v8638_v35 = vld [vmem:[#allocation8 + $0x8] sm:$0xff] }
 0x2d6   :  { %v4879_v31 = vcombine.low %v6681_v37, %v6683_v40  ;;  %v4916_v53 = vrot.slane %v4908_v9, %v9302_v46  ;;  %9305 = vst [vmem:[#allocation16_spill] sm:$0xff] %v8638_v35  ;;  %v8642_v37 = vrot.slane %v8638_v35, %v9306_v19  ;;  %v9309_v40 = vld [vmem:[#allocation71_spill] sm:$0xff] }
 0x2d7   :  { %v4230_v63 = vadd.f32 %v4229_v1, %v4228_v34  ;;  %v4242_v21 = vrot.slane %v4241_v28, 4  ;;  %v8652_v30 = vrot.slane %v8638_v35, %v9309_v40  ;;  %v9311_v9 = vld [vmem:[#allocation75_spill] sm:$0xff] }
 0x2d8   :  { %v4907_v33 = vrot.slane %v4879_v31, %v9302_v46  ;;  %v8662_v20 = vrot.slane %v8638_v35, %v9311_v9 }
 0x2d9   :  { %v4231_v13 = vrot.slane %v4230_v63, 2  ;;  %v4243_v54 = vadd.f32 %v4242_v21, %v4241_v28  ;;  %v9308_v28 = vld [vmem:[#allocation70_spill] sm:$0xff] }
 0x2da   :  { %v4909_v15 = vcombine.low %v4900_v0, %v4907_v33  ;;  %v8648_v49 = vrot.slane %v8638_v35, %v9308_v28  ;;  %v9312_v0 = vld [vmem:[#allocation76_spill] sm:$0xff] }
 0x2db   :  { %v4232_v45 = vadd.f32 %v4231_v13, %v4230_v63  ;;  %v4244_v18 = vrot.slane %v4243_v54, 2  ;;  %v9310_v63 = vld [vmem:[#allocation72_spill] sm:$0xff]  ;;  %v8666_v33 = vrot.slane %v8638_v35, %v9312_v0 }
 0x2dc   :  { %v4923_v38 = vrot.slane %v4909_v15, %v9302_v46  ;;  %v8658_v21 = vrot.slane %v8638_v35, %v9310_v63  ;;  %v9318_v46 = vld [vmem:[#allocation84_spill] sm:$0xff] }
 0x2dd   :  { %v4233_v34 = vrot.slane %v4232_v45, 1  ;;  %v4245_v48 = vadd.f32 %v4244_v18, %v4243_v54 }
 0x2de   :  { %v4924_v59 = vcombine.low %v4916_v53, %v4923_v38 }
 0x2df   :  { %v4234_v58 = vadd.f32 %v4233_v34, %v4232_v45  ;;  %v4246_v24 = vrot.slane %v4245_v48, 1 }
 0x2e0   :  { %v8644_v1 = vmul.f32 %v4924_v59, %v4807_v26 }
 0x2e1   :  { %v8654_v31 = vmul.f32 0.020408163, %v4234_v58  ;;  %v8668_v13 = vadd.f32 %v4246_v24, %v4245_v48 }
 0x2e2   :  { %9307 = vst [vmem:[#allocation23_spill] sm:$0xff] %v8644_v1  ;;  %v4992_v54 = vrot.slane %v8644_v1, %v9306_v19  ;;  %v4996_v15 = vrot.slane %v8644_v1, %v9308_v28  ;;  %v5000_v45 = vrot.slane %v8644_v1, %v9309_v40  ;;  %v5004_v18 = vrot.slane %v8644_v1, %v9310_v63 }
 0x2e3   :  { %9313 = vst [vmem:[#allocation17_spill] sm:$0xff] %v8668_v13  ;;  %v5008_v53 = vrot.slane %v8644_v1, %v9311_v9  ;;  %v5012_v38 = vrot.slane %v8644_v1, %v9312_v0  ;;  %v8684_v34 = vsub.f32 %v8570_v17, %v8654_v31  ;;  %v8688_v48 = vsub.f32 %v8573_v11, %v8654_v31  ;;  %v9316_v9 = vld [vmem:[#allocation58_spill] sm:$0xff]  ;;  %v9317_v0 = vld [vmem:[#allocation65_spill] sm:$0xff] }
 0x2e4   :  { %v5049_v26 = vmul.f32 %v4992_v54, %v8175_v42  ;;  %v5050_v59 = vmul.f32 %v4996_v15, %v8202_v50  ;;  %v5051_v58 = vmul.f32 %v5000_v45, %v8333_v39  ;;  %v5052_v24 = vmul.f32 %v5004_v18, %v8364_v5  ;;  %v9319_v1 = vld [vmem:[#allocation33_spill] sm:$0xff] }
 0x2e5   :  { %9314 = vst [vmem:[#allocation43_spill] sm:$0xff] %v8684_v34  ;;  %9315 = vst [vmem:[#allocation18_spill] sm:$0xff] %v8688_v48  ;;  %v5053_v19 = vmul.f32 %v5008_v53, %v8472_v14  ;;  %v5054_v28 = vmul.f32 %v5012_v38, %v8507_v12  ;;  %v5067_v40 = vmul.f32 %v4992_v54, %v8178_v2 }
 0x2e6   :  { %v5068_v17 = vmul.f32 %v4996_v15, %v8205_v36  ;;  %v5069_v63 = vmul.f32 %v5000_v45, %v8336_v61  ;;  %v5070_v11 = vmul.f32 %v5004_v18, %v8370_v16  ;;  %v5071_v42 = vmul.f32 %v5008_v53, %v8475_v56 }
 0x2e7   :  { %v5072_v50 = vmul.f32 %v5012_v38, %v8510_v32  ;;  %v5085_v39 = vmul.f32 %v4992_v54, %v8181_v55  ;;  %v5086_v5 = vmul.f32 %v4996_v15, %v8210_v7  ;;  %v5087_v14 = vmul.f32 %v5000_v45, %v8339_v51 }
 0x2e8   :  { %v5088_v12 = vmul.f32 %v5004_v18, %v8373_v43  ;;  %v5089_v2 = vmul.f32 %v5008_v53, %v8478_v41  ;;  %v5090_v36 = vmul.f32 %v5012_v38, %v8515_v29  ;;  %v5103_v61 = vmul.f32 %v4992_v54, %v8184_v10 }
 0x2e9   :  { %v5104_v16 = vmul.f32 %v4996_v15, %v8213_v3  ;;  %v5105_v56 = vmul.f32 %v5000_v45, %v8342_v62  ;;  %v5106_v32 = vmul.f32 %v5004_v18, %v9316_v9  ;;  %v5107_v55 = vmul.f32 %v5008_v53, %v9317_v0  ;;  %v9326_v9 = vld [vmem:[#allocation62_spill] sm:$0xff]  ;;  %v9327_v0 = vld [vmem:[#allocation81_spill] sm:$0xff] }
 0x2ea   :  { %v5108_v7 = vmul.f32 %v5012_v38, %v9318_v46  ;;  %v5121_v51 = vmul.f32 %v4992_v54, %v9319_v1  ;;  %v5122_v43 = vmul.f32 %v4996_v15, %v9320_v23  ;;  %v5123_v41 = vmul.f32 %v5000_v45, %v9321_v60  ;;  %v9328_v1 = vld [vmem:[#allocation61_spill] sm:$0xff]  ;;  %v9329_v23 = vld [vmem:[#allocation83_spill] sm:$0xff] }
 0x2eb   :  { %v5124_v29 = vmul.f32 %v5004_v18, %v9322_v27  ;;  %v5125_v10 = vmul.f32 %v5008_v53, %v9323_v25  ;;  %v5126_v3 = vmul.f32 %v5012_v38, %v9324_v44  ;;  %v8721_v62 = vmul.f32 %v4992_v54, %v9325_v22  ;;  %v9330_v27 = vld [vmem:[#allocation34_spill] sm:$0xff]  ;;  %v9331_v25 = vld [vmem:[#allocation51_spill] sm:$0xff] }
 0x2ec   :  { %v8724_v47 = vmul.f32 %v4996_v15, %v9326_v9  ;;  %v8727_v46 = vmul.f32 %v5000_v45, %v9327_v0  ;;  %v8730_v52 = vmul.f32 %v5004_v18, %v9328_v1  ;;  %v8733_v60 = vmul.f32 %v5008_v53, %v9329_v23  ;;  %v9332_v22 = vld [vmem:[#allocation63_spill] sm:$0xff]  ;;  %v9333_v9 = vld [vmem:[#allocation57_spill] sm:$0xff]  ;;  %v9335_v1 = vld [vmem:[#allocation78_spill] sm:$0xff] }
 0x2ed   :  { %v8736_v13 = vmul.f32 %v5012_v38, %v9330_v27  ;;  %v8739_v44 = vmul.f32 %v4992_v54, %v9331_v25  ;;  %v8742_v48 = vmul.f32 %v4996_v15, %v9332_v22  ;;  %v8745_v34 = vmul.f32 %v5000_v45, %v9333_v9  ;;  %v9334_v0 = vld [vmem:[#allocation15_spill] sm:$0xff] }
 0x2ee   :  { %v8748_v6 = vmul.f32 %v5004_v18, %v9334_v0  ;;  %v8751_v35 = vmul.f32 %v5008_v53, %v9335_v1  ;;  %v9336_v23 = vld [vmem:[#allocation27_spill] sm:$0xff]  ;;  %v5271_v27 = vadd.f32 %v8642_v37, %v5049_v26  ;;  %v5272_v54 = vadd.f32 %v8648_v49, %v5050_v59  ;;  %v9345_v1 = vld [vmem:[#allocation50_spill] sm:$0xff] }
 0x2ef   :  { %v8754_v57 = vmul.f32 %v5012_v38, %v9336_v23  ;;  %v5273_v25 = vadd.f32 %v8652_v30, %v5051_v58  ;;  %v5274_v15 = vadd.f32 %v8658_v21, %v5052_v24  ;;  %v5275_v45 = vadd.f32 %v8662_v20, %v5053_v19 }
 0x2f0   :  { %v5276_v22 = vadd.f32 %v8666_v33, %v5054_v28  ;;  %v5289_v18 = vadd.f32 %v8642_v37, %v5067_v40  ;;  %v5290_v53 = vadd.f32 %v8648_v49, %v5068_v17  ;;  %v5291_v9 = vadd.f32 %v8652_v30, %v5069_v63  ;;  %5397 = vst [vmem:[#allocation10 + $0x50] sm:$0xff] %v5271_v27 }
 0x2f1   :  { %v5292_v38 = vadd.f32 %v8658_v21, %v5070_v11  ;;  %5398 = vst [vmem:[#allocation10 + $0x58] sm:$0xff] %v5272_v54  ;;  %v5293_v26 = vadd.f32 %v8662_v20, %v5071_v42  ;;  %v5294_v59 = vadd.f32 %v8666_v33, %v5072_v50  ;;  %v5307_v58 = vadd.f32 %v8642_v37, %v5085_v39 }
 0x2f2   :  { %v5308_v24 = vadd.f32 %v8648_v49, %v5086_v5  ;;  %5399 = vst [vmem:[#allocation10 + $0x60] sm:$0xff] %v5273_v25  ;;  %5400 = vst [vmem:[#allocation10 + $0x68] sm:$0xff] %v5274_v15  ;;  %v5309_v19 = vadd.f32 %v8652_v30, %v5087_v14  ;;  %v5310_v28 = vadd.f32 %v8658_v21, %v5088_v12  ;;  %v9346_v25 = vld [vmem:[#allocation52_spill] sm:$0xff] }
 0x2f3   :  { %5401 = vst [vmem:[#allocation10 + $0x70] sm:$0xff] %v5275_v45  ;;  %5402 = vst [vmem:[#allocation10 + $0x78] sm:$0xff] %v5276_v22  ;;  %v5311_v40 = vadd.f32 %v8662_v20, %v5089_v2  ;;  %v5312_v17 = vadd.f32 %v8666_v33, %v5090_v36  ;;  %v5325_v63 = vadd.f32 %v8642_v37, %v5103_v61  ;;  %v9347_v45 = vld [vmem:[#allocation45_spill] sm:$0xff]  ;;  %v9348_v22 = vld [vmem:[#allocation28_spill] sm:$0xff] }
 0x2f4   :  { %5415 = vst [vmem:[#allocation10 + $0xe0] sm:$0xff] %v5289_v18  ;;  %5416 = vst [vmem:[#allocation10 + $0xe8] sm:$0xff] %v5290_v53  ;;  %v5326_v11 = vadd.f32 %v8648_v49, %v5104_v16  ;;  %v5327_v42 = vadd.f32 %v8652_v30, %v5105_v56  ;;  %v5328_v50 = vadd.f32 %v8658_v21, %v5106_v32  ;;  %v9349_v53 = vld [vmem:[#allocation35_spill] sm:$0xff] }
 0x2f5   :  { %5417 = vst [vmem:[#allocation10 + $0xf0] sm:$0xff] %v5291_v9  ;;  %5418 = vst [vmem:[#allocation10 + $0xf8] sm:$0xff] %v5292_v38  ;;  %v5329_v39 = vadd.f32 %v8662_v20, %v5107_v55  ;;  %v5330_v5 = vadd.f32 %v8666_v33, %v5108_v7  ;;  %v5343_v14 = vadd.f32 %v8642_v37, %v5121_v51  ;;  %v9350_v38 = vld [vmem:[#allocation53_spill] sm:$0xff] }
 0x2f6   :  { %5419 = vst [vmem:[#allocation10 + $0x100] sm:$0xff] %v5293_v26  ;;  %5420 = vst [vmem:[#allocation10 + $0x108] sm:$0xff] %v5294_v59  ;;  %v5344_v12 = vadd.f32 %v8648_v49, %v5122_v43  ;;  %v5345_v2 = vadd.f32 %v8652_v30, %v5123_v41  ;;  %v5346_v36 = vadd.f32 %v8658_v21, %v5124_v29  ;;  %v9351_v59 = vld [vmem:[#allocation82_spill] sm:$0xff] }
 0x2f7   :  { %5433 = vst [vmem:[#allocation10 + $0x170] sm:$0xff] %v5307_v58  ;;  %5434 = vst [vmem:[#allocation10 + $0x178] sm:$0xff] %v5308_v24  ;;  %v5347_v61 = vadd.f32 %v8662_v20, %v5125_v10  ;;  %v5348_v16 = vadd.f32 %v8666_v33, %v5126_v3  ;;  %v5361_v56 = vadd.f32 %v8642_v37, %v8721_v62  ;;  %v9343_v3 = vld [vmem:[#allocation17_spill] sm:$0xff] }
 0x2f8   :  { %5435 = vst [vmem:[#allocation10 + $0x180] sm:$0xff] %v5309_v19  ;;  %5436 = vst [vmem:[#allocation10 + $0x188] sm:$0xff] %v5310_v28  ;;  %v5362_v32 = vadd.f32 %v8648_v49, %v8724_v47  ;;  %v5363_v55 = vadd.f32 %v8652_v30, %v8727_v46  ;;  %v5364_v7 = vadd.f32 %v8658_v21, %v8730_v52  ;;  %v4265_v62 = vmul.f32 0.020408163, %v9343_v3  ;;  %v9344_v46 = vld [vmem:[#allocation64_spill] sm:$0xff]  ;;  %v9352_v28 = vld [vmem:[#allocation73_spill] sm:$0xff] }
 0x2f9   :  { %5437 = vst [vmem:[#allocation10 + $0x190] sm:$0xff] %v5311_v40  ;;  %5438 = vst [vmem:[#allocation10 + $0x198] sm:$0xff] %v5312_v17  ;;  %v5365_v51 = vadd.f32 %v8662_v20, %v8733_v60  ;;  %v5366_v43 = vadd.f32 %v8666_v33, %v8736_v13  ;;  %v5379_v41 = vadd.f32 %v8642_v37, %v8739_v44  ;;  %v9360_v3 = vld [vmem:[#allocation36_spill] sm:$0xff] }
 0x2fa   :  { %5451 = vst [vmem:[#allocation10 + $0x200] sm:$0xff] %v5325_v63  ;;  %5452 = vst [vmem:[#allocation10 + $0x208] sm:$0xff] %v5326_v11  ;;  %v5380_v47 = vadd.f32 %v8648_v49, %v8742_v48  ;;  %v5381_v52 = vadd.f32 %v8652_v30, %v8745_v34  ;;  %v5382_v29 = vadd.f32 %v8658_v21, %v8748_v6  ;;  %v9339_v30 = vld [vmem:[#allocation16_spill] sm:$0xff]  ;;  %v9342_v34 = vld [vmem:[#allocation18_spill] sm:$0xff] }
 0x2fb   :  { %5453 = vst [vmem:[#allocation10 + $0x210] sm:$0xff] %v5327_v42  ;;  %5454 = vst [vmem:[#allocation10 + $0x218] sm:$0xff] %v5328_v50  ;;  %v5383_v10 = vadd.f32 %v8662_v20, %v8751_v35  ;;  %v5384_v13 = vadd.f32 %v8666_v33, %v8754_v57  ;;  %v8812_v37 = vsub.f32 %v8581_v8, %v8654_v31  ;;  %v9337_v35 = vld [vmem:[#allocation46_spill] sm:$0xff]  ;;  %v9338_v57 = vld [vmem:[#allocation40_spill] sm:$0xff] }
 0x2fc   :  { %5455 = vst [vmem:[#allocation10 + $0x220] sm:$0xff] %v5329_v39  ;;  %5456 = vst [vmem:[#allocation10 + $0x228] sm:$0xff] %v5330_v5  ;;  %v8816_v6 = vsub.f32 %v8590_v4, %v8654_v31  ;;  %v8820_v49 = vsub.f32 %v9337_v35, %v8654_v31  ;;  %v8824_v21 = vrot.slane %v9339_v30, %v9338_v57  ;;  %v9340_v20 = vld [vmem:[#allocation80_spill] sm:$0xff]  ;;  %v9341_v33 = vld [vmem:[#allocation43_spill] sm:$0xff] }
 0x2fd   :  { %5469 = vst [vmem:[#allocation10 + $0x290] sm:$0xff] %v5343_v14  ;;  %5470 = vst [vmem:[#allocation10 + $0x298] sm:$0xff] %v5344_v12  ;;  %v8828_v8 = vsub.f32 %v9340_v20, %v8654_v31  ;;  %v4408_v4 = vmul.f32 %v9341_v33, %v9341_v33  ;;  %v4426_v48 = vmul.f32 %v9342_v34, %v9342_v34  ;;  %v9353_v12 = vld [vmem:[#allocation23_spill] sm:$0xff]  ;;  %v9358_v35 = vld [vmem:[#allocation29_spill] sm:$0xff] }
 0x2fe   :  { %5471 = vst [vmem:[#allocation10 + $0x2a0] sm:$0xff] %v5345_v2  ;;  %5472 = vst [vmem:[#allocation10 + $0x2a8] sm:$0xff] %v5346_v36  ;;  %v8837_v60 = vsub.f32 %v9344_v46, %v8654_v31  ;;  %v4444_v44 = vmul.f32 %v8812_v37, %v8812_v37  ;;  %v4462_v0 = vmul.f32 %v8816_v6, %v8816_v6  ;;  %v9361_v46 = vld [vmem:[#allocation31_spill] sm:$0xff] }
 0x2ff   :  { %5473 = vst [vmem:[#allocation10 + $0x2b0] sm:$0xff] %v5347_v61  ;;  %5474 = vst [vmem:[#allocation10 + $0x2b8] sm:$0xff] %v5348_v16  ;;  %v8845_v23 = vrot.slane %v9339_v30, %v9345_v1  ;;  %v4516_v27 = vmul.f32 %v8828_v8, %v8828_v8  ;;  %v4726_v54 = vadd.f32 %v4426_v48, %v4408_v4  ;;  %v9359_v4 = vld [vmem:[#allocation55_spill] sm:$0xff] }
 0x300   :  { %5487 = vst [vmem:[#allocation10 + $0x320] sm:$0xff] %v5361_v56  ;;  %5488 = vst [vmem:[#allocation10 + $0x328] sm:$0xff] %v5362_v32  ;;  %v8850_v15 = vsub.f32 %v9346_v25, %v4265_v62  ;;  %v8853_v31 = vsub.f32 %v9347_v45, %v4265_v62  ;;  %v8856_v18 = vsub.f32 %v9348_v22, %v4265_v62  ;;  %v9363_v25 = vld [vmem:[#allocation38_spill] sm:$0xff] }
 0x301   :  { %5489 = vst [vmem:[#allocation10 + $0x330] sm:$0xff] %v5363_v55  ;;  %5490 = vst [vmem:[#allocation10 + $0x338] sm:$0xff] %v5364_v7  ;;  %v8859_v9 = vsub.f32 %v9349_v53, %v4265_v62  ;;  %v8862_v26 = vsub.f32 %v9350_v38, %v4265_v62  ;;  %v8865_v58 = vsub.f32 %v9351_v59, %v4265_v62  ;;  %v4731_v11 = vsel %vm4018_vm0, %v4516_v27, 0.0  ;;  %v9354_v7 = vld [vmem:[#allocation86_spill] sm:$0xff]  ;;  %v9362_v27 = vld [vmem:[#allocation47_spill] sm:$0xff] }
 0x302   :  { %5491 = vst [vmem:[#allocation10 + $0x340] sm:$0xff] %v5365_v51  ;;  %5492 = vst [vmem:[#allocation10 + $0x348] sm:$0xff] %v5366_v43  ;;  %v4480_v24 = vmul.f32 %v8820_v49, %v8820_v49  ;;  %v4727_v19 = vadd.f32 %v4726_v54, %v4444_v44  ;;  %v8870_v40 = vsub.f32 %v9352_v28, %v4265_v62  ;;  %v9355_v43 = vld [vmem:[#allocation87_spill] sm:$0xff]  ;;  %v9364_v22 = vld [vmem:[#allocation54_spill] sm:$0xff] }
 0x303   :  { %5505 = vst [vmem:[#allocation10 + $0x3b0] sm:$0x1] %v5379_v41  ;;  %5506 = vst [vmem:[#allocation10 + $0x3b8] sm:$0x1] %v5380_v47  ;;  %v4409_v17 = vmul.f32 %v8850_v15, %v8850_v15  ;;  %v4498_v63 = vmul.f32 %v8837_v60, %v8837_v60  ;;  %v4427_v42 = vmul.f32 %v8853_v31, %v8853_v31  ;;  %v9365_v59 = vld [vmem:[#allocation49_spill] sm:$0xff] }
 0x304   :  { %5507 = vst [vmem:[#allocation10 + $0x3c0] sm:$0x1] %v5381_v52  ;;  %5508 = vst [vmem:[#allocation10 + $0x3c8] sm:$0x1] %v5382_v29  ;;  %v4445_v50 = vmul.f32 %v8856_v18, %v8856_v18  ;;  %v4728_v39 = vadd.f32 %v4727_v19, %v4462_v0  ;;  %v4463_v5 = vmul.f32 %v8859_v9, %v8859_v9  ;;  %v9356_v52 = vld [vmem:[#allocation37_spill] sm:$0xff]  ;;  %v9366_v19 = vld [vmem:[#allocation30_spill] sm:$0xff] }
 0x305   :  { %5509 = vst [vmem:[#allocation10 + $0x3d0] sm:$0x1] %v5383_v10  ;;  %5510 = vst [vmem:[#allocation10 + $0x3d8] sm:$0x1] %v5384_v13  ;;  %v4517_v14 = vmul.f32 %v8870_v40, %v8870_v40  ;;  %v4984_v2 = vrot.slane %v9353_v12, %v9338_v57  ;;  %v4481_v36 = vmul.f32 %v8862_v26, %v8862_v26  ;;  %v9357_v10 = vld [vmem:[#allocation48_spill] sm:$0xff] }
 0x306   :  { %v4499_v61 = vmul.f32 %v8865_v58, %v8865_v58  ;;  %v4739_v16 = vadd.f32 %v4427_v42, %v4409_v17  ;;  %v4988_v56 = vrot.slane %v9353_v12, %v9345_v1  ;;  %v4729_v32 = vadd.f32 %v4728_v39, %v4480_v24  ;;  %v9367_v17 = vld [vmem:[#allocation32_spill] sm:$0xff] }
 0x307   :  { %v4744_v55 = vsel %vm4018_vm0, %v4517_v14, 0.0  ;;  %v5047_v51 = vmul.f32 %v4984_v2, %v9354_v7  ;;  %v5065_v41 = vmul.f32 %v4984_v2, %v9355_v43  ;;  %v5083_v30 = vmul.f32 %v4984_v2, %v9358_v35 }
 0x308   :  { %v4740_v47 = vadd.f32 %v4739_v16, %v4445_v50  ;;  %v5048_v29 = vmul.f32 %v4988_v56, %v9356_v52  ;;  %v5066_v13 = vmul.f32 %v4988_v56, %v9357_v10  ;;  %v4730_v20 = vadd.f32 %v4729_v32, %v4498_v63 }
 0x309   :  { %v5084_v48 = vmul.f32 %v4988_v56, %v9359_v4  ;;  %v5101_v62 = vmul.f32 %v4984_v2, %v9360_v3  ;;  %v5102_v44 = vmul.f32 %v4988_v56, %v9361_v46  ;;  %v5119_v54 = vmul.f32 %v4984_v2, %v9362_v27 }
 0x30a   :  { %v4741_v0 = vadd.f32 %v4740_v47, %v4463_v5  ;;  %v5120_v45 = vmul.f32 %v4988_v56, %v9363_v25  ;;  %v5137_v53 = vmul.f32 %v4984_v2, %v9364_v22  ;;  %v4732_v38 = vadd.f32 %v4731_v11, %v4730_v20 }
 0x30b   :  { %v5138_v24 = vmul.f32 %v4988_v56, %v9365_v59  ;;  %v5155_v28 = vmul.f32 %v4984_v2, %v9366_v19  ;;  %v5156_v63 = vmul.f32 %v4988_v56, %v9367_v17  ;;  %v5269_v50 = vadd.f32 %v8824_v21, %v5047_v51 }
 0x30c   :  { %v4742_v42 = vadd.f32 %v4741_v0, %v4481_v36  ;;  %v5270_v39 = vadd.f32 %v8845_v23, %v5048_v29  ;;  %v5287_v5 = vadd.f32 %v8824_v21, %v5065_v41  ;;  %v4733_v14 = vrot.slane %v4732_v38, 4 }
 0x30d   :  { %v5288_v12 = vadd.f32 %v8845_v23, %v5066_v13  ;;  %v5305_v16 = vadd.f32 %v8824_v21, %v5083_v30  ;;  %v5306_v11 = vadd.f32 %v8845_v23, %v5084_v48  ;;  %v5323_v7 = vadd.f32 %v8824_v21, %v5101_v62  ;;  %5395 = vst [vmem:[#allocation10 + $0x40] sm:$0xff] %v5269_v50 }
 0x30e   :  { %v4743_v32 = vadd.f32 %v4742_v42, %v4499_v61  ;;  %v5324_v2 = vadd.f32 %v8845_v23, %v5102_v44  ;;  %v5341_v36 = vadd.f32 %v8824_v21, %v5119_v54  ;;  %5396 = vst [vmem:[#allocation10 + $0x48] sm:$0xff] %v5270_v39  ;;  %5413 = vst [vmem:[#allocation10 + $0xd0] sm:$0xff] %v5287_v5  ;;  %v9368_v54 = vld [vmem:[#allocation67_spill] sm:$0xff] }
 0x30f   :  { %v4734_v56 = vadd.f32 %v4733_v14, %v4732_v38  ;;  %v5342_v51 = vadd.f32 %v8845_v23, %v5120_v45  ;;  %v5359_v43 = vadd.f32 %v8824_v21, %v5137_v53  ;;  %v5360_v41 = vadd.f32 %v8845_v23, %v5138_v24  ;;  %5414 = vst [vmem:[#allocation10 + $0xd8] sm:$0xff] %v5288_v12  ;;  %v4808_v45 = vld [vmem:[#allocation7 + $0x10] sm:$0x3]  ;;  %v5167_v38 = vld [vmem:[#allocation8 + $0x10] sm:$0x3] }
 0x310   :  { %5431 = vst [vmem:[#allocation10 + $0x160] sm:$0xff] %v5305_v16  ;;  %5432 = vst [vmem:[#allocation10 + $0x168] sm:$0xff] %v5306_v11  ;;  %v4745_v61 = vadd.f32 %v4744_v55, %v4743_v32  ;;  %v5377_v47 = vadd.f32 %v8824_v21, %v5155_v28  ;;  %v5378_v52 = vadd.f32 %v8845_v23, %v5156_v63 }
 0x311   :  { %5449 = vst [vmem:[#allocation10 + $0x1f0] sm:$0xff] %v5323_v7  ;;  %5450 = vst [vmem:[#allocation10 + $0x1f8] sm:$0xff] %v5324_v2  ;;  %v4735_v29 = vrot.slane %v4734_v56, 2  ;;  %v5238_v19 = vrot.slane %v5167_v38, %v9338_v57  ;;  %v5242_v28 = vrot.slane %v5167_v38, %v9345_v1 }
 0x312   :  { %5467 = vst [vmem:[#allocation10 + $0x280] sm:$0xff] %v5341_v36  ;;  %5468 = vst [vmem:[#allocation10 + $0x288] sm:$0xff] %v5342_v51  ;;  %v4746_v10 = vrot.slane %v4745_v61, 4 }
 0x313   :  { %5485 = vst [vmem:[#allocation10 + $0x310] sm:$0xff] %v5359_v43  ;;  %5486 = vst [vmem:[#allocation10 + $0x318] sm:$0xff] %v5360_v41  ;;  %v4736_v13 = vadd.f32 %v4735_v29, %v4734_v56 }
 0x314   :  { %5503 = vst [vmem:[#allocation10 + $0x3a0] sm:$0x1] %v5377_v47  ;;  %5504 = vst [vmem:[#allocation10 + $0x3a8] sm:$0x1] %v5378_v52  ;;  %v4747_v35 = vadd.f32 %v4746_v10, %v4745_v61 }
 0x315   :  { %v4737_v30 = vrot.slane %v4736_v13, 1 }
 0x316   :  { %v4748_v20 = vrot.slane %v4747_v35, 2 }
 0x317   :  { %v4738_v4 = vadd.f32 %v4737_v30, %v4736_v13 }
 0x318   :  { %v4749_v55 = vadd.f32 %v4748_v20, %v4747_v35 }
 0x319   :  { %v4768_v48 = vmul.f32 0.020408163, %v4738_v4 }
 0x31a   :  { %v4750_v21 = vrot.slane %v4749_v55, 1 }
 0x31b   :  { %v4786_v23 = vadd.f32 0.001, %v4768_v48 }
 0x31c   :  { %v4751_v3 = vadd.f32 %v4750_v21, %v4749_v55 }
 0x31d   :  { %6684 = vrsqrt.f32 %v4786_v23 }
 0x31e   :  { %v4769_v62 = vmul.f32 0.020408163, %v4751_v3 }
 0x320   :  { %v4787_v46 = vadd.f32 0.001, %v4769_v62 }
 0x322   :  { %6686 = vrsqrt.f32 %v4787_v46 }
 0x32a   :  { %v6685_v44 = vpop.eup %6684 }
 0x32f   :  { %v6687_v0 = vpop.eup %6686 }
 0x330   :  { %v4925_v27 = vcombine.low %v6685_v44, %v6687_v0 }
 0x332   :  { %v4932_v25 = vrot.slane %v4925_v27, %v9368_v54 }
 0x334   :  { %v4939_v22 = vrot.slane %v4932_v25, %v9368_v54 }
 0x336   :  { %v4945_v53 = vmul.f32 %v4939_v22, %v4808_v45 }
 0x338   :  { %v5016_v59 = vrot.slane %v4945_v53, %v9338_v57  ;;  %v5020_v24 = vrot.slane %v4945_v53, %v9345_v1 }
 0x33a   :  { %v5055_v17 = vmul.f32 %v5016_v59, %v9341_v33  ;;  %v5056_v63 = vmul.f32 %v5020_v24, %v8850_v15  ;;  %v5073_v42 = vmul.f32 %v5016_v59, %v9342_v34  ;;  %v5074_v50 = vmul.f32 %v5020_v24, %v8853_v31 }
 0x33b   :  { %v5091_v39 = vmul.f32 %v5016_v59, %v8812_v37  ;;  %v5092_v5 = vmul.f32 %v5020_v24, %v8856_v18  ;;  %v5109_v14 = vmul.f32 %v5016_v59, %v8816_v6  ;;  %v5110_v12 = vmul.f32 %v5020_v24, %v8859_v9 }
 0x33c   :  { %v5127_v57 = vmul.f32 %v5016_v59, %v8820_v49  ;;  %v5128_v1 = vmul.f32 %v5020_v24, %v8862_v26  ;;  %v5145_v33 = vmul.f32 %v5016_v59, %v8837_v60  ;;  %v5146_v15 = vmul.f32 %v5020_v24, %v8865_v58 }
 0x33d   :  { %v5163_v34 = vmul.f32 %v5016_v59, %v8828_v8  ;;  %v5164_v31 = vmul.f32 %v5020_v24, %v8870_v40  ;;  %v5277_v16 = vadd.f32 %v5238_v19, %v5055_v17  ;;  %v5278_v37 = vadd.f32 %v5242_v28, %v5056_v63 }
 0x33e   :  { %v5295_v18 = vadd.f32 %v5238_v19, %v5073_v42  ;;  %v5296_v6 = vadd.f32 %v5242_v28, %v5074_v50  ;;  %v5313_v11 = vadd.f32 %v5238_v19, %v5091_v39  ;;  %v5314_v9 = vadd.f32 %v5242_v28, %v5092_v5 }
 0x33f   :  { %v5331_v32 = vadd.f32 %v5238_v19, %v5109_v14  ;;  %v5332_v49 = vadd.f32 %v5242_v28, %v5110_v12  ;;  %v5349_v7 = vadd.f32 %v5238_v19, %v5127_v57  ;;  %v5350_v26 = vadd.f32 %v5242_v28, %v5128_v1  ;;  %5403 = vst [vmem:[#allocation10 + $0x80] sm:$0xff] %v5277_v16 }
 0x340   :  { %5404 = vst [vmem:[#allocation10 + $0x88] sm:$0xff] %v5278_v37  ;;  %v5367_v60 = vadd.f32 %v5238_v19, %v5145_v33  ;;  %v5368_v58 = vadd.f32 %v5242_v28, %v5146_v15  ;;  %v5385_v2 = vadd.f32 %v5238_v19, %v5163_v34  ;;  %v5386_v8 = vadd.f32 %v5242_v28, %v5164_v31 }
 0x341   :  { %5421 = vst [vmem:[#allocation10 + $0x110] sm:$0xff] %v5295_v18  ;;  %5422 = vst [vmem:[#allocation10 + $0x118] sm:$0xff] %v5296_v6 }
 0x342   :  { %5439 = vst [vmem:[#allocation10 + $0x1a0] sm:$0xff] %v5313_v11  ;;  %5440 = vst [vmem:[#allocation10 + $0x1a8] sm:$0xff] %v5314_v9 }
 0x343   :  { %5457 = vst [vmem:[#allocation10 + $0x230] sm:$0xff] %v5331_v32  ;;  %5458 = vst [vmem:[#allocation10 + $0x238] sm:$0xff] %v5332_v49 }
 0x344   :  { %5475 = vst [vmem:[#allocation10 + $0x2c0] sm:$0xff] %v5349_v7  ;;  %5476 = vst [vmem:[#allocation10 + $0x2c8] sm:$0xff] %v5350_v26 }
 0x345   :  { %5493 = vst [vmem:[#allocation10 + $0x350] sm:$0xff] %v5367_v60  ;;  %5494 = vst [vmem:[#allocation10 + $0x358] sm:$0xff] %v5368_v58 }
 0x346   :  { %5511 = vst [vmem:[#allocation10 + $0x3e0] sm:$0x1] %v5385_v2  ;;  %5512 = vst [vmem:[#allocation10 + $0x3e8] sm:$0x1] %v5386_v8 }
 0x347   :  { %6803 = shalt.err (!%p6800_p10)
}
 0x348   :  { %s6831_s12 = smov 2304   ;;  %s6832_s13 = smov 144  }
 0x349   :  { %5524 = dma.vmem_to_hbm [thread:$0]  %s5519_s3, 16128, %s8949_s4, [#allocation4], %s6831_s12, %s6831_s12, %s6832_s13  }
 0x34a   :  { %6818 = dma.done.wait [#allocation4], 16128  }
 0x34b   :  { %6819 = vsyncadd [#allocation4], 4294951168 }
 0x34c   :  { %5528 = vsyncpa [#allocation3], 1 }
 0x34d   :  { %5529 = vsyncpa [#allocation6], 1 }
 0x34e   :  { %5530 = vsyncpa [#allocation9], 1 }
 0x34f   :  { %5531 = vsyncpa [#allocation4], 1 }

</bundles_post_ra>
